<compile_context>
chip_gen: v7x
topology: tpu7x:2x2x1
jax: 0.10.0
libtpu: 0.0.40
codegen_flags: <defaults>
</compile_context>

<pallas_src>
import functools

import jax
import jax.numpy as jnp
from jax.experimental import pallas as pl
from jax.experimental.pallas import tpu as pltpu


# ---------------------------------------------------------------------------
# Kernel A: pixel-shuffle ConvTranspose2d(k=4, s=2, p=1) [+ folded-BN shift] + ReLU.
#
# The padded input image arrives flattened to (Hp*Wp, Ci).  For each of the 9 spatial
# shifts (p, q) in {0,1,2}^2 the kernel slices an (M, Ci) window (M = Hc*Wp rows; the
# last 2 columns of every row are garbage and dropped by the wrapper) and accumulates a
# bf16 matmul against the per-shift weight table w[p*3+q] : (Ci, 4*Co), whose columns
# are ordered (rh, rw, co) -- the 2x2 output phases of the stride-2 transposed conv.
# Output is lane-dense (4*Co lanes) and stays f32.
# ---------------------------------------------------------------------------
def _convt_ps_kernel(*refs, M, Wp, apply_shift):
    if apply_shift:
        x_ref, w_ref, shift_ref, o_ref = refs
    else:
        x_ref, w_ref, o_ref = refs
    co_total = o_ref.shape[-1]
    acc = jnp.zeros((M, co_total), jnp.float32)
    for p in range(3):
        for q in range(3):
            s = p * Wp + q                                     # static start offset
            xs = x_ref[0, s:s + M, :].astype(jnp.bfloat16)     # shifted (M, Ci) window
            acc = acc + jnp.dot(xs, w_ref[p * 3 + q],
                                preferred_element_type=jnp.float32)
    if apply_shift:
        acc = acc + shift_ref[...]                             # folded-BN shift (per lane)
    o_ref[0] = jnp.maximum(acc, 0.0)                           # ReLU epilogue, f32


def _convt_ps(x_nhwc, w_table, shift, Hc, Wc):
    """x_nhwc: (N, Hc, Wc, Ci) f32 -> 4-phase output (N, Hc, Wc, 4*Co) f32."""
    N, _, _, Ci = x_nhwc.shape
    co_total = w_table.shape[-1]
    Wp = Wc + 2
    M = Hc * Wp
    # 1 halo row/col on each side; +1 extra bottom row so the largest shifted window
    # stays in bounds after flattening (it is never read for valid output rows).
    xp = jnp.pad(x_nhwc, ((0, 0), (1, 2), (1, 1), (0, 0)))
    xp = xp.reshape(N, (Hc + 3) * Wp, Ci)

    kern = functools.partial(_convt_ps_kernel, M=M, Wp=Wp,
                             apply_shift=shift is not None)
    in_specs = [
        pl.BlockSpec((1, (Hc + 3) * Wp, Ci), lambda n: (n, 0, 0)),
        pl.BlockSpec((9, Ci, co_total), lambda n: (0, 0, 0)),   # weight stays resident
    ]
    args = [xp, w_table]
    if shift is not None:
        in_specs.append(pl.BlockSpec((1, co_total), lambda n: (0, 0)))
        args.append(shift)

    out = pl.pallas_call(
        kern,
        out_shape=jax.ShapeDtypeStruct((N, M, co_total), jnp.float32),
        grid_spec=pltpu.PrefetchScalarGridSpec(
            num_scalar_prefetch=0,
            grid=(N,),
            in_specs=in_specs,
            out_specs=pl.BlockSpec((1, M, co_total), lambda n: (n, 0, 0)),
        ),
        compiler_params=pltpu.CompilerParams(
            dimension_semantics=("parallel",)),
    )(*args)
    # drop the 2 garbage columns appended to each flattened row
    return out.reshape(N, Hc, Wp, co_total)[:, :, :Wc, :]


# ---------------------------------------------------------------------------
# Kernel B: conv_final (1->1, 3x3, pad 1, bias) + sigmoid as a 9-tap VPU stencil.
# ---------------------------------------------------------------------------
def _conv3x3_sigmoid_kernel(x_ref, kb_ref, o_ref, *, Hf, Wf):
    acc = jnp.zeros((Hf, Wf), jnp.float32) + kb_ref[9]         # bias, (1,1) broadcast
    for i in range(3):
        for j in range(3):
            acc = acc + kb_ref[i * 3 + j] * x_ref[0, i:i + Hf, j:j + Wf]
    o_ref[0] = jax.nn.sigmoid(acc)


def _conv_final(z, kb):
    """z: (N, Hf, Wf) f32, kb: (10, 1, 1) = 3x3 taps (row-major) + bias."""
    N, Hf, Wf = z.shape
    zp = jnp.pad(z, ((0, 0), (1, 1), (1, 1)))
    return pl.pallas_call(
        functools.partial(_conv3x3_sigmoid_kernel, Hf=Hf, Wf=Wf),
        out_shape=jax.ShapeDtypeStruct((N, Hf, Wf), jnp.float32),
        grid_spec=pltpu.PrefetchScalarGridSpec(
            num_scalar_prefetch=0,
            grid=(N,),
            in_specs=[
                pl.BlockSpec((1, Hf + 2, Wf + 2), lambda n: (n, 0, 0)),
                pl.BlockSpec((10, 1, 1), lambda n: (0, 0, 0)),
            ],
            out_specs=pl.BlockSpec((1, Hf, Wf), lambda n: (n, 0, 0)),
        ),
        compiler_params=pltpu.CompilerParams(
            dimension_semantics=("parallel",)),
    )(zp, kb)


# ---------------------------------------------------------------------------
# Weight preparation (plain JAX, trace-time).
# ---------------------------------------------------------------------------
def _build_ps_weight(w_iokk, out_scale):
    """PyTorch ConvTranspose2d weight (Ci, Co, 4, 4), stride 2, pad 1 -> per-shift table
    (9, Ci, 4*Co) for the pixel-shuffle decomposition.  Output phase (rh, rw) at coarse
    location a reads padded input row a+rh+u (u in {0,1}) through kernel row 3-rh-2u
    (same along columns); `out_scale` (Co,) is folded into the columns (e.g. BN scale)."""
    Ci, Co = w_iokk.shape[0], w_iokk.shape[1]
    table = jnp.zeros((9, Ci, 4 * Co), jnp.float32)
    for rh in (0, 1):
        for rw in (0, 1):
            g = rh * 2 + rw
            for u in (0, 1):
                for v in (0, 1):
                    p, q = rh + u, rw + v
                    kh, kw = 3 - rh - 2 * u, 3 - rw - 2 * v
                    blk = w_iokk[:, :, kh, kw] * out_scale[None, :]
                    table = table.at[p * 3 + q, :, g * Co:(g + 1) * Co].set(blk)
    return table


def _pixel_shuffle_2x(phase_nhwc, co):
    """(N, Hc, Wc, 4*co) with channel order (rh, rw, c) -> (N, 2*Hc, 2*Wc, co)."""
    N, Hc, Wc, _ = phase_nhwc.shape
    x = phase_nhwc.reshape(N, Hc, Wc, 2, 2, co)
    x = x.transpose(0, 1, 3, 2, 4, 5)
    return x.reshape(N, 2 * Hc, 2 * Wc, co)


# ---------------------------------------------------------------------------
# Explanation forward (cls head + explanation head).
# ---------------------------------------------------------------------------
def explanation_forward(feature_nchw, pooled, params):
    # TODO(synk): CBAM `block`, `blockT` and `GatedMerger` are not defined in the reference
    # source, so the full backbone/decoder stacks cannot be reproduced here; `feature_nchw`
    # stands in for the decoder output entering convT1 and `pooled` for the backbone's
    # avgpool output feeding `fc`.
    N, Ci, H, W = feature_nchw.shape
    assert Ci == 64

    # cls head: tiny matmul, left to XLA (a Pallas call is pure overhead here).
    cls_scores = jnp.dot(pooled, params["fc_w"]) + params["fc_b"][None, :]

    feat = jnp.transpose(feature_nchw, (0, 2, 3, 1))           # NCHW -> NHWC

    # eval-mode BN folded into convT1's weight columns (scale) + a shift vector.
    eps = 1e-5
    bn_scale = params["bn1_gamma"] / jnp.sqrt(params["bn1_var"] + eps)
    bn_shift = params["bn1_beta"] - params["bn1_mean"] * bn_scale

    w1 = _build_ps_weight(params["convT1_w"], bn_scale).astype(jnp.bfloat16)    # (9, 64, 256)
    shift1 = jnp.tile(bn_shift, 4)[None, :].astype(jnp.float32)                 # (1, 256)
    w2 = _build_ps_weight(
        params["convT2_w"],
        jnp.ones((params["convT2_w"].shape[1],), jnp.float32)).astype(jnp.bfloat16)  # (9, 64, 4)

    # convT1 + BN + ReLU (Pallas, 4 phases x 64 ch in lanes), then pixel-shuffle.
    y_ph = _convt_ps(feat, w1, shift1, H, W)                   # (N, H, W, 256)
    y = _pixel_shuffle_2x(y_ph, 64)                            # (N, 2H, 2W, 64)

    # convT2 + ReLU (Pallas, 4 phases in lanes), then pixel-shuffle to the fine map.
    z_ph = _convt_ps(y, w2, None, 2 * H, 2 * W)                # (N, 2H, 2W, 4)
    z = _pixel_shuffle_2x(z_ph, 1)[..., 0]                     # (N, 4H, 4W)

    # conv_final (3x3) + sigmoid (Pallas VPU stencil).
    kb = jnp.concatenate([params["conv_final_w"].reshape(9),
                          params["conv_final_b"]]).reshape(10, 1, 1)
    expl = _conv_final(z, kb)                                  # (N, 4H, 4W)

    return cls_scores, expl[:, None, :, :]                     # (N, C), (N, 1, 4H, 4W)


# ---------------------------------------------------------------------------
# Deterministic parameter init (kaiming-normal style, matching module shapes).
# ---------------------------------------------------------------------------
def make_params(key, num_classes):
    ks = jax.random.split(key, 4)
    return {
        # ConvTranspose2d(64, 64, 4, 2, 1, bias=False): weight (Cin, Cout, 4, 4)
        "convT1_w": jax.random.normal(ks[0], (64, 64, 4, 4), jnp.float32) * (2.0 / (64 * 16)) ** 0.5,
        # ConvTranspose2d(64, 1, 4, 2, 1, bias=False): weight (64, 1, 4, 4)
        "convT2_w": jax.random.normal(ks[1], (64, 1, 4, 4), jnp.float32) * (2.0 / (1 * 16)) ** 0.5,
        # Conv2d(1, 1, 3, 1, 1): weight (1, 1, 3, 3), bias (1,)
        "conv_final_w": jax.random.normal(ks[2], (1, 1, 3, 3), jnp.float32) * (2.0 / 9.0) ** 0.5,
        "conv_final_b": jnp.zeros((1,), jnp.float32),
        # BatchNorm2d(64): ones/zeros init per the module's reset loop
        "bn1_gamma": jnp.ones((64,), jnp.float32),
        "bn1_beta": jnp.zeros((64,), jnp.float32),
        "bn1_mean": jnp.zeros((64,), jnp.float32),
        "bn1_var": jnp.ones((64,), jnp.float32),
        # backbone fc: Linear(512, num_classes)
        "fc_w": jax.random.normal(ks[3], (512, num_classes), jnp.float32) * 0.01,
        "fc_b": jnp.zeros((num_classes,), jnp.float32),
    }


if __name__ == "__main__":
    key = jax.random.PRNGKey(0)
    k_feat, k_pool, k_par = jax.random.split(key, 3)

    N, H, W = 2, 8, 8          # feature entering convT1: (N, 64, 8, 8)
    num_classes = 16
    feature = jax.random.normal(k_feat, (N, 64, H, W), jnp.float32)
    pooled = jax.random.normal(k_pool, (N, 512), jnp.float32)
    params = make_params(k_par, num_classes)

    cls_scores, explanation = jax.jit(explanation_forward)(feature, pooled, params)
    jax.block_until_ready((cls_scores, explanation))

    assert cls_scores.shape == (N, num_classes)
    assert explanation.shape == (N, 1, 4 * H, 4 * W)
    assert bool(jnp.all(jnp.isfinite(cls_scores)))
    assert bool(jnp.all((explanation >= 0.0) & (explanation <= 1.0)))
    print("KERNEL_OK")
</pallas_src>

<mosaic_0001>
module attributes {stable_mosaic.version = 11 : i64} {
  func.func @_convt_ps_kernel(%arg0: i32, %arg1: memref<1x110x64xf32, #tpu.memory_space<vmem>>, %arg2: memref<9x64x256xbf16, #tpu.memory_space<vmem>>, %arg3: memref<1x256xf32, #tpu.memory_space<vmem>>, %arg4: memref<1x80x256xf32, #tpu.memory_space<vmem>>) attributes {dimension_semantics = [#tpu.dimension_semantics<parallel>], iteration_bounds = array<i64: 2>, scalar_prefetch = 0 : i64, scratch_operands = 0 : i64, tpu.core_type = #tpu.core_type<tc>, window_params = [{transform_indices = @transform_0, window_bounds = array<i64: 1, 110, 64>}, {pipeline_mode = #tpu.pipeline_mode<synchronous>, transform_indices = @transform_1, window_bounds = array<i64: 9, 64, 256>}, {pipeline_mode = #tpu.pipeline_mode<synchronous>, transform_indices = @transform_2, window_bounds = array<i64: 1, 256>}, {transform_indices = @transform_3, window_bounds = array<i64: 1, 80, 256>}]} {
    %cst = arith.constant 0.000000e+00 : f32
    %0 = vector.broadcast %cst : f32 to vector<80x256xf32>
    %c0 = arith.constant 0 : index
    %c0_0 = arith.constant 0 : index
    %c0_1 = arith.constant 0 : index
    %1 = vector.load %arg1[%c0, %c0_0, %c0_1] : memref<1x110x64xf32, #tpu.memory_space<vmem>>, vector<1x80x64xf32>
    %2 = vector.shape_cast %1 : vector<1x80x64xf32> to vector<80x64xf32>
    %3 = arith.truncf %2 : vector<80x64xf32> to vector<80x64xbf16>
    %c0_2 = arith.constant 0 : index
    %c0_3 = arith.constant 0 : index
    %c0_4 = arith.constant 0 : index
    %4 = vector.load %arg2[%c0_2, %c0_3, %c0_4] : memref<9x64x256xbf16, #tpu.memory_space<vmem>>, vector<1x64x256xbf16>
    %5 = vector.shape_cast %4 : vector<1x64x256xbf16> to vector<64x256xbf16>
    %cst_5 = arith.constant dense<0.000000e+00> : vector<80x256xf32>
    %6 = tpu.matmul %3, %5, %cst_5 {dimension_numbers = #tpu.dot_dimension_numbers<[1], [0], [0], [1], [0, 0, 1, 1], [], []>} : vector<80x64xbf16>, vector<64x256xbf16>, vector<80x256xf32> -> vector<80x256xf32>
    %7 = arith.addf %0, %6 : vector<80x256xf32>
    %c0_6 = arith.constant 0 : index
    %c1 = arith.constant 1 : index
    %c0_7 = arith.constant 0 : index
    %8 = vector.load %arg1[%c0_6, %c1, %c0_7] : memref<1x110x64xf32, #tpu.memory_space<vmem>>, vector<1x80x64xf32>
    %9 = vector.shape_cast %8 : vector<1x80x64xf32> to vector<80x64xf32>
    %10 = arith.truncf %9 : vector<80x64xf32> to vector<80x64xbf16>
    %c1_8 = arith.constant 1 : index
    %c0_9 = arith.constant 0 : index
    %c0_10 = arith.constant 0 : index
    %11 = vector.load %arg2[%c1_8, %c0_9, %c0_10] : memref<9x64x256xbf16, #tpu.memory_space<vmem>>, vector<1x64x256xbf16>
    %12 = vector.shape_cast %11 : vector<1x64x256xbf16> to vector<64x256xbf16>
    %cst_11 = arith.constant dense<0.000000e+00> : vector<80x256xf32>
    %13 = tpu.matmul %10, %12, %cst_11 {dimension_numbers = #tpu.dot_dimension_numbers<[1], [0], [0], [1], [0, 0, 1, 1], [], []>} : vector<80x64xbf16>, vector<64x256xbf16>, vector<80x256xf32> -> vector<80x256xf32>
    %14 = arith.addf %7, %13 : vector<80x256xf32>
    %c0_12 = arith.constant 0 : index
    %c2 = arith.constant 2 : index
    %c0_13 = arith.constant 0 : index
    %15 = vector.load %arg1[%c0_12, %c2, %c0_13] : memref<1x110x64xf32, #tpu.memory_space<vmem>>, vector<1x80x64xf32>
    %16 = vector.shape_cast %15 : vector<1x80x64xf32> to vector<80x64xf32>
    %17 = arith.truncf %16 : vector<80x64xf32> to vector<80x64xbf16>
    %c2_14 = arith.constant 2 : index
    %c0_15 = arith.constant 0 : index
    %c0_16 = arith.constant 0 : index
    %18 = vector.load %arg2[%c2_14, %c0_15, %c0_16] : memref<9x64x256xbf16, #tpu.memory_space<vmem>>, vector<1x64x256xbf16>
    %19 = vector.shape_cast %18 : vector<1x64x256xbf16> to vector<64x256xbf16>
    %cst_17 = arith.constant dense<0.000000e+00> : vector<80x256xf32>
    %20 = tpu.matmul %17, %19, %cst_17 {dimension_numbers = #tpu.dot_dimension_numbers<[1], [0], [0], [1], [0, 0, 1, 1], [], []>} : vector<80x64xbf16>, vector<64x256xbf16>, vector<80x256xf32> -> vector<80x256xf32>
    %21 = arith.addf %14, %20 : vector<80x256xf32>
    %c0_18 = arith.constant 0 : index
    %c10 = arith.constant 10 : index
    %c0_19 = arith.constant 0 : index
    %22 = vector.load %arg1[%c0_18, %c10, %c0_19] : memref<1x110x64xf32, #tpu.memory_space<vmem>>, vector<1x80x64xf32>
    %23 = vector.shape_cast %22 : vector<1x80x64xf32> to vector<80x64xf32>
    %24 = arith.truncf %23 : vector<80x64xf32> to vector<80x64xbf16>
    %c3 = arith.constant 3 : index
    %c0_20 = arith.constant 0 : index
    %c0_21 = arith.constant 0 : index
    %25 = vector.load %arg2[%c3, %c0_20, %c0_21] : memref<9x64x256xbf16, #tpu.memory_space<vmem>>, vector<1x64x256xbf16>
    %26 = vector.shape_cast %25 : vector<1x64x256xbf16> to vector<64x256xbf16>
    %cst_22 = arith.constant dense<0.000000e+00> : vector<80x256xf32>
    %27 = tpu.matmul %24, %26, %cst_22 {dimension_numbers = #tpu.dot_dimension_numbers<[1], [0], [0], [1], [0, 0, 1, 1], [], []>} : vector<80x64xbf16>, vector<64x256xbf16>, vector<80x256xf32> -> vector<80x256xf32>
    %28 = arith.addf %21, %27 : vector<80x256xf32>
    %c0_23 = arith.constant 0 : index
    %c11 = arith.constant 11 : index
    %c0_24 = arith.constant 0 : index
    %29 = vector.load %arg1[%c0_23, %c11, %c0_24] : memref<1x110x64xf32, #tpu.memory_space<vmem>>, vector<1x80x64xf32>
    %30 = vector.shape_cast %29 : vector<1x80x64xf32> to vector<80x64xf32>
    %31 = arith.truncf %30 : vector<80x64xf32> to vector<80x64xbf16>
    %c4 = arith.constant 4 : index
    %c0_25 = arith.constant 0 : index
    %c0_26 = arith.constant 0 : index
    %32 = vector.load %arg2[%c4, %c0_25, %c0_26] : memref<9x64x256xbf16, #tpu.memory_space<vmem>>, vector<1x64x256xbf16>
    %33 = vector.shape_cast %32 : vector<1x64x256xbf16> to vector<64x256xbf16>
    %cst_27 = arith.constant dense<0.000000e+00> : vector<80x256xf32>
    %34 = tpu.matmul %31, %33, %cst_27 {dimension_numbers = #tpu.dot_dimension_numbers<[1], [0], [0], [1], [0, 0, 1, 1], [], []>} : vector<80x64xbf16>, vector<64x256xbf16>, vector<80x256xf32> -> vector<80x256xf32>
    %35 = arith.addf %28, %34 : vector<80x256xf32>
    %c0_28 = arith.constant 0 : index
    %c12 = arith.constant 12 : index
    %c0_29 = arith.constant 0 : index
    %36 = vector.load %arg1[%c0_28, %c12, %c0_29] : memref<1x110x64xf32, #tpu.memory_space<vmem>>, vector<1x80x64xf32>
    %37 = vector.shape_cast %36 : vector<1x80x64xf32> to vector<80x64xf32>
    %38 = arith.truncf %37 : vector<80x64xf32> to vector<80x64xbf16>
    %c5 = arith.constant 5 : index
    %c0_30 = arith.constant 0 : index
    %c0_31 = arith.constant 0 : index
    %39 = vector.load %arg2[%c5, %c0_30, %c0_31] : memref<9x64x256xbf16, #tpu.memory_space<vmem>>, vector<1x64x256xbf16>
    %40 = vector.shape_cast %39 : vector<1x64x256xbf16> to vector<64x256xbf16>
    %cst_32 = arith.constant dense<0.000000e+00> : vector<80x256xf32>
    %41 = tpu.matmul %38, %40, %cst_32 {dimension_numbers = #tpu.dot_dimension_numbers<[1], [0], [0], [1], [0, 0, 1, 1], [], []>} : vector<80x64xbf16>, vector<64x256xbf16>, vector<80x256xf32> -> vector<80x256xf32>
    %42 = arith.addf %35, %41 : vector<80x256xf32>
    %c0_33 = arith.constant 0 : index
    %c20 = arith.constant 20 : index
    %c0_34 = arith.constant 0 : index
    %43 = vector.load %arg1[%c0_33, %c20, %c0_34] : memref<1x110x64xf32, #tpu.memory_space<vmem>>, vector<1x80x64xf32>
    %44 = vector.shape_cast %43 : vector<1x80x64xf32> to vector<80x64xf32>
    %45 = arith.truncf %44 : vector<80x64xf32> to vector<80x64xbf16>
    %c6 = arith.constant 6 : index
    %c0_35 = arith.constant 0 : index
    %c0_36 = arith.constant 0 : index
    %46 = vector.load %arg2[%c6, %c0_35, %c0_36] : memref<9x64x256xbf16, #tpu.memory_space<vmem>>, vector<1x64x256xbf16>
    %47 = vector.shape_cast %46 : vector<1x64x256xbf16> to vector<64x256xbf16>
    %cst_37 = arith.constant dense<0.000000e+00> : vector<80x256xf32>
    %48 = tpu.matmul %45, %47, %cst_37 {dimension_numbers = #tpu.dot_dimension_numbers<[1], [0], [0], [1], [0, 0, 1, 1], [], []>} : vector<80x64xbf16>, vector<64x256xbf16>, vector<80x256xf32> -> vector<80x256xf32>
    %49 = arith.addf %42, %48 : vector<80x256xf32>
    %c0_38 = arith.constant 0 : index
    %c21 = arith.constant 21 : index
    %c0_39 = arith.constant 0 : index
    %50 = vector.load %arg1[%c0_38, %c21, %c0_39] : memref<1x110x64xf32, #tpu.memory_space<vmem>>, vector<1x80x64xf32>
    %51 = vector.shape_cast %50 : vector<1x80x64xf32> to vector<80x64xf32>
    %52 = arith.truncf %51 : vector<80x64xf32> to vector<80x64xbf16>
    %c7 = arith.constant 7 : index
    %c0_40 = arith.constant 0 : index
    %c0_41 = arith.constant 0 : index
    %53 = vector.load %arg2[%c7, %c0_40, %c0_41] : memref<9x64x256xbf16, #tpu.memory_space<vmem>>, vector<1x64x256xbf16>
    %54 = vector.shape_cast %53 : vector<1x64x256xbf16> to vector<64x256xbf16>
    %cst_42 = arith.constant dense<0.000000e+00> : vector<80x256xf32>
    %55 = tpu.matmul %52, %54, %cst_42 {dimension_numbers = #tpu.dot_dimension_numbers<[1], [0], [0], [1], [0, 0, 1, 1], [], []>} : vector<80x64xbf16>, vector<64x256xbf16>, vector<80x256xf32> -> vector<80x256xf32>
    %56 = arith.addf %49, %55 : vector<80x256xf32>
    %c0_43 = arith.constant 0 : index
    %c22 = arith.constant 22 : index
    %c0_44 = arith.constant 0 : index
    %57 = vector.load %arg1[%c0_43, %c22, %c0_44] : memref<1x110x64xf32, #tpu.memory_space<vmem>>, vector<1x80x64xf32>
    %58 = vector.shape_cast %57 : vector<1x80x64xf32> to vector<80x64xf32>
    %59 = arith.truncf %58 : vector<80x64xf32> to vector<80x64xbf16>
    %c8 = arith.constant 8 : index
    %c0_45 = arith.constant 0 : index
    %c0_46 = arith.constant 0 : index
    %60 = vector.load %arg2[%c8, %c0_45, %c0_46] : memref<9x64x256xbf16, #tpu.memory_space<vmem>>, vector<1x64x256xbf16>
    %61 = vector.shape_cast %60 : vector<1x64x256xbf16> to vector<64x256xbf16>
    %cst_47 = arith.constant dense<0.000000e+00> : vector<80x256xf32>
    %62 = tpu.matmul %59, %61, %cst_47 {dimension_numbers = #tpu.dot_dimension_numbers<[1], [0], [0], [1], [0, 0, 1, 1], [], []>} : vector<80x64xbf16>, vector<64x256xbf16>, vector<80x256xf32> -> vector<80x256xf32>
    %63 = arith.addf %56, %62 : vector<80x256xf32>
    %c0_48 = arith.constant 0 : index
    %c0_49 = arith.constant 0 : index
    %64 = vector.load %arg3[%c0_48, %c0_49] : memref<1x256xf32, #tpu.memory_space<vmem>>, vector<1x256xf32>
    %65 = vector.broadcast %64 : vector<1x256xf32> to vector<80x256xf32>
    %66 = arith.addf %63, %65 : vector<80x256xf32>
    %cst_50 = arith.constant 0.000000e+00 : f32
    %67 = vector.broadcast %cst_50 : f32 to vector<80x256xf32>
    %68 = arith.maximumf %66, %67 : vector<80x256xf32>
    %c0_51 = arith.constant 0 : index
    %c0_52 = arith.constant 0 : index
    %c0_53 = arith.constant 0 : index
    %69 = vector.load %arg4[%c0_51, %c0_52, %c0_53] : memref<1x80x256xf32, #tpu.memory_space<vmem>>, vector<1x80x256xf32>
    %70 = vector.shape_cast %69 : vector<1x80x256xf32> to vector<80x256xf32>
    %71 = vector.shape_cast %68 : vector<80x256xf32> to vector<1x80x256xf32>
    tpu.vector_store %arg4[%c0_51, %c0_52, %c0_53], %71 {strides = array<i32>} : memref<1x80x256xf32, #tpu.memory_space<vmem>>, vector<1x80x256xf32>,
    return
  }
  func.func @transform_0(%arg0: i32) -> (i32, i32, i32) {
    %c0_i32 = arith.constant 0 : i32
    %c0_i32_0 = arith.constant 0 : i32
    %c0_i32_1 = arith.constant 0 : i32
    return %arg0, %c0_i32, %c0_i32_0 : i32, i32, i32
  }
  func.func @transform_1(%arg0: i32) -> (i32, i32, i32) {
    %c0_i32 = arith.constant 0 : i32
    %c0_i32_0 = arith.constant 0 : i32
    %c0_i32_1 = arith.constant 0 : i32
    %c0_i32_2 = arith.constant 0 : i32
    return %c0_i32, %c0_i32_0, %c0_i32_1 : i32, i32, i32
  }
  func.func @transform_2(%arg0: i32) -> (i32, i32) {
    %c0_i32 = arith.constant 0 : i32
    %c0_i32_0 = arith.constant 0 : i32
    %c0_i32_1 = arith.constant 0 : i32
    return %c0_i32, %c0_i32_0 : i32, i32
  }
  func.func @transform_3(%arg0: i32) -> (i32, i32, i32) {
    %c0_i32 = arith.constant 0 : i32
    %c0_i32_0 = arith.constant 0 : i32
    %c0_i32_1 = arith.constant 0 : i32
    return %arg0, %c0_i32, %c0_i32_0 : i32, i32, i32
  }
}

module attributes {stable_mosaic.version = 11 : i64} {
  func.func @_convt_ps_kernel(%arg0: i32, %arg1: memref<1x342x64xf32, #tpu.memory_space<vmem>>, %arg2: memref<9x64x4xbf16, #tpu.memory_space<vmem>>, %arg3: memref<1x288x4xf32, #tpu.memory_space<vmem>>) attributes {dimension_semantics = [#tpu.dimension_semantics<parallel>], iteration_bounds = array<i64: 2>, scalar_prefetch = 0 : i64, scratch_operands = 0 : i64, tpu.core_type = #tpu.core_type<tc>, window_params = [{transform_indices = @transform_0, window_bounds = array<i64: 1, 342, 64>}, {pipeline_mode = #tpu.pipeline_mode<synchronous>, transform_indices = @transform_1, window_bounds = array<i64: 9, 64, 4>}, {transform_indices = @transform_2, window_bounds = array<i64: 1, 288, 4>}]} {
    %cst = arith.constant 0.000000e+00 : f32
    %0 = vector.broadcast %cst : f32 to vector<288x4xf32>
    %c0 = arith.constant 0 : index
    %c0_0 = arith.constant 0 : index
    %c0_1 = arith.constant 0 : index
    %1 = vector.load %arg1[%c0, %c0_0, %c0_1] : memref<1x342x64xf32, #tpu.memory_space<vmem>>, vector<1x288x64xf32>
    %2 = vector.shape_cast %1 : vector<1x288x64xf32> to vector<288x64xf32>
    %3 = arith.truncf %2 : vector<288x64xf32> to vector<288x64xbf16>
    %c0_2 = arith.constant 0 : index
    %c0_3 = arith.constant 0 : index
    %c0_4 = arith.constant 0 : index
    %4 = vector.load %arg2[%c0_2, %c0_3, %c0_4] : memref<9x64x4xbf16, #tpu.memory_space<vmem>>, vector<1x64x4xbf16>
    %5 = vector.shape_cast %4 : vector<1x64x4xbf16> to vector<64x4xbf16>
    %cst_5 = arith.constant dense<0.000000e+00> : vector<288x4xf32>
    %6 = tpu.matmul %3, %5, %cst_5 {dimension_numbers = #tpu.dot_dimension_numbers<[1], [0], [0], [1], [0, 0, 1, 1], [], []>} : vector<288x64xbf16>, vector<64x4xbf16>, vector<288x4xf32> -> vector<288x4xf32>
    %7 = arith.addf %0, %6 : vector<288x4xf32>
    %c0_6 = arith.constant 0 : index
    %c1 = arith.constant 1 : index
    %c0_7 = arith.constant 0 : index
    %8 = vector.load %arg1[%c0_6, %c1, %c0_7] : memref<1x342x64xf32, #tpu.memory_space<vmem>>, vector<1x288x64xf32>
    %9 = vector.shape_cast %8 : vector<1x288x64xf32> to vector<288x64xf32>
    %10 = arith.truncf %9 : vector<288x64xf32> to vector<288x64xbf16>
    %c1_8 = arith.constant 1 : index
    %c0_9 = arith.constant 0 : index
    %c0_10 = arith.constant 0 : index
    %11 = vector.load %arg2[%c1_8, %c0_9, %c0_10] : memref<9x64x4xbf16, #tpu.memory_space<vmem>>, vector<1x64x4xbf16>
    %12 = vector.shape_cast %11 : vector<1x64x4xbf16> to vector<64x4xbf16>
    %cst_11 = arith.constant dense<0.000000e+00> : vector<288x4xf32>
    %13 = tpu.matmul %10, %12, %cst_11 {dimension_numbers = #tpu.dot_dimension_numbers<[1], [0], [0], [1], [0, 0, 1, 1], [], []>} : vector<288x64xbf16>, vector<64x4xbf16>, vector<288x4xf32> -> vector<288x4xf32>
    %14 = arith.addf %7, %13 : vector<288x4xf32>
    %c0_12 = arith.constant 0 : index
    %c2 = arith.constant 2 : index
    %c0_13 = arith.constant 0 : index
    %15 = vector.load %arg1[%c0_12, %c2, %c0_13] : memref<1x342x64xf32, #tpu.memory_space<vmem>>, vector<1x288x64xf32>
    %16 = vector.shape_cast %15 : vector<1x288x64xf32> to vector<288x64xf32>
    %17 = arith.truncf %16 : vector<288x64xf32> to vector<288x64xbf16>
    %c2_14 = arith.constant 2 : index
    %c0_15 = arith.constant 0 : index
    %c0_16 = arith.constant 0 : index
    %18 = vector.load %arg2[%c2_14, %c0_15, %c0_16] : memref<9x64x4xbf16, #tpu.memory_space<vmem>>, vector<1x64x4xbf16>
    %19 = vector.shape_cast %18 : vector<1x64x4xbf16> to vector<64x4xbf16>
    %cst_17 = arith.constant dense<0.000000e+00> : vector<288x4xf32>
    %20 = tpu.matmul %17, %19, %cst_17 {dimension_numbers = #tpu.dot_dimension_numbers<[1], [0], [0], [1], [0, 0, 1, 1], [], []>} : vector<288x64xbf16>, vector<64x4xbf16>, vector<288x4xf32> -> vector<288x4xf32>
    %21 = arith.addf %14, %20 : vector<288x4xf32>
    %c0_18 = arith.constant 0 : index
    %c18 = arith.constant 18 : index
    %c0_19 = arith.constant 0 : index
    %22 = vector.load %arg1[%c0_18, %c18, %c0_19] : memref<1x342x64xf32, #tpu.memory_space<vmem>>, vector<1x288x64xf32>
    %23 = vector.shape_cast %22 : vector<1x288x64xf32> to vector<288x64xf32>
    %24 = arith.truncf %23 : vector<288x64xf32> to vector<288x64xbf16>
    %c3 = arith.constant 3 : index
    %c0_20 = arith.constant 0 : index
    %c0_21 = arith.constant 0 : index
    %25 = vector.load %arg2[%c3, %c0_20, %c0_21] : memref<9x64x4xbf16, #tpu.memory_space<vmem>>, vector<1x64x4xbf16>
    %26 = vector.shape_cast %25 : vector<1x64x4xbf16> to vector<64x4xbf16>
    %cst_22 = arith.constant dense<0.000000e+00> : vector<288x4xf32>
    %27 = tpu.matmul %24, %26, %cst_22 {dimension_numbers = #tpu.dot_dimension_numbers<[1], [0], [0], [1], [0, 0, 1, 1], [], []>} : vector<288x64xbf16>, vector<64x4xbf16>, vector<288x4xf32> -> vector<288x4xf32>
    %28 = arith.addf %21, %27 : vector<288x4xf32>
    %c0_23 = arith.constant 0 : index
    %c19 = arith.constant 19 : index
    %c0_24 = arith.constant 0 : index
    %29 = vector.load %arg1[%c0_23, %c19, %c0_24] : memref<1x342x64xf32, #tpu.memory_space<vmem>>, vector<1x288x64xf32>
    %30 = vector.shape_cast %29 : vector<1x288x64xf32> to vector<288x64xf32>
    %31 = arith.truncf %30 : vector<288x64xf32> to vector<288x64xbf16>
    %c4 = arith.constant 4 : index
    %c0_25 = arith.constant 0 : index
    %c0_26 = arith.constant 0 : index
    %32 = vector.load %arg2[%c4, %c0_25, %c0_26] : memref<9x64x4xbf16, #tpu.memory_space<vmem>>, vector<1x64x4xbf16>
    %33 = vector.shape_cast %32 : vector<1x64x4xbf16> to vector<64x4xbf16>
    %cst_27 = arith.constant dense<0.000000e+00> : vector<288x4xf32>
    %34 = tpu.matmul %31, %33, %cst_27 {dimension_numbers = #tpu.dot_dimension_numbers<[1], [0], [0], [1], [0, 0, 1, 1], [], []>} : vector<288x64xbf16>, vector<64x4xbf16>, vector<288x4xf32> -> vector<288x4xf32>
    %35 = arith.addf %28, %34 : vector<288x4xf32>
    %c0_28 = arith.constant 0 : index
    %c20 = arith.constant 20 : index
    %c0_29 = arith.constant 0 : index
    %36 = vector.load %arg1[%c0_28, %c20, %c0_29] : memref<1x342x64xf32, #tpu.memory_space<vmem>>, vector<1x288x64xf32>
    %37 = vector.shape_cast %36 : vector<1x288x64xf32> to vector<288x64xf32>
    %38 = arith.truncf %37 : vector<288x64xf32> to vector<288x64xbf16>
    %c5 = arith.constant 5 : index
    %c0_30 = arith.constant 0 : index
    %c0_31 = arith.constant 0 : index
    %39 = vector.load %arg2[%c5, %c0_30, %c0_31] : memref<9x64x4xbf16, #tpu.memory_space<vmem>>, vector<1x64x4xbf16>
    %40 = vector.shape_cast %39 : vector<1x64x4xbf16> to vector<64x4xbf16>
    %cst_32 = arith.constant dense<0.000000e+00> : vector<288x4xf32>
    %41 = tpu.matmul %38, %40, %cst_32 {dimension_numbers = #tpu.dot_dimension_numbers<[1], [0], [0], [1], [0, 0, 1, 1], [], []>} : vector<288x64xbf16>, vector<64x4xbf16>, vector<288x4xf32> -> vector<288x4xf32>
    %42 = arith.addf %35, %41 : vector<288x4xf32>
    %c0_33 = arith.constant 0 : index
    %c36 = arith.constant 36 : index
    %c0_34 = arith.constant 0 : index
    %43 = vector.load %arg1[%c0_33, %c36, %c0_34] : memref<1x342x64xf32, #tpu.memory_space<vmem>>, vector<1x288x64xf32>
    %44 = vector.shape_cast %43 : vector<1x288x64xf32> to vector<288x64xf32>
    %45 = arith.truncf %44 : vector<288x64xf32> to vector<288x64xbf16>
    %c6 = arith.constant 6 : index
    %c0_35 = arith.constant 0 : index
    %c0_36 = arith.constant 0 : index
    %46 = vector.load %arg2[%c6, %c0_35, %c0_36] : memref<9x64x4xbf16, #tpu.memory_space<vmem>>, vector<1x64x4xbf16>
    %47 = vector.shape_cast %46 : vector<1x64x4xbf16> to vector<64x4xbf16>
    %cst_37 = arith.constant dense<0.000000e+00> : vector<288x4xf32>
    %48 = tpu.matmul %45, %47, %cst_37 {dimension_numbers = #tpu.dot_dimension_numbers<[1], [0], [0], [1], [0, 0, 1, 1], [], []>} : vector<288x64xbf16>, vector<64x4xbf16>, vector<288x4xf32> -> vector<288x4xf32>
    %49 = arith.addf %42, %48 : vector<288x4xf32>
    %c0_38 = arith.constant 0 : index
    %c37 = arith.constant 37 : index
    %c0_39 = arith.constant 0 : index
    %50 = vector.load %arg1[%c0_38, %c37, %c0_39] : memref<1x342x64xf32, #tpu.memory_space<vmem>>, vector<1x288x64xf32>
    %51 = vector.shape_cast %50 : vector<1x288x64xf32> to vector<288x64xf32>
    %52 = arith.truncf %51 : vector<288x64xf32> to vector<288x64xbf16>
    %c7 = arith.constant 7 : index
    %c0_40 = arith.constant 0 : index
    %c0_41 = arith.constant 0 : index
    %53 = vector.load %arg2[%c7, %c0_40, %c0_41] : memref<9x64x4xbf16, #tpu.memory_space<vmem>>, vector<1x64x4xbf16>
    %54 = vector.shape_cast %53 : vector<1x64x4xbf16> to vector<64x4xbf16>
    %cst_42 = arith.constant dense<0.000000e+00> : vector<288x4xf32>
    %55 = tpu.matmul %52, %54, %cst_42 {dimension_numbers = #tpu.dot_dimension_numbers<[1], [0], [0], [1], [0, 0, 1, 1], [], []>} : vector<288x64xbf16>, vector<64x4xbf16>, vector<288x4xf32> -> vector<288x4xf32>
    %56 = arith.addf %49, %55 : vector<288x4xf32>
    %c0_43 = arith.constant 0 : index
    %c38 = arith.constant 38 : index
    %c0_44 = arith.constant 0 : index
    %57 = vector.load %arg1[%c0_43, %c38, %c0_44] : memref<1x342x64xf32, #tpu.memory_space<vmem>>, vector<1x288x64xf32>
    %58 = vector.shape_cast %57 : vector<1x288x64xf32> to vector<288x64xf32>
    %59 = arith.truncf %58 : vector<288x64xf32> to vector<288x64xbf16>
    %c8 = arith.constant 8 : index
    %c0_45 = arith.constant 0 : index
    %c0_46 = arith.constant 0 : index
    %60 = vector.load %arg2[%c8, %c0_45, %c0_46] : memref<9x64x4xbf16, #tpu.memory_space<vmem>>, vector<1x64x4xbf16>
    %61 = vector.shape_cast %60 : vector<1x64x4xbf16> to vector<64x4xbf16>
    %cst_47 = arith.constant dense<0.000000e+00> : vector<288x4xf32>
    %62 = tpu.matmul %59, %61, %cst_47 {dimension_numbers = #tpu.dot_dimension_numbers<[1], [0], [0], [1], [0, 0, 1, 1], [], []>} : vector<288x64xbf16>, vector<64x4xbf16>, vector<288x4xf32> -> vector<288x4xf32>
    %63 = arith.addf %56, %62 : vector<288x4xf32>
    %cst_48 = arith.constant 0.000000e+00 : f32
    %64 = vector.broadcast %cst_48 : f32 to vector<288x4xf32>
    %65 = arith.maximumf %63, %64 : vector<288x4xf32>
    %c0_49 = arith.constant 0 : index
    %c0_50 = arith.constant 0 : index
    %c0_51 = arith.constant 0 : index
    %66 = vector.load %arg3[%c0_49, %c0_50, %c0_51] : memref<1x288x4xf32, #tpu.memory_space<vmem>>, vector<1x288x4xf32>
    %67 = vector.shape_cast %66 : vector<1x288x4xf32> to vector<288x4xf32>
    %68 = vector.shape_cast %65 : vector<288x4xf32> to vector<1x288x4xf32>
    tpu.vector_store %arg3[%c0_49, %c0_50, %c0_51], %68 {strides = array<i32>} : memref<1x288x4xf32, #tpu.memory_space<vmem>>, vector<1x288x4xf32>,
    return
  }
  func.func @transform_0(%arg0: i32) -> (i32, i32, i32) {
    %c0_i32 = arith.constant 0 : i32
    %c0_i32_0 = arith.constant 0 : i32
    %c0_i32_1 = arith.constant 0 : i32
    return %arg0, %c0_i32, %c0_i32_0 : i32, i32, i32
  }
  func.func @transform_1(%arg0: i32) -> (i32, i32, i32) {
    %c0_i32 = arith.constant 0 : i32
    %c0_i32_0 = arith.constant 0 : i32
    %c0_i32_1 = arith.constant 0 : i32
    %c0_i32_2 = arith.constant 0 : i32
    return %c0_i32, %c0_i32_0, %c0_i32_1 : i32, i32, i32
  }
  func.func @transform_2(%arg0: i32) -> (i32, i32, i32) {
    %c0_i32 = arith.constant 0 : i32
    %c0_i32_0 = arith.constant 0 : i32
    %c0_i32_1 = arith.constant 0 : i32
    return %arg0, %c0_i32, %c0_i32_0 : i32, i32, i32
  }
}

module attributes {stable_mosaic.version = 11 : i64} {
  func.func @_conv3x3_sigmoid_kernel(%arg0: i32, %arg1: memref<1x34x34xf32, #tpu.memory_space<vmem>>, %arg2: memref<10x1x1xf32, #tpu.memory_space<vmem>>, %arg3: memref<1x32x32xf32, #tpu.memory_space<vmem>>) attributes {dimension_semantics = [#tpu.dimension_semantics<parallel>], iteration_bounds = array<i64: 2>, scalar_prefetch = 0 : i64, scratch_operands = 0 : i64, tpu.core_type = #tpu.core_type<tc>, window_params = [{transform_indices = @transform_0, window_bounds = array<i64: 1, 34, 34>}, {pipeline_mode = #tpu.pipeline_mode<synchronous>, transform_indices = @transform_1, window_bounds = array<i64: 10, 1, 1>}, {transform_indices = @transform_2, window_bounds = array<i64: 1, 32, 32>}]} {
    %cst = arith.constant 0.000000e+00 : f32
    %0 = vector.broadcast %cst : f32 to vector<32x32xf32>
    %c9 = arith.constant 9 : index
    %c0 = arith.constant 0 : index
    %c0_0 = arith.constant 0 : index
    %1 = vector.load %arg2[%c9, %c0, %c0_0] : memref<10x1x1xf32, #tpu.memory_space<vmem>>, vector<1x1x1xf32>
    %2 = vector.shape_cast %1 : vector<1x1x1xf32> to vector<1x1xf32>
    %3 = vector.broadcast %2 : vector<1x1xf32> to vector<32x32xf32>
    %4 = arith.addf %0, %3 : vector<32x32xf32>
    %c0_1 = arith.constant 0 : index
    %c0_2 = arith.constant 0 : index
    %c0_3 = arith.constant 0 : index
    %5 = vector.load %arg2[%c0_1, %c0_2, %c0_3] : memref<10x1x1xf32, #tpu.memory_space<vmem>>, vector<1x1x1xf32>
    %6 = vector.shape_cast %5 : vector<1x1x1xf32> to vector<1x1xf32>
    %c0_4 = arith.constant 0 : index
    %c0_5 = arith.constant 0 : index
    %c0_6 = arith.constant 0 : index
    %7 = vector.load %arg1[%c0_4, %c0_5, %c0_6] : memref<1x34x34xf32, #tpu.memory_space<vmem>>, vector<1x32x32xf32>
    %8 = vector.shape_cast %7 : vector<1x32x32xf32> to vector<32x32xf32>
    %9 = vector.broadcast %6 : vector<1x1xf32> to vector<32x32xf32>
    %10 = arith.mulf %9, %8 : vector<32x32xf32>
    %11 = arith.addf %4, %10 : vector<32x32xf32>
    %c1 = arith.constant 1 : index
    %c0_7 = arith.constant 0 : index
    %c0_8 = arith.constant 0 : index
    %12 = vector.load %arg2[%c1, %c0_7, %c0_8] : memref<10x1x1xf32, #tpu.memory_space<vmem>>, vector<1x1x1xf32>
    %13 = vector.shape_cast %12 : vector<1x1x1xf32> to vector<1x1xf32>
    %c0_9 = arith.constant 0 : index
    %c0_10 = arith.constant 0 : index
    %c1_11 = arith.constant 1 : index
    %14 = vector.load %arg1[%c0_9, %c0_10, %c1_11] : memref<1x34x34xf32, #tpu.memory_space<vmem>>, vector<1x32x32xf32>
    %15 = vector.shape_cast %14 : vector<1x32x32xf32> to vector<32x32xf32>
    %16 = vector.broadcast %13 : vector<1x1xf32> to vector<32x32xf32>
    %17 = arith.mulf %16, %15 : vector<32x32xf32>
    %18 = arith.addf %11, %17 : vector<32x32xf32>
    %c2 = arith.constant 2 : index
    %c0_12 = arith.constant 0 : index
    %c0_13 = arith.constant 0 : index
    %19 = vector.load %arg2[%c2, %c0_12, %c0_13] : memref<10x1x1xf32, #tpu.memory_space<vmem>>, vector<1x1x1xf32>
    %20 = vector.shape_cast %19 : vector<1x1x1xf32> to vector<1x1xf32>
    %c0_14 = arith.constant 0 : index
    %c0_15 = arith.constant 0 : index
    %c2_16 = arith.constant 2 : index
    %21 = vector.load %arg1[%c0_14, %c0_15, %c2_16] : memref<1x34x34xf32, #tpu.memory_space<vmem>>, vector<1x32x32xf32>
    %22 = vector.shape_cast %21 : vector<1x32x32xf32> to vector<32x32xf32>
    %23 = vector.broadcast %20 : vector<1x1xf32> to vector<32x32xf32>
    %24 = arith.mulf %23, %22 : vector<32x32xf32>
    %25 = arith.addf %18, %24 : vector<32x32xf32>
    %c3 = arith.constant 3 : index
    %c0_17 = arith.constant 0 : index
    %c0_18 = arith.constant 0 : index
    %26 = vector.load %arg2[%c3, %c0_17, %c0_18] : memref<10x1x1xf32, #tpu.memory_space<vmem>>, vector<1x1x1xf32>
    %27 = vector.shape_cast %26 : vector<1x1x1xf32> to vector<1x1xf32>
    %c0_19 = arith.constant 0 : index
    %c1_20 = arith.constant 1 : index
    %c0_21 = arith.constant 0 : index
    %28 = vector.load %arg1[%c0_19, %c1_20, %c0_21] : memref<1x34x34xf32, #tpu.memory_space<vmem>>, vector<1x32x32xf32>
    %29 = vector.shape_cast %28 : vector<1x32x32xf32> to vector<32x32xf32>
    %30 = vector.broadcast %27 : vector<1x1xf32> to vector<32x32xf32>
    %31 = arith.mulf %30, %29 : vector<32x32xf32>
    %32 = arith.addf %25, %31 : vector<32x32xf32>
    %c4 = arith.constant 4 : index
    %c0_22 = arith.constant 0 : index
    %c0_23 = arith.constant 0 : index
    %33 = vector.load %arg2[%c4, %c0_22, %c0_23] : memref<10x1x1xf32, #tpu.memory_space<vmem>>, vector<1x1x1xf32>
    %34 = vector.shape_cast %33 : vector<1x1x1xf32> to vector<1x1xf32>
    %c0_24 = arith.constant 0 : index
    %c1_25 = arith.constant 1 : index
    %c1_26 = arith.constant 1 : index
    %35 = vector.load %arg1[%c0_24, %c1_25, %c1_26] : memref<1x34x34xf32, #tpu.memory_space<vmem>>, vector<1x32x32xf32>
    %36 = vector.shape_cast %35 : vector<1x32x32xf32> to vector<32x32xf32>
    %37 = vector.broadcast %34 : vector<1x1xf32> to vector<32x32xf32>
    %38 = arith.mulf %37, %36 : vector<32x32xf32>
    %39 = arith.addf %32, %38 : vector<32x32xf32>
    %c5 = arith.constant 5 : index
    %c0_27 = arith.constant 0 : index
    %c0_28 = arith.constant 0 : index
    %40 = vector.load %arg2[%c5, %c0_27, %c0_28] : memref<10x1x1xf32, #tpu.memory_space<vmem>>, vector<1x1x1xf32>
    %41 = vector.shape_cast %40 : vector<1x1x1xf32> to vector<1x1xf32>
    %c0_29 = arith.constant 0 : index
    %c1_30 = arith.constant 1 : index
    %c2_31 = arith.constant 2 : index
    %42 = vector.load %arg1[%c0_29, %c1_30, %c2_31] : memref<1x34x34xf32, #tpu.memory_space<vmem>>, vector<1x32x32xf32>
    %43 = vector.shape_cast %42 : vector<1x32x32xf32> to vector<32x32xf32>
    %44 = vector.broadcast %41 : vector<1x1xf32> to vector<32x32xf32>
    %45 = arith.mulf %44, %43 : vector<32x32xf32>
    %46 = arith.addf %39, %45 : vector<32x32xf32>
    %c6 = arith.constant 6 : index
    %c0_32 = arith.constant 0 : index
    %c0_33 = arith.constant 0 : index
    %47 = vector.load %arg2[%c6, %c0_32, %c0_33] : memref<10x1x1xf32, #tpu.memory_space<vmem>>, vector<1x1x1xf32>
    %48 = vector.shape_cast %47 : vector<1x1x1xf32> to vector<1x1xf32>
    %c0_34 = arith.constant 0 : index
    %c2_35 = arith.constant 2 : index
    %c0_36 = arith.constant 0 : index
    %49 = vector.load %arg1[%c0_34, %c2_35, %c0_36] : memref<1x34x34xf32, #tpu.memory_space<vmem>>, vector<1x32x32xf32>
    %50 = vector.shape_cast %49 : vector<1x32x32xf32> to vector<32x32xf32>
    %51 = vector.broadcast %48 : vector<1x1xf32> to vector<32x32xf32>
    %52 = arith.mulf %51, %50 : vector<32x32xf32>
    %53 = arith.addf %46, %52 : vector<32x32xf32>
    %c7 = arith.constant 7 : index
    %c0_37 = arith.constant 0 : index
    %c0_38 = arith.constant 0 : index
    %54 = vector.load %arg2[%c7, %c0_37, %c0_38] : memref<10x1x1xf32, #tpu.memory_space<vmem>>, vector<1x1x1xf32>
    %55 = vector.shape_cast %54 : vector<1x1x1xf32> to vector<1x1xf32>
    %c0_39 = arith.constant 0 : index
    %c2_40 = arith.constant 2 : index
    %c1_41 = arith.constant 1 : index
    %56 = vector.load %arg1[%c0_39, %c2_40, %c1_41] : memref<1x34x34xf32, #tpu.memory_space<vmem>>, vector<1x32x32xf32>
    %57 = vector.shape_cast %56 : vector<1x32x32xf32> to vector<32x32xf32>
    %58 = vector.broadcast %55 : vector<1x1xf32> to vector<32x32xf32>
    %59 = arith.mulf %58, %57 : vector<32x32xf32>
    %60 = arith.addf %53, %59 : vector<32x32xf32>
    %c8 = arith.constant 8 : index
    %c0_42 = arith.constant 0 : index
    %c0_43 = arith.constant 0 : index
    %61 = vector.load %arg2[%c8, %c0_42, %c0_43] : memref<10x1x1xf32, #tpu.memory_space<vmem>>, vector<1x1x1xf32>
    %62 = vector.shape_cast %61 : vector<1x1x1xf32> to vector<1x1xf32>
    %c0_44 = arith.constant 0 : index
    %c2_45 = arith.constant 2 : index
    %c2_46 = arith.constant 2 : index
    %63 = vector.load %arg1[%c0_44, %c2_45, %c2_46] : memref<1x34x34xf32, #tpu.memory_space<vmem>>, vector<1x32x32xf32>
    %64 = vector.shape_cast %63 : vector<1x32x32xf32> to vector<32x32xf32>
    %65 = vector.broadcast %62 : vector<1x1xf32> to vector<32x32xf32>
    %66 = arith.mulf %65, %64 : vector<32x32xf32>
    %67 = arith.addf %60, %66 : vector<32x32xf32>
    %68 = arith.negf %67 : vector<32x32xf32>
    %69 = math.exp %68 : vector<32x32xf32>
    %cst_47 = arith.constant 1.000000e+00 : f32
    %70 = vector.broadcast %cst_47 : f32 to vector<32x32xf32>
    %71 = arith.addf %70, %69 : vector<32x32xf32>
    %72 = arith.divf %70, %71 : vector<32x32xf32>
    %c0_48 = arith.constant 0 : index
    %c0_49 = arith.constant 0 : index
    %c0_50 = arith.constant 0 : index
    %73 = vector.load %arg3[%c0_48, %c0_49, %c0_50] : memref<1x32x32xf32, #tpu.memory_space<vmem>>, vector<1x32x32xf32>
    %74 = vector.shape_cast %73 : vector<1x32x32xf32> to vector<32x32xf32>
    %75 = vector.shape_cast %72 : vector<32x32xf32> to vector<1x32x32xf32>
    tpu.vector_store %arg3[%c0_48, %c0_49, %c0_50], %75 {strides = array<i32>} : memref<1x32x32xf32, #tpu.memory_space<vmem>>, vector<1x32x32xf32>,
    return
  }
  func.func @transform_0(%arg0: i32) -> (i32, i32, i32) {
    %c0_i32 = arith.constant 0 : i32
    %c0_i32_0 = arith.constant 0 : i32
    %c0_i32_1 = arith.constant 0 : i32
    return %arg0, %c0_i32, %c0_i32_0 : i32, i32, i32
  }
  func.func @transform_1(%arg0: i32) -> (i32, i32, i32) {
    %c0_i32 = arith.constant 0 : i32
    %c0_i32_0 = arith.constant 0 : i32
    %c0_i32_1 = arith.constant 0 : i32
    %c0_i32_2 = arith.constant 0 : i32
    return %c0_i32, %c0_i32_0, %c0_i32_1 : i32, i32, i32
  }
  func.func @transform_2(%arg0: i32) -> (i32, i32, i32) {
    %c0_i32 = arith.constant 0 : i32
    %c0_i32_0 = arith.constant 0 : i32
    %c0_i32_1 = arith.constant 0 : i32
    return %arg0, %c0_i32, %c0_i32_0 : i32, i32, i32
  }
}

</mosaic_0001>

<bundles_post_ra>
// kernel: tile.8
= control target key start
LH: loop header
LB: loop body
LE: loop exit
PB: predicated region body
PF: predicated region fallthrough
CT: control target
= control target key end

     0   :  { %s22_s0 = inlined_call_operand.vmem [shape: f32[64], index: 0, kind: input, shape index: {}]   ;;  %s23_s1 = inlined_call_operand.vmem [shape: f32[4,64], index: 1, kind: output, shape index: {}]  }
   0x1   :  { %v4_v0 = vld [vmem:[%s22_s0] ss:$0 sm:$0xff] }
   0x2   :  { %5 = vst [vmem:[%s23_s1] sm:$0xf] %v4_v0 }

// kernel: tile.9
= control target key start
LH: loop header
LB: loop body
LE: loop exit
PB: predicated region body
PF: predicated region fallthrough
CT: control target
= control target key end

     0   :  { %s6_s8 = smov 3  ;;  %vm8_vm0 = vcmask 523264   ;;  %s30_s9 = smov 64   ;;  %vm15_vm1 = vcmask 1048064   ;;  %s50_s0 = inlined_call_operand.vmem [shape: f32[4,64], index: 0, kind: input, shape index: {}]   ;;  %s51_s1 = inlined_call_operand.vmem [shape: f32[1,256], index: 1, kind: output, shape index: {}]  }
   0x1   :  { %v4_v0 = vld [vmem:[%s50_s0] sm:$0xf]  ;;  %s11_s0 = smov 3 }
   0x2   :  { %5 = vst [vmem:[#allocation1] sm:$0xf] %v4_v0 }
   0x9   :  { %v12_v1 = vld [vmem:[#allocation1 + $0x1] ss:$2 sm:%s11_s0]   ;;  %v7_v2 = vld [vmem:[#allocation1] ss:$2 sm:%s6_s8]  }
   0xa   :  { %13 = vrot.lane.b32.xlu0 %v12_v1, %s30_s9  ;;  %9 = vst.msk [vmem:[#allocation0] ss:$8 sm:$0x3] %vm8_vm0, %v7_v2  }
  0x7c   :  { %v14_v3 = vpop.permute.xlu0 %13  }
  0x7d   :  { %16 = vst.msk [vmem:[#allocation0] ss:$8 sm:$0x3] %vm15_vm1, %v14_v3  }
  0x84   :  { %v20_v4 = vld [vmem:[#allocation0] sm:$0x1]  ;;  %v24_v5 = vld [vmem:[#allocation0 + $0x8] sm:$0x1] }
  0x85   :  { %22 = vst [vmem:[%s51_s1] sm:$0x1] %v20_v4  ;;  %28 = vst [vmem:[%s51_s1 + $0x1] sm:$0x1] %v24_v5 }

// kernel: explanation_forward.3
= control target key start
LH: loop header
LB: loop body
LE: loop exit
PB: predicated region body
PF: predicated region fallthrough
CT: control target
= control target key end

     0   :  { %s2403_s12 = smov 0   ;;  %s2945_s0 = inlined_call_operand.vmem [shape: f32[2,110,64], index: 0, kind: input, shape index: {}]   ;;  %s2946_s1 = inlined_call_operand.vmem [shape: bf16[9,64,256], index: 1, kind: input, shape index: {}]   ;;  %s2947_s2 = inlined_call_operand.vmem [shape: f32[1,256], index: 2, kind: input, shape index: {}]   ;;  %s2948_s3 = inlined_call_operand.vmem [shape: f32[2,80,256], index: 3, kind: output, shape index: {}]  }
   0x1 LB: > { %s1897_s13 = sadd.s32 4294967295, %s2380_s12   ;;  %p1901_p0 = scmp.ge.s32.totalorder %s2380_s12, 1  ;;  %s2380_s12 = sphi %s2403_s12, %s13_s12  }
   0x2   : > { %p137_p1 = scmp.lt.s32.totalorder %s2380_s12, 3 }
   0x4   : > { %p138_p2 = pnand %p1901_p0, %p137_p1 }
   0x5   : > { %v2266_v0 = vld [vmem:[%s2946_s1 + $0x44] ss:$8 sps:$4 sm:$0xff] (!%p138_p2)   ;;  %p161_p3 = scmp.lt.s32.totalorder (!%p138_p2), %s1897_s13, 1  ;;  %v2382_v2 = vmov (!%p138_p2), 0   ;;  %v2270_v3 = vld [vmem:[%s2946_s1 + $0x40] ss:$8 sps:$4 sm:$0xff] (!%p138_p2)  }
   0x6   : > { %141 = sbr.rel (%p138_p2) target bundleno = 421 (0x1a5), region = 32  ;;  %v2417_v1 = vld [vmem:[%s2946_s1 + $0x104] ss:$8 sps:$4 sm:$0xff] (!%p138_p2)   ;;  %307 = vmatprep.mubr.bf16.mxu1 (!%p138_p2), %v2382_v2  ;;  %971 = vmatprep.mubr.bf16.mxu0 (!%p138_p2), %v2382_v2  ;;  %v2427_v4 = vld [vmem:[%s2946_s1 + $0x100] ss:$8 sps:$4 sm:$0xff] (!%p138_p2)   ;;  %vm259_vm0 = vcmask (!%p138_p2), 523264  }
   0x7   : > { %275 = vmatprep.subr.bf16.mxu1 (!%p138_p2), %v2266_v0  ;;  %939 = vmatprep.subr.bf16.mxu0 (!%p138_p2), %v2417_v1  ;;  %v2272_v5 = vld [vmem:[%s2946_s1 + $0x54] ss:$8 sps:$4 sm:$0xff] (!%p138_p2)   ;;  %v2276_v7 = vld [vmem:[%s2946_s1 + $0x50] ss:$8 sps:$4 sm:$0xff] (!%p138_p2)   ;;  %v2278_v9 = vld [vmem:[%s2946_s1 + $0x64] ss:$8 sps:$4 sm:$0xff] (!%p138_p2)  }
   0x8   : > { %276 = vmatpush1.bf16.msra.mxu1 (!%p138_p2), %v2270_v3  ;;  %940 = vmatpush1.bf16.msra.mxu0 (!%p138_p2), %v2427_v4  ;;  %v2439_v6 = vld [vmem:[%s2946_s1 + $0x114] ss:$8 sps:$4 sm:$0xff] (!%p138_p2)   ;;  %v2448_v8 = vld [vmem:[%s2946_s1 + $0x110] ss:$8 sps:$4 sm:$0xff] (!%p138_p2)   ;;  %v2457_v10 = vld [vmem:[%s2946_s1 + $0x124] ss:$8 sps:$4 sm:$0xff] (!%p138_p2)  }
   0x9   : > { %277 = vmatprep.subr.bf16.mxu1 (!%p138_p2), %v2272_v5  ;;  %941 = vmatprep.subr.bf16.mxu0 (!%p138_p2), %v2439_v6  ;;  %v2282_v11 = vld [vmem:[%s2946_s1 + $0x60] ss:$8 sps:$4 sm:$0xff] (!%p138_p2)   ;;  %v2284_v13 = vld [vmem:[%s2946_s1 + $0x74] ss:$8 sps:$4 sm:$0xff] (!%p138_p2)   ;;  %v2288_v15 = vld [vmem:[%s2946_s1 + $0x70] ss:$8 sps:$4 sm:$0xff] (!%p138_p2)  }
   0xa   : > { %v2465_v12 = vld [vmem:[%s2946_s1 + $0x120] ss:$8 sps:$4 sm:$0xff] (!%p138_p2)   ;;  %v2480_v14 = vld [vmem:[%s2946_s1 + $0x134] ss:$8 sps:$4 sm:$0xff] (!%p138_p2)   ;;  %v2488_v16 = vld [vmem:[%s2946_s1 + $0x130] ss:$8 sps:$4 sm:$0xff] (!%p138_p2)  }
   0xb   : > { %v2292_v19 = vld [vmem:[%s2946_s1 + $0x4] ss:$8 sps:$4 sm:$0xff] (!%p138_p2)   ;;  %v2290_v25 = vld [vmem:[%s2946_s1] ss:$8 sps:$4 sm:$0xff] (!%p138_p2)   ;;  %v2298_v27 = vld [vmem:[%s2946_s1 + $0x154] ss:$8 sps:$4 sm:$0xff] (!%p138_p2)  }
   0xc   : > { %278 = vmatpush1.bf16.msra.mxu1 (!%p138_p2), %v2276_v7  ;;  %942 = vmatpush1.bf16.msra.mxu0 (!%p138_p2), %v2448_v8  ;;  %v2295_v22 = vld [vmem:[%s2946_s1 + $0x144] ss:$8 sps:$4 sm:$0xff] (!%p138_p2)   ;;  %v2293_v26 = vld [vmem:[%s2946_s1 + $0x140] ss:$8 sps:$4 sm:$0xff] (!%p138_p2)   ;;  %v2296_v28 = vld [vmem:[%s2946_s1 + $0x150] ss:$8 sps:$4 sm:$0xff] (!%p138_p2)  }
   0xd   : > { %s2950_s13 = smov (!%p161_p3, %s1897_s13), 1  ;;  %279 = vmatprep.subr.bf16.mxu1 %v2278_v9  ;;  %943 = vmatprep.subr.bf16.mxu0 %v2457_v10  ;;  %v2304_v33 = vld [vmem:[%s2946_s1 + $0x14] ss:$8 sps:$4 sm:$0xff]   ;;  %v2302_v34 = vld [vmem:[%s2946_s1 + $0x10] ss:$8 sps:$4 sm:$0xff]  }
   0xe   : > { %s2255_s28 = smul.u32 112, %s2950_s13  ;;  %v2301_v35 = vld [vmem:[%s2946_s1 + $0x164] ss:$8 sps:$4 sm:$0xff]   ;;  %v2299_v39 = vld [vmem:[%s2946_s1 + $0x160] ss:$8 sps:$4 sm:$0xff]  }
   0xf   : > { %v2310_v38 = vld [vmem:[%s2946_s1 + $0x24] ss:$8 sps:$4 sm:$0xff]   ;;  %v2307_v40 = vld [vmem:[%s2946_s1 + $0x174] ss:$8 sps:$4 sm:$0xff]   ;;  %v2305_v41 = vld [vmem:[%s2946_s1 + $0x170] ss:$8 sps:$4 sm:$0xff]  }
  0x10   : > { %s2474_s18 = scalar_lea.vmem %s2945_s0, %s2255_s28  ;;  %280 = vmatpush1.bf16.msra.mxu1 %v2282_v11  ;;  %944 = vmatpush1.bf16.msra.mxu0 %v2465_v12  ;;  %v2308_v42 = vld [vmem:[%s2946_s1 + $0x20] ss:$8 sps:$4 sm:$0xff]   ;;  %v2316_v44 = vld [vmem:[%s2946_s1 + $0x34] ss:$8 sps:$4 sm:$0xff]   ;;  %v2313_v48 = vld [vmem:[%s2946_s1 + $0x184] ss:$8 sps:$4 sm:$0xff]  }
  0x11   : > { %v195_v17 = vld [vmem:[%s2474_s18 + $0x1] sm:$0xff]  ;;  %v196_v18 = vld [vmem:[%s2474_s18 + $0x9] sm:$0xff]  ;;  %281 = vmatprep.subr.bf16.mxu1 %v2284_v13  ;;  %945 = vmatprep.subr.bf16.mxu0 %v2480_v14  ;;  %v861_v21 = vld [vmem:[%s2474_s18 + $0x13] sm:$0xff] }
  0x12   : > { %v860_v20 = vld [vmem:[%s2474_s18 + $0xb] sm:$0xff]  ;;  %v205_v23 = vpack.c.bf16 %v196_v18, %v195_v17  ;;  %v198_v30 = vld [vmem:[%s2474_s18 + $0x19] sm:$0xff]  ;;  %v863_v32 = vld [vmem:[%s2474_s18 + $0x23] sm:$0xff] }
  0x13   : > { %v870_v24 = vpack.c.bf16 %v861_v21, %v860_v20  ;;  %v197_v29 = vld [vmem:[%s2474_s18 + $0x11] sm:$0xff]  ;;  %v862_v31 = vld [vmem:[%s2474_s18 + $0x1b] sm:$0xff]  ;;  %v200_v45 = vld [vmem:[%s2474_s18 + $0x29] sm:$0xff] }
  0x14   : > { %282 = vmatpush1.bf16.msra.mxu1 %v2288_v15  ;;  %946 = vmatpush1.bf16.msra.mxu0 %v2488_v16  ;;  %v206_v36 = vpack.c.bf16 %v198_v30, %v197_v29  ;;  %v871_v37 = vpack.c.bf16 %v863_v32, %v862_v31  ;;  %v199_v43 = vld [vmem:[%s2474_s18 + $0x21] sm:$0xff]  ;;  %v1042_v46 = vld [vmem:[%s2474_s18 + $0xc] sm:$0xff]  ;;  %v2557_v47 = vld [vmem:[%s2474_s18 + $0x14] sm:$0xff] }
  0x15   : > { %413 = vmatprep.subr.bf16.mxu1 %v2292_v19  ;;  %1121 = vmatprep.subr.bf16.mxu0 %v2295_v22  ;;  %v2314_v49 = vld [vmem:[%s2946_s1 + $0x30] ss:$8 sps:$4 sm:$0xff]   ;;  %v207_v50 = vpack.c.bf16 %v200_v45, %v199_v43  ;;  %v1052_v51 = vpack.c.bf16 %v2557_v47, %v1042_v46  ;;  %v2311_v52 = vld [vmem:[%s2946_s1 + $0x180] ss:$8 sps:$4 sm:$0xff]   ;;  %v2322_v53 = vld [vmem:[%s2946_s1 + $0x84] ss:$8 sps:$4 sm:$0xff]  }
  0x16   : > { %v2319_v54 = vld [vmem:[%s2946_s1 + $0x194] ss:$8 sps:$4 sm:$0xff]   ;;  %v2586_v58 = vld [vmem:[%s2474_s18 + $0x24] sm:$0xff]  ;;  %v2317_v59 = vld [vmem:[%s2946_s1 + $0x190] ss:$8 sps:$4 sm:$0xff]  }
  0x17   : > { %1920 = vmatmul.mubr.msk.bf16.vlgmr.msra.gmra.mrb[0].mxu1 %vm259_vm0, %v205_v23  ;;  %1996 = vmatmul.mubr.msk.bf16.vlgmr.msra.gmra.mrb[0].mxu0 %vm259_vm0, %v870_v24  ;;  %v201_v55 = vld [vmem:[%s2474_s18 + $0x31] sm:$0xff]  ;;  %v202_v56 = vld [vmem:[%s2474_s18 + $0x39] sm:$0xff]  ;;  %v2325_v60 = vld [vmem:[%s2946_s1 + $0x1a4] ss:$8 sps:$4 sm:$0xff]  }
  0x18   : > { %414 = vmatpush1.bf16.msra.mxu1 %v2290_v25  ;;  %1122 = vmatpush1.bf16.msra.mxu0 %v2293_v26  ;;  %v2581_v57 = vld [vmem:[%s2474_s18 + $0x1c] sm:$0xff]  ;;  %v208_v61 = vpack.c.bf16 %v202_v56, %v201_v55  ;;  %v204_v5 = vld [vmem:[%s2474_s18 + $0x49] sm:$0xff]  ;;  %v2612_v9 = vld [vmem:[%s2474_s18 + $0x34] sm:$0xff] }
  0x19   : > { %1123 = vmatprep.subr.bf16.mxu0 %v2298_v27  ;;  %317 = vmatprep.mubr.bf16.mxu1 %v2382_v2  ;;  %v1053_v62 = vpack.c.bf16 %v2586_v58, %v2581_v57  ;;  %v2323_v63 = vld [vmem:[%s2946_s1 + $0x1a0] ss:$8 sps:$4 sm:$0xff]   ;;  %v2331_v0 = vld [vmem:[%s2946_s1 + $0x1b4] ss:$8 sps:$4 sm:$0xff]   ;;  %v2609_v7 = vld [vmem:[%s2474_s18 + $0x2c] sm:$0xff] }
  0x1a   : > { %981 = vmatprep.mubr.bf16.mxu0 %v2382_v2  ;;  %415 = vmatprep.subr.bf16.mxu1 %v2304_v33  ;;  %v203_v3 = vld [vmem:[%s2474_s18 + $0x41] sm:$0xff]  ;;  %v2329_v11 = vld [vmem:[%s2946_s1 + $0x1b0] ss:$8 sps:$4 sm:$0xff]   ;;  %v1054_v17 = vpack.c.bf16 %v2612_v9, %v2609_v7  ;;  %v2328_v25 = vld [vmem:[%s2946_s1 + $0x94] ss:$8 sps:$4 sm:$0xff]  }
  0x1b   : > { %v2337_v13 = vld [vmem:[%s2946_s1 + $0x1c4] ss:$8 sps:$4 sm:$0xff]   ;;  %v209_v15 = vpack.c.bf16 %v204_v5, %v203_v3  ;;  %v2629_v20 = vld [vmem:[%s2474_s18 + $0x3c] sm:$0xff]  ;;  %v174_v26 = vld [vmem:[%s2474_s18 + $0x10] sm:$0xff] }
  0x1c   : > { %1124 = vmatpush1.bf16.msra.mxu0 %v2296_v28  ;;  %416 = vmatpush1.bf16.msra.mxu1 %v2302_v34  ;;  %v172_v18 = vld [vmem:[%s2474_s18] sm:$0xff]  ;;  %v173_v19 = vld [vmem:[%s2474_s18 + $0x8] sm:$0xff]  ;;  %v175_v27 = vld [vmem:[%s2474_s18 + $0x18] sm:$0xff] }
  0x1d   : > { %1125 = vmatprep.subr.bf16.mxu0 %v2301_v35  ;;  %417 = vmatprep.subr.bf16.mxu1 %v2310_v38  ;;  %v2632_v21 = vld [vmem:[%s2474_s18 + $0x44] sm:$0xff]  ;;  %v182_v22 = vpack.c.bf16 %v173_v19, %v172_v18  ;;  %v2648_v28 = vld [vmem:[%s2474_s18 + $0x4c] sm:$0xff]  ;;  %v2651_v29 = vld [vmem:[%s2474_s18 + $0x54] sm:$0xff]  ;;  %v183_v32 = vpack.c.bf16 %v175_v27, %v174_v26 }
  0x1e   : > { %v1055_v23 = vpack.c.bf16 %v2632_v21, %v2629_v20  ;;  %v2320_v24 = vld [vmem:[%s2946_s1 + $0x80] ss:$8 sps:$4 sm:$0xff]   ;;  %v2326_v30 = vld [vmem:[%s2946_s1 + $0x90] ss:$8 sps:$4 sm:$0xff]   ;;  %v2334_v31 = vld [vmem:[%s2946_s1 + $0xa4] ss:$8 sps:$4 sm:$0xff]   ;;  %v1056_v33 = vpack.c.bf16 %v2651_v29, %v2648_v28 }
  0x1f   : > { %1921 = vmatmul.mubr.msk.bf16.gmra.mrb[4].mxu1 %vm259_vm0, %v206_v36  ;;  %1997 = vmatmul.mubr.msk.bf16.gmra.mrb[4].mxu0 %vm259_vm0, %v871_v37  ;;  %v2332_v34 = vld [vmem:[%s2946_s1 + $0xa0] ss:$8 sps:$4 sm:$0xff]   ;;  %v2340_v35 = vld [vmem:[%s2946_s1 + $0xb4] ss:$8 sps:$4 sm:$0xff]   ;;  %v2338_v38 = vld [vmem:[%s2946_s1 + $0xb0] ss:$8 sps:$4 sm:$0xff]  }
  0x20   : > { %1126 = vmatpush1.bf16.msra.mxu0 %v2299_v39  ;;  %327 = vmatprep.mubr.bf16.mxu1 %v2382_v2  ;;  %v176_v36 = vld [vmem:[%s2474_s18 + $0x20] sm:$0xff]  ;;  %v177_v37 = vld [vmem:[%s2474_s18 + $0x28] sm:$0xff]  ;;  %v2343_v43 = vld [vmem:[%s2946_s1 + $0x1d4] ss:$8 sps:$4 sm:$0xff]  }
  0x21   : > { %1127 = vmatprep.subr.bf16.mxu0 %v2307_v40  ;;  %1153 = vmatprep.mubr.bf16.mxu0 %v2382_v2  ;;  %v2346_v39 = vld [vmem:[%s2946_s1 + $0xc4] ss:$8 sps:$4 sm:$0xff]   ;;  %v184_v40 = vpack.c.bf16 %v177_v37, %v176_v36  ;;  %v179_v45 = vld [vmem:[%s2474_s18 + $0x38] sm:$0xff] }
  0x22   : > { %418 = vmatpush1.bf16.msra.mxu1 %v2308_v42  ;;  %v2335_v42 = vld [vmem:[%s2946_s1 + $0x1c0] ss:$8 sps:$4 sm:$0xff]   ;;  %v2341_v46 = vld [vmem:[%s2946_s1 + $0x1d0] ss:$8 sps:$4 sm:$0xff]   ;;  %v2361_v55 = vld [vmem:[%s2946_s1 + $0x204] ss:$8 sps:$4 sm:$0xff]  }
  0x23   : > { %419 = vmatprep.subr.bf16.mxu1 %v2316_v44  ;;  %v178_v44 = vld [vmem:[%s2474_s18 + $0x30] sm:$0xff]  ;;  %v2746_v3 = vld [vmem:[%s2474_s18 + $0x1a] sm:$0xff]  ;;  %v2768_v18 = vld [vmem:[%s2474_s18 + $0x22] sm:$0xff] }
  0x24   : > { %1128 = vmatpush1.bf16.msra.mxu0 %v2305_v41  ;;  %v1234_v41 = vpack.c.bf16 %v2581_v57, %v2557_v47  ;;  %v2349_v47 = vld [vmem:[%s2946_s1 + $0x1e4] ss:$8 sps:$4 sm:$0xff]   ;;  %v1236_v57 = vpack.c.bf16 %v2629_v20, %v2612_v9  ;;  %v1233_v5 = vld [vmem:[%s2474_s18 + $0x5c] sm:$0xff]  ;;  %v502_v27 = vld [vmem:[%s2474_s18 + $0x32] sm:$0xff] }
  0x25   : > { %1303 = vmatprep.subr.bf16.mxu0 %v2313_v48  ;;  %v185_v48 = vpack.c.bf16 %v179_v45, %v178_v44  ;;  %v2358_v9 = vld [vmem:[%s2946_s1 + $0xe4] ss:$8 sps:$4 sm:$0xff]   ;;  %v1406_v20 = vld [vmem:[%s2474_s18 + $0x15] sm:$0xff] }
  0x26   : > { %420 = vmatpush1.bf16.msra.mxu1 %v2314_v49  ;;  %v1235_v49 = vpack.c.bf16 %v2609_v7, %v2586_v58  ;;  %v496_v58 = vld [vmem:[%s2474_s18 + $0x2] sm:$0xff]  ;;  %v2350_v7 = vld [vmem:[%s2946_s1 + $0xd0] ss:$8 sps:$4 sm:$0xff]   ;;  %v2367_v26 = vld [vmem:[%s2946_s1 + $0x214] ss:$8 sps:$4 sm:$0xff]  }
  0x27   : > { %1922 = vmatmul.mubr.msk.bf16.gmra.mrb[8].mxu1 %vm259_vm0, %v207_v50  ;;  %2017 = vmatmul.mubr.msk.bf16.vlgmr.msra.gmra.mrb[0].mxu0 %vm259_vm0, %v1052_v51  ;;  %v2347_v50 = vld [vmem:[%s2946_s1 + $0x1e0] ss:$8 sps:$4 sm:$0xff]   ;;  %v2355_v51 = vld [vmem:[%s2946_s1 + $0x1f4] ss:$8 sps:$4 sm:$0xff]  }
  0x28   : > { %337 = vmatprep.mubr.bf16.mxu1 %v2382_v2  ;;  %1163 = vmatprep.mubr.bf16.mxu0 %v2382_v2  ;;  %v2773_v19 = vld [vmem:[%s2474_s18 + $0x2a] sm:$0xff]  ;;  %v504_v36 = vld [vmem:[%s2474_s18 + $0x42] sm:$0xff] }
  0x29   : > { %1304 = vmatpush1.bf16.msra.mxu0 %v2311_v52  ;;  %575 = vmatprep.subr.bf16.mxu1 %v2322_v53  ;;  %v180_v52 = vld [vmem:[%s2474_s18 + $0x40] sm:$0xff]  ;;  %v181_v53 = vld [vmem:[%s2474_s18 + $0x48] sm:$0xff] }
  0x2a   : > { %1305 = vmatprep.subr.bf16.mxu0 %v2319_v54  ;;  %v2353_v54 = vld [vmem:[%s2946_s1 + $0x1f0] ss:$8 sps:$4 sm:$0xff]   ;;  %v186_v56 = vpack.c.bf16 %v181_v53, %v180_v52 }
  0x2b   : > { %v505_v37 = vld [vmem:[%s2474_s18 + $0x4a] sm:$0xff]  ;;  %v1592_v53 = vld [vmem:[%s2474_s18 + $0x36] sm:$0xff] }
  0x2c   : > { %v1413_v44 = vld [vmem:[%s2474_s18 + $0x4d] sm:$0xff] }
  0x2d   : > { %1306 = vmatpush1.bf16.msra.mxu0 %v2317_v59  ;;  %v2728_v59 = vld [vmem:[%s2474_s18 + $0xa] sm:$0xff] }
  0x2e   : > { %1307 = vmatprep.subr.bf16.mxu0 %v2325_v60  ;;  %v506_v60 = vpack.c.bf16 %v2728_v59, %v496_v58  ;;  %v865_v58 = vld [vmem:[%s2474_s18 + $0x33] sm:$0xff] }
  0x2f   : > { %1923 = vmatmul.mubr.msk.bf16.gmra.mrb[12].mxu1 %vm259_vm0, %v208_v61  ;;  %2018 = vmatmul.mubr.msk.bf16.gmra.mrb[4].mxu0 %vm259_vm0, %v1053_v62  ;;  %v1237_v61 = vpack.c.bf16 %v2648_v28, %v2632_v21  ;;  %v2344_v62 = vld [vmem:[%s2946_s1 + $0xc0] ss:$8 sps:$4 sm:$0xff]  }
  0x30   : > { %347 = vmatprep.mubr.bf16.mxu1 %v2382_v2  ;;  %1173 = vmatprep.mubr.bf16.mxu0 %v2382_v2  ;;  %v1407_v21 = vld [vmem:[%s2474_s18 + $0x1d] sm:$0xff] }
  0x31   : > { %1308 = vmatpush1.bf16.msra.mxu0 %v2323_v63  ;;  %v2352_v63 = vld [vmem:[%s2946_s1 + $0xd4] ss:$8 sps:$4 sm:$0xff]  }
  0x32   : > { %1309 = vmatprep.subr.bf16.mxu0 %v2331_v0  ;;  %v2742_v0 = vld [vmem:[%s2474_s18 + $0x12] sm:$0xff]  ;;  %v2795_v28 = vld [vmem:[%s2474_s18 + $0x3a] sm:$0xff] }
  0x33   : > { %v688_v45 = vpack.c.bf16 %v2742_v0, %v2728_v59  ;;  %v1594_v59 = vld [vmem:[%s2474_s18 + $0x46] sm:$0xff] }
  0x35   : > { %1310 = vmatpush1.bf16.msra.mxu0 %v2329_v11  ;;  %v507_v11 = vpack.c.bf16 %v2746_v3, %v2742_v0  ;;  %v867_v0 = vld [vmem:[%s2474_s18 + $0x43] sm:$0xff] }
  0x36   : > { %1485 = vmatprep.subr.bf16.mxu0 %v2337_v13  ;;  %v1238_v13 = vpack.c.bf16 %v1233_v5, %v2651_v29  ;;  %v1408_v29 = vld [vmem:[%s2474_s18 + $0x25] sm:$0xff] }
  0x37   : > { %1924 = vmatmul.mubr.msk.bf16.gmra.mrb[16].mxu1 %vm259_vm0, %v209_v15  ;;  %2019 = vmatmul.mubr.msk.bf16.gmra.mrb[8].mxu0 %vm259_vm0, %v1054_v17  ;;  %v2356_v15 = vld [vmem:[%s2946_s1 + $0xe0] ss:$8 sps:$4 sm:$0xff]   ;;  %v2364_v17 = vld [vmem:[%s2946_s1 + $0xf4] ss:$8 sps:$4 sm:$0xff]  }
  0x38   : > { %445 = vmatprep.mubr.bf16.mxu1 %v2382_v2  ;;  %1183 = vmatprep.mubr.bf16.mxu0 %v2382_v2  ;;  %v1597_v5 = vld [vmem:[%s2474_s18 + $0x5e] sm:$0xff] }
  0x3f   : > { %1933 = vmatmul.mubr.msk.bf16.vlgmr.msra.gmra.mrb[0].mxu1 %vm259_vm0, %v182_v22  ;;  %2020 = vmatmul.mubr.msk.bf16.gmra.mrb[12].mxu0 %vm259_vm0, %v1055_v23  ;;  %v2362_v22 = vld [vmem:[%s2946_s1 + $0xf0] ss:$8 sps:$4 sm:$0xff]   ;;  %v508_v23 = vpack.c.bf16 %v2773_v19, %v2768_v18 }
  0x40   : > { %576 = vmatpush1.bf16.msra.mxu1 %v2320_v24  ;;  %455 = vmatprep.mubr.bf16.mxu1 %v2382_v2  ;;  %v1416_v24 = vpack.c.bf16 %v1407_v21, %v1406_v20  ;;  %v1772_v21 = vlaneseq }
  0x41   : > { %1193 = vmatprep.mubr.bf16.mxu0 %v2382_v2  ;;  %577 = vmatprep.subr.bf16.mxu1 %v2328_v25  ;;  %v2359_v25 = vld [vmem:[%s2946_s1 + $0x200] ss:$8 sps:$4 sm:$0xff]  }
  0x44   : > { %578 = vmatpush1.bf16.msra.mxu1 %v2326_v30  ;;  %v1409_v30 = vld [vmem:[%s2474_s18 + $0x2d] sm:$0xff] }
  0x45   : > { %579 = vmatprep.subr.bf16.mxu1 %v2334_v31  ;;  %v2370_v31 = vld [vmem:[%s2946_s1 + $0x224] ss:$8 sps:$4 sm:$0xff]  }
  0x47   : > { %1934 = vmatmul.mubr.msk.bf16.gmra.mrb[4].mxu1 %vm259_vm0, %v183_v32  ;;  %2021 = vmatmul.mubr.msk.bf16.gmra.mrb[16].mxu0 %vm259_vm0, %v1056_v33  ;;  %v509_v32 = vpack.c.bf16 %v2795_v28, %v502_v27  ;;  %v1417_v33 = vpack.c.bf16 %v1409_v30, %v1408_v29 }
  0x48   : > { %465 = vmatprep.mubr.bf16.mxu1 %v2382_v2  ;;  %1335 = vmatprep.mubr.bf16.mxu0 %v2382_v2 }
  0x49   : > { %580 = vmatpush1.bf16.msra.mxu1 %v2332_v34  ;;  %v2368_v34 = vld [vmem:[%s2946_s1 + $0x220] ss:$8 sps:$4 sm:$0xff]  }
  0x4a   : > { %581 = vmatprep.subr.bf16.mxu1 %v2340_v35  ;;  %v2373_v35 = vld [vmem:[%s2946_s1 + $0x234] ss:$8 sps:$4 sm:$0xff]  }
  0x4d   : > { %582 = vmatpush1.bf16.msra.mxu1 %v2338_v38  ;;  %v1410_v38 = vld [vmem:[%s2474_s18 + $0x35] sm:$0xff] }
  0x4e   : > { %757 = vmatprep.subr.bf16.mxu1 %v2346_v39  ;;  %v1411_v39 = vld [vmem:[%s2474_s18 + $0x3d] sm:$0xff] }
  0x4f   : > { %1935 = vmatmul.mubr.msk.bf16.gmra.mrb[8].mxu1 %vm259_vm0, %v184_v40  ;;  %2038 = vmatmul.mubr.msk.bf16.vlgmr.msra.gmra.mrb[0].mxu0 %vm259_vm0, %v1234_v41  ;;  %v2371_v40 = vld [vmem:[%s2946_s1 + $0x230] ss:$8 sps:$4 sm:$0xff]   ;;  %v510_v41 = vpack.c.bf16 %v505_v37, %v504_v36 }
  0x50   : > { %475 = vmatprep.mubr.bf16.mxu1 %v2382_v2  ;;  %1345 = vmatprep.mubr.bf16.mxu0 %v2382_v2 }
  0x51   : > { %1486 = vmatpush1.bf16.msra.mxu0 %v2335_v42  ;;  %v1418_v42 = vpack.c.bf16 %v1411_v39, %v1410_v38 }
  0x52   : > { %1487 = vmatprep.subr.bf16.mxu0 %v2343_v43  ;;  %v1412_v43 = vld [vmem:[%s2474_s18 + $0x45] sm:$0xff] }
  0x55   : > { %1488 = vmatpush1.bf16.msra.mxu0 %v2341_v46  ;;  %v1419_v46 = vpack.c.bf16 %v1413_v44, %v1412_v43 }
  0x56   : > { %1489 = vmatprep.subr.bf16.mxu0 %v2349_v47  ;;  %v1414_v47 = vld [vmem:[%s2474_s18 + $0x55] sm:$0xff] }
  0x57   : > { %1936 = vmatmul.mubr.msk.bf16.gmra.mrb[12].mxu1 %vm259_vm0, %v185_v48  ;;  %2039 = vmatmul.mubr.msk.bf16.gmra.mrb[4].mxu0 %vm259_vm0, %v1235_v49  ;;  %v1415_v48 = vld [vmem:[%s2474_s18 + $0x5d] sm:$0xff]  ;;  %v689_v49 = vpack.c.bf16 %v2768_v18, %v2746_v3 }
  0x58   : > { %485 = vmatprep.mubr.bf16.mxu1 %v2382_v2  ;;  %1355 = vmatprep.mubr.bf16.mxu0 %v2382_v2  ;;  %v1596_v3 = vld [vmem:[%s2474_s18 + $0x56] sm:$0xff] }
  0x59   : > { %1490 = vmatpush1.bf16.msra.mxu0 %v2347_v50  ;;  %v1420_v50 = vpack.c.bf16 %v1415_v48, %v1414_v47 }
  0x5a   : > { %1491 = vmatprep.subr.bf16.mxu0 %v2355_v51  ;;  %v1591_v51 = vld [vmem:[%s2474_s18 + $0x2e] sm:$0xff] }
  0x5d   : > { %1492 = vmatpush1.bf16.msra.mxu0 %v2353_v54  ;;  %v1593_v54 = vld [vmem:[%s2474_s18 + $0x3e] sm:$0xff] }
  0x5e   : > { %1667 = vmatprep.subr.bf16.mxu0 %v2361_v55 }
  0x5f   : > { %1937 = vmatmul.mubr.msk.bf16.gmra.mrb[16].mxu1 %vm259_vm0, %v186_v56  ;;  %2040 = vmatmul.mubr.msk.bf16.gmra.mrb[8].mxu0 %vm259_vm0, %v1236_v57  ;;  %v1600_v56 = vpack.c.bf16 %v1593_v54, %v1592_v53  ;;  %v864_v57 = vld [vmem:[%s2474_s18 + $0x2b] sm:$0xff] }
  0x60   : > { %607 = vmatprep.mubr.bf16.mxu1 %v2382_v2  ;;  %1365 = vmatprep.mubr.bf16.mxu0 %v2382_v2 }
  0x67   : > { %1954 = vmatmul.mubr.msk.bf16.vlgmr.msra.gmra.mrb[0].mxu1 %vm259_vm0, %v506_v60  ;;  %2041 = vmatmul.mubr.msk.bf16.gmra.mrb[12].mxu0 %vm259_vm0, %v1237_v61  ;;  %v1595_v60 = vld [vmem:[%s2474_s18 + $0x4e] sm:$0xff]  ;;  %v872_v61 = vpack.c.bf16 %v865_v58, %v864_v57 }
  0x68   : > { %758 = vmatpush1.bf16.msra.mxu1 %v2344_v62  ;;  %617 = vmatprep.mubr.bf16.mxu1 %v2382_v2  ;;  %v1601_v62 = vpack.c.bf16 %v1595_v60, %v1594_v59 }
  0x69   : > { %1375 = vmatprep.mubr.bf16.mxu0 %v2382_v2  ;;  %759 = vmatprep.subr.bf16.mxu1 %v2352_v63  ;;  %v866_v63 = vld [vmem:[%s2474_s18 + $0x3b] sm:$0xff] }
  0x6c   : > { %760 = vmatpush1.bf16.msra.mxu1 %v2350_v7  ;;  %v873_v7 = vpack.c.bf16 %v867_v0, %v866_v63 }
  0x6d   : > { %761 = vmatprep.subr.bf16.mxu1 %v2358_v9  ;;  %v1602_v9 = vpack.c.bf16 %v1597_v5, %v1596_v3 }
  0x6f   : > { %1955 = vmatmul.mubr.msk.bf16.gmra.mrb[4].mxu1 %vm259_vm0, %v507_v11  ;;  %2042 = vmatmul.mubr.msk.bf16.gmra.mrb[16].mxu0 %vm259_vm0, %v1238_v13  ;;  %v868_v11 = vld [vmem:[%s2474_s18 + $0x4b] sm:$0xff]  ;;  %v869_v13 = vld [vmem:[%s2474_s18 + $0x53] sm:$0xff] }
  0x70   : > { %627 = vmatprep.mubr.bf16.mxu1 %v2382_v2  ;;  %1517 = vmatprep.mubr.bf16.mxu0 %v2382_v2 }
  0x71   : > { %762 = vmatpush1.bf16.msra.mxu1 %v2356_v15  ;;  %v874_v15 = vpack.c.bf16 %v869_v13, %v868_v11 }
  0x72   : > { %763 = vmatprep.subr.bf16.mxu1 %v2364_v17 }
  0x75   : > { %764 = vmatpush1.bf16.msra.mxu1 %v2362_v22  ;;  %v1773_v22 = vshrl.u32 %v1772_v21, 7 }
  0x76   : > { %2087 = vmatprep.subr.bf16.mxu1 %v2417_v1  ;;  %v2365_v1 = vld [vmem:[%s2946_s1 + $0x210] ss:$8 sps:$4 sm:$0xff]  }
  0x77   : > { %1956 = vmatmul.mubr.msk.bf16.gmra.mrb[8].mxu1 %vm259_vm0, %v508_v23  ;;  %2059 = vmatmul.mubr.msk.bf16.vlgmr.msra.gmra.mrb[0].mxu0 %vm259_vm0, %v1416_v24 }
  0x78   : > { %637 = vmatprep.mubr.bf16.mxu1 %v2382_v2  ;;  %1527 = vmatprep.mubr.bf16.mxu0 %v2382_v2 }
  0x79   : > { %1668 = vmatpush1.bf16.msra.mxu0 %v2359_v25 }
  0x7a   : > { %1669 = vmatprep.subr.bf16.mxu0 %v2367_v26 }
  0x7d   : > { %1670 = vmatpush1.bf16.msra.mxu0 %v2365_v1 }
  0x7e   : > { %1671 = vmatprep.subr.bf16.mxu0 %v2370_v31 }
  0x7f   : > { %1957 = vmatmul.mubr.msk.bf16.gmra.mrb[12].mxu1 %vm259_vm0, %v509_v32  ;;  %2060 = vmatmul.mubr.msk.bf16.gmra.mrb[4].mxu0 %vm259_vm0, %v1417_v33 }
  0x80   : > { %647 = vmatprep.mubr.bf16.mxu1 %v2382_v2  ;;  %1537 = vmatprep.mubr.bf16.mxu0 %v2382_v2 }
  0x81   : > { %1672 = vmatpush1.bf16.msra.mxu0 %v2368_v34 }
  0x82   : > { %1673 = vmatprep.subr.bf16.mxu0 %v2373_v35 }
  0x85   : > { %1674 = vmatpush1.bf16.msra.mxu0 %v2371_v40 }
  0x87   : > { %1958 = vmatmul.mubr.msk.bf16.gmra.mrb[16].mxu1 %vm259_vm0, %v510_v41  ;;  %2061 = vmatmul.mubr.msk.bf16.gmra.mrb[8].mxu0 %vm259_vm0, %v1418_v42 }
  0x88   : > { %789 = vmatprep.mubr.bf16.mxu1 %v2382_v2  ;;  %1547 = vmatprep.mubr.bf16.mxu0 %v2382_v2 }
  0x8f   : > { %1975 = vmatmul.mubr.msk.bf16.vlgmr.msra.gmra.mrb[0].mxu1 %vm259_vm0, %v688_v45  ;;  %2062 = vmatmul.mubr.msk.bf16.gmra.mrb[12].mxu0 %vm259_vm0, %v1419_v46 }
  0x90   : > { %2091 = vmatpush1.bf16.msra.mxu1 %v2427_v4  ;;  %799 = vmatprep.mubr.bf16.mxu1 %v2382_v2  ;;  %v1588_v4 = vld [vmem:[%s2474_s18 + $0x16] sm:$0xff] }
  0x91   : > { %1557 = vmatprep.mubr.bf16.mxu0 %v2382_v2  ;;  %2088 = vmatprep.subr.bf16.mxu1 %v2439_v6  ;;  %v1589_v6 = vld [vmem:[%s2474_s18 + $0x1e] sm:$0xff] }
  0x94   : > { %2092 = vmatpush1.bf16.msra.mxu1 %v2448_v8  ;;  %v690_v8 = vpack.c.bf16 %v502_v27, %v2773_v19  ;;  %v1774_v27 = vsub.s32 0, %v1773_v22 }
  0x95   : > { %2089 = vmatprep.subr.bf16.mxu1 %v2457_v10  ;;  %v1598_v10 = vpack.c.bf16 %v1589_v6, %v1588_v4 }
  0x97   : > { %1976 = vmatmul.mubr.msk.bf16.gmra.mrb[4].mxu1 %vm259_vm0, %v689_v49  ;;  %2063 = vmatmul.mubr.msk.bf16.gmra.mrb[16].mxu0 %vm259_vm0, %v1420_v50 }
  0x98   : > { %809 = vmatprep.mubr.bf16.mxu1 %v2382_v2  ;;  %1699 = vmatprep.mubr.bf16.mxu0 %v2382_v2 }
  0x99   : > { %2093 = vmatpush1.bf16.msra.mxu1 %v2465_v12  ;;  %v1590_v12 = vld [vmem:[%s2474_s18 + $0x26] sm:$0xff] }
  0x9a   : > { %2090 = vmatprep.subr.bf16.mxu1 %v2480_v14  ;;  %v691_v14 = vpack.c.bf16 %v504_v36, %v2795_v28  ;;  %v1599_v52 = vpack.c.bf16 %v1591_v51, %v1590_v12  ;;  %v1778_v28 = vsub.s32 1, %v1773_v22 }
  0x9d   : > { %2094 = vmatpush1.bf16.msra.mxu1 %v2488_v16  ;;  %v687_v16 = vld [vmem:[%s2474_s18 + $0x52] sm:$0xff]  ;;  %s2256_s18 = smul.u32 160, %s2950_s13 }
  0x9e   : > { %v692_v55 = vpack.c.bf16 %v687_v16, %v505_v37 }
  0x9f   : > { %1977 = vmatmul.mubr.msk.bf16.gmra.mrb[8].mxu1 %vm259_vm0, %v690_v8  ;;  %2080 = vmatmul.mubr.msk.bf16.vlgmr.msra.gmra.mrb[0].mxu0 %vm259_vm0, %v1598_v10  ;;  %s2901_s21 = scalar_lea.vmem %s2948_s3, %s2256_s18 }
  0xa0   : > { %819 = vmatprep.mubr.bf16.mxu1 %v2382_v2  ;;  %1709 = vmatprep.mubr.bf16.mxu0 %v2382_v2 }
  0xa7   : > { %1978 = vmatmul.mubr.msk.bf16.gmra.mrb[12].mxu1 %vm259_vm0, %v691_v14  ;;  %2081 = vmatmul.mubr.msk.bf16.gmra.mrb[4].mxu0 %vm259_vm0, %v1599_v52 }
  0xa8   : > { %829 = vmatprep.mubr.bf16.mxu1 %v2382_v2  ;;  %1719 = vmatprep.mubr.bf16.mxu0 %v2382_v2 }
  0xaf   : > { %1979 = vmatmul.mubr.msk.bf16.gmra.mrb[16].mxu1 %vm259_vm0, %v692_v55  ;;  %2082 = vmatmul.mubr.msk.bf16.gmra.mrb[8].mxu0 %vm259_vm0, %v1600_v56 }
  0xb0   : > { %991 = vmatprep.mubr.bf16.mxu1 %v2382_v2  ;;  %1729 = vmatprep.mubr.bf16.mxu0 %v2382_v2 }
  0xb7   : > { %1998 = vmatmul.mubr.msk.bf16.vlgmr.msra.gmra.mrb[8].mxu1 %vm259_vm0, %v872_v61  ;;  %2083 = vmatmul.mubr.msk.bf16.gmra.mrb[12].mxu0 %vm259_vm0, %v1601_v62 }
  0xb8   : > { %1001 = vmatprep.mubr.bf16.mxu1 %v2382_v2  ;;  %1739 = vmatprep.mubr.bf16.mxu0 %v2382_v2 }
  0xbf   : > { %1999 = vmatmul.mubr.msk.bf16.gmra.mrb[12].mxu1 %vm259_vm0, %v873_v7  ;;  %2084 = vmatmul.mubr.msk.bf16.gmra.mrb[16].mxu0 %vm259_vm0, %v1602_v9 }
  0xc0   : > { %1011 = vmatprep.mubr.bf16.mxu1 %v2382_v2  ;;  %v1770_v2 = vld [vmem:[%s2947_s2] sm:$0x3] }
  0xc1   : > { %v2892_v29 = vrot.slane %v1770_v2, %v1774_v27  ;;  %v2895_v1 = vrot.slane %v1770_v2, %v1778_v28 }
  0xc7   : > { %2000 = vmatmul.mubr.msk.bf16.gmra.mrb[16].mxu1 %vm259_vm0, %v874_v15 }
 0x162   : > { %v791_v17 = vpop.f32.mrb[0].mxu1 }
 0x163   : > { %v793_v18 = vpop.f32.mrb[1].mxu1 }
 0x164   : > { %v795_v19 = vpop.f32.mrb[2].mxu1 }
 0x165   : > { %v797_v20 = vpop.f32.mrb[3].mxu1 }
 0x16a   : > { %v801_v23 = vpop.f32.mrb[4].mxu1 }
 0x16b   : > { %v803_v24 = vpop.f32.mrb[5].mxu1 }
 0x16c   : > { %v805_v25 = vpop.f32.mrb[6].mxu1 }
 0x16d   : > { %v807_v26 = vpop.f32.mrb[7].mxu1 }
 0x172   : > { %v1701_v30 = vpop.f32.mrb[0].mxu0 }
 0x173   : > { %v2095_v31 = vadd.f32 %v1701_v30, %v791_v17  ;;  %v1703_v32 = vpop.f32.mrb[1].mxu0 }
 0x174   : > { %v2096_v33 = vadd.f32 %v1703_v32, %v793_v18  ;;  %v1705_v34 = vpop.f32.mrb[2].mxu0 }
 0x175   : > { %v1782_v35 = vadd.f32 %v2095_v31, %v2892_v29  ;;  %v2097_v36 = vadd.f32 %v1705_v34, %v795_v19  ;;  %v1707_v37 = vpop.f32.mrb[3].mxu0 }
 0x176   : > { %v1783_v38 = vadd.f32 %v2096_v33, %v2895_v1  ;;  %v2098_v39 = vadd.f32 %v1707_v37, %v797_v20 }
 0x177   : > { %v1802_v40 = vmax.f32 %v1782_v35, 0.0  ;;  %v1784_v41 = vadd.f32 %v2097_v36, %v2892_v29 }
 0x178   : > { %v1803_v42 = vmax.f32 %v1783_v38, 0.0  ;;  %v1785_v43 = vadd.f32 %v2098_v39, %v2895_v1 }
 0x179   : > { %1822 = vst [vmem:[%s2901_s21] sm:$0xff] %v1802_v40  ;;  %v1804_v44 = vmax.f32 %v1784_v41, 0.0 }
 0x17a   : > { %1823 = vst [vmem:[%s2901_s21 + $0x8] sm:$0xff] %v1803_v42  ;;  %v1805_v45 = vmax.f32 %v1785_v43, 0.0  ;;  %v1711_v46 = vpop.f32.mrb[4].mxu0 }
 0x17b   : > { %1824 = vst [vmem:[%s2901_s21 + $0x10] sm:$0xff] %v1804_v44  ;;  %v2099_v47 = vadd.f32 %v1711_v46, %v801_v23  ;;  %v1713_v48 = vpop.f32.mrb[5].mxu0 }
 0x17c   : > { %1825 = vst [vmem:[%s2901_s21 + $0x18] sm:$0xff] %v1805_v45  ;;  %v2100_v49 = vadd.f32 %v1713_v48, %v803_v24  ;;  %v1715_v50 = vpop.f32.mrb[6].mxu0 }
 0x17d   : > { %v1786_v4 = vadd.f32 %v2099_v47, %v2892_v29  ;;  %v2101_v6 = vadd.f32 %v1715_v50, %v805_v25  ;;  %v1717_v8 = vpop.f32.mrb[7].mxu0 }
 0x17e   : > { %v1787_v10 = vadd.f32 %v2100_v49, %v2895_v1  ;;  %v2102_v12 = vadd.f32 %v1717_v8, %v807_v26 }
 0x17f   : > { %v1806_v51 = vmax.f32 %v1786_v4, 0.0  ;;  %v1788_v14 = vadd.f32 %v2101_v6, %v2892_v29 }
 0x180   : > { %v1807_v52 = vmax.f32 %v1787_v10, 0.0  ;;  %v1789_v16 = vadd.f32 %v2102_v12, %v2895_v1 }
 0x181   : > { %1826 = vst [vmem:[%s2901_s21 + $0x20] sm:$0xff] %v1806_v51  ;;  %v1808_v53 = vmax.f32 %v1788_v14, 0.0 }
 0x182   : > { %1827 = vst [vmem:[%s2901_s21 + $0x28] sm:$0xff] %v1807_v52  ;;  %v1809_v54 = vmax.f32 %v1789_v16, 0.0  ;;  %v1721_v55 = vpop.f32.mrb[8].mxu0 }
 0x183   : > { %1828 = vst [vmem:[%s2901_s21 + $0x30] sm:$0xff] %v1808_v53  ;;  %v1723_v56 = vpop.f32.mrb[9].mxu0 }
 0x184   : > { %1829 = vst [vmem:[%s2901_s21 + $0x38] sm:$0xff] %v1809_v54  ;;  %v1725_v57 = vpop.f32.mrb[10].mxu0 }
 0x185   : > { %v1727_v58 = vpop.f32.mrb[11].mxu0 }
 0x18a   : > { %v993_v59 = vpop.f32.mrb[8].mxu1  ;;  %v1731_v60 = vpop.f32.mrb[12].mxu0 }
 0x18b   : > { %v2103_v61 = vadd.f32 %v1721_v55, %v993_v59  ;;  %v995_v62 = vpop.f32.mrb[9].mxu1  ;;  %v1733_v63 = vpop.f32.mrb[13].mxu0 }
 0x18c   : > { %v2104_v0 = vadd.f32 %v1723_v56, %v995_v62  ;;  %v997_v3 = vpop.f32.mrb[10].mxu1  ;;  %v1735_v5 = vpop.f32.mrb[14].mxu0 }
 0x18d   : > { %v1790_v7 = vadd.f32 %v2103_v61, %v2892_v29  ;;  %v2105_v9 = vadd.f32 %v1725_v57, %v997_v3  ;;  %v999_v11 = vpop.f32.mrb[11].mxu1  ;;  %v1737_v13 = vpop.f32.mrb[15].mxu0 }
 0x18e   : > { %v1791_v15 = vadd.f32 %v2104_v0, %v2895_v1  ;;  %v2106_v17 = vadd.f32 %v1727_v58, %v999_v11 }
 0x18f   : > { %v1810_v18 = vmax.f32 %v1790_v7, 0.0  ;;  %v1792_v19 = vadd.f32 %v2105_v9, %v2892_v29 }
 0x190   : > { %v1811_v20 = vmax.f32 %v1791_v15, 0.0  ;;  %v1793_v21 = vadd.f32 %v2106_v17, %v2895_v1 }
 0x191   : > { %1830 = vst [vmem:[%s2901_s21 + $0x40] sm:$0xff] %v1810_v18  ;;  %v1812_v22 = vmax.f32 %v1792_v19, 0.0 }
 0x192   : > { %1831 = vst [vmem:[%s2901_s21 + $0x48] sm:$0xff] %v1811_v20  ;;  %v1813_v23 = vmax.f32 %v1793_v21, 0.0  ;;  %v1003_v24 = vpop.f32.mrb[12].mxu1  ;;  %v1741_v25 = vpop.f32.mrb[16].mxu0 }
 0x193   : > { %1832 = vst [vmem:[%s2901_s21 + $0x50] sm:$0xff] %v1812_v22  ;;  %v2107_v26 = vadd.f32 %v1731_v60, %v1003_v24  ;;  %v1005_v27 = vpop.f32.mrb[13].mxu1  ;;  %v1743_v2 = vpop.f32.mrb[17].mxu0 }
 0x194   : > { %1833 = vst [vmem:[%s2901_s21 + $0x58] sm:$0xff] %v1813_v23  ;;  %v2108_v28 = vadd.f32 %v1733_v63, %v1005_v27  ;;  %v1007_v30 = vpop.f32.mrb[14].mxu1  ;;  %v1745_v31 = vpop.f32.mrb[18].mxu0 }
 0x195   : > { %v1794_v32 = vadd.f32 %v2107_v26, %v2892_v29  ;;  %v2109_v33 = vadd.f32 %v1735_v5, %v1007_v30  ;;  %v1009_v34 = vpop.f32.mrb[15].mxu1  ;;  %v1747_v35 = vpop.f32.mrb[19].mxu0 }
 0x196   : > { %v1795_v36 = vadd.f32 %v2108_v28, %v2895_v1  ;;  %v2110_v37 = vadd.f32 %v1737_v13, %v1009_v34 }
 0x197   : > { %v1814_v38 = vmax.f32 %v1794_v32, 0.0  ;;  %v1796_v39 = vadd.f32 %v2109_v33, %v2892_v29 }
 0x198   : > { %v1815_v40 = vmax.f32 %v1795_v36, 0.0  ;;  %v1797_v41 = vadd.f32 %v2110_v37, %v2895_v1 }
 0x199   : > { %1834 = vst [vmem:[%s2901_s21 + $0x60] sm:$0xff] %v1814_v38  ;;  %v1816_v42 = vmax.f32 %v1796_v39, 0.0 }
 0x19a   : > { %1835 = vst [vmem:[%s2901_s21 + $0x68] sm:$0xff] %v1815_v40  ;;  %v1817_v43 = vmax.f32 %v1797_v41, 0.0  ;;  %v1013_v44 = vpop.f32.mrb[16].mxu1 }
 0x19b   : > { %1836 = vst [vmem:[%s2901_s21 + $0x70] sm:$0xff] %v1816_v42  ;;  %v2111_v45 = vadd.f32 %v1741_v25, %v1013_v44  ;;  %v1015_v46 = vpop.f32.mrb[17].mxu1 }
 0x19c   : > { %1837 = vst [vmem:[%s2901_s21 + $0x78] sm:$0xff] %v1817_v43  ;;  %v2112_v47 = vadd.f32 %v1743_v2, %v1015_v46  ;;  %v1017_v48 = vpop.f32.mrb[18].mxu1 }
 0x19d   : > { %v1798_v49 = vadd.f32 %v2111_v45, %v2892_v29  ;;  %v2113_v50 = vadd.f32 %v1745_v31, %v1017_v48  ;;  %v1019_v4 = vpop.f32.mrb[19].mxu1 }
 0x19e   : > { %v1799_v6 = vadd.f32 %v2112_v47, %v2895_v1  ;;  %v2114_v8 = vadd.f32 %v1747_v35, %v1019_v4 }
 0x19f   : > { %v1818_v10 = vmax.f32 %v1798_v49, 0.0  ;;  %v1800_v12 = vadd.f32 %v2113_v50, %v2892_v29 }
 0x1a0   : > { %v1819_v51 = vmax.f32 %v1799_v6, 0.0  ;;  %v1801_v14 = vadd.f32 %v2114_v8, %v2895_v1 }
 0x1a1   : > { %1838 = vst [vmem:[%s2901_s21 + $0x80] sm:$0xff] %v1818_v10  ;;  %v1820_v52 = vmax.f32 %v1800_v12, 0.0 }
 0x1a2   : > { %1839 = vst [vmem:[%s2901_s21 + $0x88] sm:$0xff] %v1819_v51  ;;  %v1821_v16 = vmax.f32 %v1801_v14, 0.0 }
 0x1a3   : > { %1840 = vst [vmem:[%s2901_s21 + $0x90] sm:$0xff] %v1820_v52 }
 0x1a4   : > { %1841 = vst [vmem:[%s2901_s21 + $0x98] sm:$0xff] %v1821_v16 }
 0x1a5 PF: > { %s13_s12 = sadd.s32 1, %s2380_s12  }
 0x1a6   : > { %p10_p4 = scmp.ge.s32.totalorder %s13_s12, 4  }
 0x1a8   :  { %12 = sbr.rel (!%p10_p4) target bundleno = 1 (0x1), region = 70 }

// kernel: explanation_forward.5
= control target key start
LH: loop header
LB: loop body
LE: loop exit
PB: predicated region body
PF: predicated region fallthrough
CT: control target
= control target key end

     0   :  { %7 = vsyncpa [#allocation3], 0  ;;  %s951_s0 = inlined_call_operand.vmem [shape: f32[2,34,34], index: 0, kind: input, shape index: {}]   ;;  %s952_s1 = inlined_call_operand.vmem [shape: f32[10,1,1], index: 1, kind: input, shape index: {}]   ;;  %s953_s2 = inlined_call_operand.hbm [shape: f32[2,32,32], index: 2, kind: output, shape index: {}]  }
   0x1   :  { %9 = vsyncpa [#allocation3 + $0x1], 0  ;;  %s720_s9 = smov 0   ;;  %s722_s10 = smov 0  }
   0x2   :  { %s724_s11 = smov 0   ;;  %s726_s12 = smov 0  }
   0x3 LB: > { %s741_s13 = sadd.s32 4294967295, %s697_s12   ;;  %s537_s14 = sadd.s32 4294967294, %s697_s12   ;;  %s697_s12 = sphi %s726_s12, %s959_s12   ;;  %s693_s11 = sphi %s724_s11, %s958_s11   ;;  %s689_s10 = sphi %s722_s10, %s957_s10   ;;  %s685_s9 = sphi %s720_s9, %s956_s9  }
   0x4   : > { %s745_s15 = sadd.s32 1, %s697_s12   ;;  %s69_s16 = sadd.s32 1, %s693_s11 }
   0x5   : > { %s66_s17 = ssub.s32 %s697_s12, %s745_s15  ;;  %p79_p0 = scmp.ne.s32.totalorder %s693_s11, %s689_s10 }
   0x6   : > { %p67_p1 = scmp.eq.s32.totalorder %s66_s17, 0  ;;  %p80_p2 = scmp.eq.s32.totalorder %s741_s13, 1 }
   0x7   : > { %p85_p3 = scmp.ne.s32.totalorder %s689_s10, %s685_s9  ;;  %p86_p4 = scmp.eq.s32.totalorder %s537_s14, 1 }
   0x8   : > { %s756_s18 = scalar_select %p67_p1, %s693_s11, %s69_s16  }
   0x9   : > { %p758_p5 = por %p80_p2, %p79_p0  ;;  %p762_p6 = por %p86_p4, %p85_p3 }
   0xa   : > { %p540_p7 = scmp.ge.s32.totalorder %s697_s12, 1  ;;  %p115_p8 = scmp.lt.s32.totalorder %s697_s12, 3 }
   0xc   : > { %p116_p9 = pnand %p540_p7, %p115_p8 }
   0xd   : > { %v553_v0 = vld [vmem:[%s952_s1 + $0x4] ss:$0 sm:$0xff] (!%p116_p9)  ;;  %v547_v1 = vld [vmem:[%s952_s1 + $0x1] ss:$0 sm:$0xff] (!%p116_p9)  ;;  %v699_v2 = vmov (!%p116_p9), 0   ;;  %p137_p10 = scmp.lt.s32.totalorder (!%p116_p9), %s741_s13, 1 }
   0xe   : > { %119 = sbr.rel (%p116_p9) target bundleno = 348 (0x15c), region = 28  ;;  %618 = vset.pattern.permute.xlu1 (!%p116_p9), %v699_v2  ;;  %617 = vset.pattern.permute.xlu0 (!%p116_p9), %v699_v2  ;;  %v555_v3 = vld [vmem:[%s952_s1 + $0x5] ss:$0 sm:$0xff] (!%p116_p9)  ;;  %v549_v4 = vld [vmem:[%s952_s1 + $0x2] ss:$0 sm:$0xff] (!%p116_p9)  ;;  %s700_s27 = smov (!%p116_p9), 127  }
   0xf   : > { %277 = vperm.xlu1 (!%p116_p9), %618, %v553_v0   ;;  %184 = vperm.xlu0 (!%p116_p9), %617, %v547_v1   ;;  %v561_v5 = vld [vmem:[%s952_s1 + $0x8] ss:$0 sm:$0xff] (!%p116_p9)  ;;  %v559_v6 = vld [vmem:[%s952_s1 + $0x7] ss:$0 sm:$0xff] (!%p116_p9)  ;;  %v545_v7 = vld [vmem:[%s952_s1] ss:$0 sm:$0xff] (!%p116_p9) }
  0x10   : > { %v544_v8 = vld [vmem:[%s952_s1 + $0x9] ss:$0 sm:$0xff] (!%p116_p9)  ;;  %v551_v9 = vld [vmem:[%s952_s1 + $0x3] ss:$0 sm:$0xff] (!%p116_p9)  ;;  %v557_v10 = vld [vmem:[%s952_s1 + $0x6] ss:$0 sm:$0xff] (!%p116_p9) }
  0x11   : > { %s701_s28 = smov (!%p116_p9), 126   ;;  %s134_s29 = sand.u32 (!%p116_p9), 1, %s689_s10   ;;  %vm456_vm0 = vcmask (!%p116_p9), 261120  }
  0x12   : > { %s541_s30 = sshll.u32 (!%p116_p9), %s134_s29, 5  ;;  %s571_s3 = sshll.u32 (!%p116_p9), %s741_s13, 9 }
  0x13   : > { %312 = vperm.xlu1 (!%p116_p9), %618, %v555_v3   ;;  %219 = vperm.xlu0 (!%p116_p9), %617, %v549_v4   ;;  %s136_s4 = scalar_lea.vmem (!%p116_p9), [#allocation2], %s541_s30  ;;  %s906_s8 = scalar_lea.hbm (!%p116_p9), %s953_s2, %s571_s3 }
  0x14   : > { %s475_s5 = sshll.u32 (!%p116_p9), %s136_s4, 4  ;;  %s702_s16 = smov (!%p116_p9), [#allocation2]   ;;  %s908_s5 = int_to_ptr.vmem [resolvable:$true] %s475_s5 }
  0x15   : > { %s138_s22 = scalar_select %p137_p10, %s741_s13, 1 }
  0x16   : > { %s910_s13 = scalar_lea.sflag [#allocation3], %s134_s29  ;;  %s635_s14 = scalar_lea.vmem %s908_s5, 512 }
  0x17   : > { %405 = vperm.xlu1 %618, %v561_v5   ;;  %370 = vperm.xlu0 %617, %v559_v6   ;;  %s572_s23 = smul.u32 40, %s138_s22  ;;  %p636_p11 = scmp.ne.s32.totalorder %s908_s5, %s635_s14 }
  0x18   : > { %s639_s17 = sshll.u32 %s702_s16, 4  ;;  %s640_s17 = int_to_ptr.vmem [resolvable:$false] %s639_s17 }
  0x19   : > { %s803_s26 = scalar_lea.vmem %s951_s0, %s572_s23  ;;  %p637_p12 = pnand %p636_p11, %p758_p5 }
  0x1a   : > { %v806_v11 = vld [vmem:[%s803_s26 + $0x8] sm:$0xff]  ;;  %v809_v12 = vld [vmem:[%s803_s26] sm:$0xff]  ;;  %v814_v16 = vld [vmem:[%s803_s26 + $0x18] sm:$0xff]  ;;  %s641_s21 = scalar_lea.vmem %s640_s17, 1024  ;;  %p642_p0 = scmp.lt.s32.totalorder %s908_s5, %s640_s17 }
  0x1b   : > { %165 = vperm.xlu0 %617, %v545_v7   ;;  %150 = vperm.xlu1 %618, %v544_v8   ;;  %v817_v17 = vld [vmem:[%s803_s26 + $0x10] sm:$0xff]  ;;  %v830_v23 = vld [vmem:[%s803_s26 + $0x1] sm:$0xff]  ;;  %v845_v31 = vld [vmem:[%s803_s26 + $0x19] sm:$0xff]  ;;  %p638_p13 = pneg %p637_p12  ;;  %p643_p1 = scmp.lt.s32.totalorder %s641_s21, %s635_s14 }
  0x1c   : > { %v833_v24 = vld [vmem:[%s803_s26 + $0x9] sm:$0xff]  ;;  %v842_v30 = vld [vmem:[%s803_s26 + $0x11] sm:$0xff]  ;;  %v873_v45 = vld [vmem:[%s803_s26 + $0x1a] sm:$0xff] }
  0x1d   : > { %v860_v40 = vld [vmem:[%s803_s26 + $0x2] sm:$0xff]  ;;  %v863_v41 = vld [vmem:[%s803_s26 + $0xa] sm:$0xff]  ;;  %v870_v44 = vld [vmem:[%s803_s26 + $0x12] sm:$0xff]  ;;  %p644_p2 = por %p643_p1, %p642_p0 }
  0x1f   : > { %258 = vperm.xlu0 %617, %v551_v9   ;;  %351 = vperm.xlu1 %618, %v557_v10   ;;  %p645_p3 = pnand %p644_p2, %p638_p13 }
  0x8e   : > { %v185_v13 = vpop.permute.xlu0 %184  ;;  %v278_v27 = vpop.permute.xlu1 %277 }
  0x8f   : > { %v188_v14 = vmul.f32 %v185_v13, %v806_v11  ;;  %v187_v15 = vmul.f32 %v185_v13, %v809_v12  ;;  %v190_v18 = vmul.f32 %v185_v13, %v814_v16  ;;  %v189_v19 = vmul.f32 %v185_v13, %v817_v17 }
  0x90   : > { %v280_v28 = vmul.f32 %v278_v27, %v830_v23  ;;  %v281_v29 = vmul.f32 %v278_v27, %v833_v24  ;;  %v282_v32 = vmul.f32 %v278_v27, %v842_v30  ;;  %v283_v33 = vmul.f32 %v278_v27, %v845_v31 }
  0x91   : > { %197 = vrot.lane.b32.xlu0 %v188_v14, %s700_s27  ;;  %195 = vrot.lane.b32.xlu1 %v187_v15, %s700_s27 }
  0x92   : > { %v220_v20 = vpop.permute.xlu0 %219  ;;  %v313_v34 = vpop.permute.xlu1 %312 }
  0x93   : > { %v222_v21 = vmul.f32 %v220_v20, %v809_v12  ;;  %v223_v22 = vmul.f32 %v220_v20, %v806_v11  ;;  %v224_v25 = vmul.f32 %v220_v20, %v817_v17  ;;  %v225_v26 = vmul.f32 %v220_v20, %v814_v16 }
  0x94   : > { %v315_v35 = vmul.f32 %v313_v34, %v830_v23  ;;  %v316_v36 = vmul.f32 %v313_v34, %v833_v24  ;;  %v317_v37 = vmul.f32 %v313_v34, %v842_v30  ;;  %v318_v38 = vmul.f32 %v313_v34, %v845_v31 }
  0x95   : > { %201 = vrot.lane.b32.xlu0 %v190_v18, %s700_s27  ;;  %199 = vrot.lane.b32.xlu1 %v189_v19, %s700_s27 }
  0x96   : > { %v371_v39 = vpop.permute.xlu0 %370  ;;  %v406_v48 = vpop.permute.xlu1 %405 }
  0x97   : > { %v373_v42 = vmul.f32 %v371_v39, %v860_v40  ;;  %v374_v43 = vmul.f32 %v371_v39, %v863_v41  ;;  %v375_v46 = vmul.f32 %v371_v39, %v870_v44  ;;  %v376_v47 = vmul.f32 %v371_v39, %v873_v45 }
  0x98   : > { %v408_v49 = vmul.f32 %v406_v48, %v860_v40  ;;  %v409_v50 = vmul.f32 %v406_v48, %v863_v41  ;;  %v410_v51 = vmul.f32 %v406_v48, %v870_v44  ;;  %v411_v52 = vmul.f32 %v406_v48, %v873_v45 }
  0x99   : > { %230 = vrot.lane.b32.xlu0 %v222_v21, %s701_s28  ;;  %232 = vrot.lane.b32.xlu1 %v223_v22, %s701_s28 }
  0x9a   : > { %v166_v53 = vpop.permute.xlu0 %165  ;;  %v151_v54 = vpop.permute.xlu1 %150 }
  0x9b   : > { %v169_v59 = vmul.f32 %v166_v53, %v806_v11  ;;  %v168_v60 = vmul.f32 %v166_v53, %v809_v12  ;;  %v171_v61 = vmul.f32 %v166_v53, %v814_v16  ;;  %v170_v63 = vmul.f32 %v166_v53, %v817_v17 }
  0x9d   : > { %234 = vrot.lane.b32.xlu0 %v224_v25, %s701_s28  ;;  %236 = vrot.lane.b32.xlu1 %v225_v26, %s701_s28  ;;  %v173_v1 = vadd.f32 %v169_v59, %v151_v54  ;;  %v172_v2 = vadd.f32 %v168_v60, %v151_v54  ;;  %v175_v5 = vadd.f32 %v171_v61, %v151_v54 }
  0x9e   : > { %v259_v55 = vpop.permute.xlu0 %258  ;;  %v352_v56 = vpop.permute.xlu1 %351  ;;  %v174_v6 = vadd.f32 %v170_v63, %v151_v54 }
  0x9f   : > { %v261_v11 = vmul.f32 %v259_v55, %v830_v23  ;;  %v262_v12 = vmul.f32 %v259_v55, %v833_v24  ;;  %v263_v21 = vmul.f32 %v259_v55, %v842_v30  ;;  %v264_v22 = vmul.f32 %v259_v55, %v845_v31 }
  0xa1   : > { %288 = vrot.lane.b32.xlu0 %v280_v28, %s700_s27  ;;  %290 = vrot.lane.b32.xlu1 %v281_v29, %s700_s27 }
  0xa5   : > { %292 = vrot.lane.b32.xlu0 %v282_v32, %s700_s27  ;;  %294 = vrot.lane.b32.xlu1 %v283_v33, %s700_s27 }
  0xa9   : > { %323 = vrot.lane.b32.xlu0 %v315_v35, %s701_s28  ;;  %325 = vrot.lane.b32.xlu1 %v316_v36, %s701_s28 }
  0xad   : > { %327 = vrot.lane.b32.xlu0 %v317_v37, %s701_s28  ;;  %329 = vrot.lane.b32.xlu1 %v318_v38, %s701_s28  ;;  %v354_v37 = vmul.f32 %v352_v56, %v860_v40  ;;  %v355_v38 = vmul.f32 %v352_v56, %v863_v41 }
  0xb1   : > { %381 = vrot.lane.b32.xlu0 %v373_v42, %s700_s27  ;;  %383 = vrot.lane.b32.xlu1 %v374_v43, %s700_s27 }
  0xb5   : > { %385 = vrot.lane.b32.xlu0 %v375_v46, %s700_s27  ;;  %387 = vrot.lane.b32.xlu1 %v376_v47, %s700_s27 }
  0xb9   : > { %416 = vrot.lane.b32.xlu0 %v408_v49, %s701_s28  ;;  %418 = vrot.lane.b32.xlu1 %v409_v50, %s701_s28  ;;  %v356_v49 = vmul.f32 %v352_v56, %v870_v44  ;;  %v357_v50 = vmul.f32 %v352_v56, %v873_v45 }
  0xbd   : > { %420 = vrot.lane.b32.xlu0 %v410_v51, %s701_s28  ;;  %422 = vrot.lane.b32.xlu1 %v411_v52, %s701_s28 }
 0x103   : > { %v198_v57 = vpop.permute.xlu0 %197  ;;  %v196_v58 = vpop.permute.xlu1 %195 }
 0x104   : > { %v208_v3 = vadd.f32 %v198_v57, %v173_v1  ;;  %v207_v4 = vadd.f32 %v196_v58, %v172_v2 }
 0x107   : > { %v202_v62 = vpop.permute.xlu0 %201  ;;  %v200_v0 = vpop.permute.xlu1 %199 }
 0x108   : > { %v210_v13 = vadd.f32 %v202_v62, %v175_v5  ;;  %v209_v14 = vadd.f32 %v200_v0, %v174_v6 }
 0x10b   : > { %v231_v7 = vpop.permute.xlu0 %230  ;;  %v233_v8 = vpop.permute.xlu1 %232 }
 0x10c   : > { %v242_v9 = vadd.f32 %v231_v7, %v207_v4  ;;  %v243_v10 = vadd.f32 %v233_v8, %v208_v3 }
 0x10e   : > { %v265_v15 = vadd.f32 %v261_v11, %v242_v9  ;;  %v266_v16 = vadd.f32 %v262_v12, %v243_v10 }
 0x10f   : > { %v235_v17 = vpop.permute.xlu0 %234  ;;  %v237_v18 = vpop.permute.xlu1 %236 }
 0x110   : > { %v244_v19 = vadd.f32 %v235_v17, %v209_v14  ;;  %v245_v20 = vadd.f32 %v237_v18, %v210_v13 }
 0x112   : > { %v267_v25 = vadd.f32 %v263_v21, %v244_v19  ;;  %v268_v26 = vadd.f32 %v264_v22, %v245_v20 }
 0x113   : > { %v289_v27 = vpop.permute.xlu0 %288  ;;  %v291_v28 = vpop.permute.xlu1 %290 }
 0x114   : > { %v300_v32 = vadd.f32 %v289_v27, %v265_v15  ;;  %v301_v24 = vadd.f32 %v291_v28, %v266_v16 }
 0x117   : > { %v293_v29 = vpop.permute.xlu0 %292  ;;  %v295_v23 = vpop.permute.xlu1 %294 }
 0x118   : > { %v302_v39 = vadd.f32 %v293_v29, %v267_v25  ;;  %v303_v30 = vadd.f32 %v295_v23, %v268_v26 }
 0x11b   : > { %v324_v33 = vpop.permute.xlu0 %323  ;;  %v326_v34 = vpop.permute.xlu1 %325 }
 0x11c   : > { %v335_v35 = vadd.f32 %v324_v33, %v300_v32  ;;  %v336_v36 = vadd.f32 %v326_v34, %v301_v24 }
 0x11e   : > { %v358_v42 = vadd.f32 %v354_v37, %v335_v35  ;;  %v359_v31 = vadd.f32 %v355_v38, %v336_v36 }
 0x11f   : > { %v328_v43 = vpop.permute.xlu0 %327  ;;  %v330_v46 = vpop.permute.xlu1 %329 }
 0x120   : > { %v337_v47 = vadd.f32 %v328_v43, %v302_v39  ;;  %v338_v48 = vadd.f32 %v330_v46, %v303_v30 }
 0x122   : > { %v360_v51 = vadd.f32 %v356_v49, %v337_v47  ;;  %v361_v52 = vadd.f32 %v357_v50, %v338_v48 }
 0x123   : > { %v382_v53 = vpop.permute.xlu0 %381  ;;  %v384_v54 = vpop.permute.xlu1 %383 }
 0x124   : > { %v393_v57 = vadd.f32 %v382_v53, %v358_v42  ;;  %v394_v41 = vadd.f32 %v384_v54, %v359_v31 }
 0x127   : > { %v386_v55 = vpop.permute.xlu0 %385  ;;  %v388_v40 = vpop.permute.xlu1 %387 }
 0x128   : > { %v395_v62 = vadd.f32 %v386_v55, %v360_v51  ;;  %v396_v63 = vadd.f32 %v388_v40, %v361_v52 }
 0x12b   : > { %v417_v58 = vpop.permute.xlu0 %416  ;;  %v419_v59 = vpop.permute.xlu1 %418 }
 0x12c   : > { %v428_v60 = vadd.f32 %v417_v58, %v393_v57  ;;  %v429_v61 = vadd.f32 %v419_v59, %v394_v41 }
 0x12e   : > { %v562_v0 = vmul.f32 -1.442695, %v428_v60  ;;  %v563_v1 = vmul.f32 -1.442695, %v429_v61 }
 0x12f   : > { %v421_v2 = vpop.permute.xlu0 %420  ;;  %v423_v44 = vpop.permute.xlu1 %422 }
 0x130   : > { %619 = vpow2.f32 %v562_v0  ;;  %v430_v45 = vadd.f32 %v421_v2, %v395_v62  ;;  %v431_v56 = vadd.f32 %v423_v44, %v396_v63 }
 0x131   : > { %621 = vpow2.f32 %v563_v1 }
 0x132   : > { %v564_v3 = vmul.f32 -1.442695, %v430_v45  ;;  %v565_v4 = vmul.f32 -1.442695, %v431_v56 }
 0x134   : > { %623 = vpow2.f32 %v564_v3 }
 0x135   : > { %625 = vpow2.f32 %v565_v4 }
 0x13a   : > { %v620_v5 = vpop.eup %619 }
 0x13b   : > { %v622_v6 = vpop.eup %621  ;;  %v444_v7 = vadd.f32 1.0, %v620_v5 }
 0x13c   : > { %v445_v8 = vadd.f32 1.0, %v622_v6 }
 0x13d   : > { %627 = vrcp.f32 %v444_v7 }
 0x13e   : > { %v624_v9 = vpop.eup %623  ;;  %629 = vrcp.f32 %v445_v8 }
 0x13f   : > { %v626_v10 = vpop.eup %625  ;;  %v446_v11 = vadd.f32 1.0, %v624_v9 }
 0x140   : > { %v447_v12 = vadd.f32 1.0, %v626_v10 }
 0x141   : > { %631 = vrcp.f32 %v446_v11 }
 0x142   : > { %633 = vrcp.f32 %v447_v12 }
 0x147   : > { %v628_v13 = vpop.eup %627 }
 0x148   : > { %v630_v14 = vpop.eup %629  ;;  %457 = vst.msk [vmem:[%s136_s4] sm:$0xff] %vm456_vm0, %v628_v13 }
 0x149   : > { %458 = vst.msk [vmem:[%s136_s4 + $0x8] sm:$0xff] %vm456_vm0, %v630_v14 }
 0x14b   : > { %v632_v15 = vpop.eup %631 }
 0x14c   : > { %v634_v16 = vpop.eup %633  ;;  %459 = vst.msk [vmem:[%s136_s4 + $0x10] sm:$0xff] %vm456_vm0, %v632_v15 }
 0x14d   : > { %460 = vst.msk [vmem:[%s136_s4 + $0x18] sm:$0xff] %vm456_vm0, %v634_v16 }
 0x14e   : > { %648 = shalt.err (!%p645_p3)
}
 0x14f   : > { %s649_s22 = scalar_lea.hbm %s906_s8, 512  ;;  %s653_s25 = scalar_lea.hbm %s953_s2, 1024 }
 0x150   : > { %p650_p4 = scmp.ne.s32.totalorder %s906_s8, %s649_s22  ;;  %p654_p9 = scmp.lt.u32.totalorder %s906_s8, %s953_s2 }
 0x151   : > { %p655_p10 = scmp.lt.u32.totalorder %s653_s25, %s649_s22  ;;  %p657_p12 = scmp.lt.u32.totalorder %s649_s22, %s906_s8 }
 0x152   : > { %p651_p7 = pnand %p650_p4, %p758_p5 }
 0x153   : > { %p656_p11 = por %p655_p10, %p654_p9 }
 0x154   : > { %p652_p8 = pneg %p651_p7 }
 0x155   : > { %p658_p13 = por %p657_p12, %p656_p11 }
 0x157   : > { %p659_p0 = pnand %p658_p13, %p652_p8 }
 0x159   : > { %662 = shalt.err (!%p659_p0)
}
 0x15a   : > { %s703_s28 = smov 128   ;;  %s704_s29 = smov 8  }
 0x15b   : > { %573 = dma.vmem_to_hbm [thread:$0]  (%p758_p5), %s908_s5, 512, %s906_s8, %s910_s13, %s703_s28, %s703_s28, %s704_s29  }
 0x15c PF: > { %p579_p1 = scmp.ge.s32.totalorder %s697_s12, 2  ;;  %s490_s30 = sand.u32 1, %s685_s9  }
 0x15d   : > { %s491_s3 = scalar_lea.sflag [#allocation3], %s490_s30 }
 0x15e   : > { %p576_p2 = pnand %p579_p1, %p762_p6 }
 0x160   : > { %680 = dma.done.wait (!%p576_p2), %s491_s3, 512  }
 0x161   : > { %682 = vsyncadd (!%p576_p2), %s491_s3, 4294966784  ;;  %p12_p3 = scmp.ge.s32.totalorder %s745_s15, 4   ;;  %s956_s9 = smov %s689_s10 }
 0x162   : > { %s957_s10 = smov %s693_s11  ;;  %s958_s11 = smov %s756_s18 }
 0x163   : > { %s959_s12 = smov %s745_s15  ;;  %14 = sbr.rel (!%p12_p3) target bundleno = 3 (0x3), region = 72 }
 0x16a   :  { %496 = vsyncpa [#allocation3], 1 }
 0x16b   :  { %498 = vsyncpa [#allocation3 + $0x1], 1 }

// kernel: explanation_forward.4
= control target key start
LH: loop header
LB: loop body
LE: loop exit
PB: predicated region body
PF: predicated region fallthrough
CT: control target
= control target key end

     0   :  { %s4621_s9 = smov 0   ;;  %s5435_s0 = inlined_call_operand.vmem [shape: f32[2,342,64], index: 0, kind: input, shape index: {}]   ;;  %s5436_s1 = inlined_call_operand.vmem [shape: bf16[9,64,4], index: 1, kind: input, shape index: {}]   ;;  %s5437_s2 = inlined_call_operand.vmem [shape: f32[2,288,4], index: 2, kind: output, shape index: {}]  }
   0x1 LB: > { %s3387_s10 = sadd.s32 4294967295, %s4604_s9   ;;  %p3391_p0 = scmp.ge.s32.totalorder %s4604_s9, 1  ;;  %s4604_s9 = sphi %s4621_s9, %s12_s9  }
   0x2   : > { %p112_p1 = scmp.lt.s32.totalorder %s4604_s9, 3 }
   0x4   : > { %p113_p2 = pnand %p3391_p0, %p112_p1 }
   0x5   : > { %v4558_v0 = vld [vmem:[%s5436_s1 + $0x20] sm:$0xff] (!%p113_p2)   ;;  %p134_p3 = scmp.lt.s32.totalorder (!%p113_p2), %s3387_s10, 1  ;;  %v4560_v2 = vld [vmem:[%s5436_s1 + $0x28] sm:$0xff] (!%p113_p2)   ;;  %v4562_v4 = vld [vmem:[%s5436_s1 + $0x30] sm:$0xff] (!%p113_p2)   ;;  %vm294_vm0 = vcmask (!%p113_p2), 523264   ;;  %vm3295_vm1 = vcmask (!%p113_p2), 31744  }
   0x6   : > { %116 = sbr.rel (%p113_p2) target bundleno = 563 (0x233), region = 28  ;;  %v4635_v1 = vld [vmem:[%s5436_s1 + $0x80] sm:$0xff] (!%p113_p2)   ;;  %3856 = vmatprep.subr.bf16.mxu1 (!%p113_p2), %v4558_v0  ;;  %v4561_v3 = vld [vmem:[%s5436_s1 + $0x88] sm:$0xff] (!%p113_p2)   ;;  %v4563_v5 = vld [vmem:[%s5436_s1 + $0x90] sm:$0xff] (!%p113_p2)  }
   0x7   : > { %4032 = vmatprep.subr.bf16.mxu0 (!%p113_p2), %v4635_v1  ;;  %3857 = vmatpush3.bf16.msra.mxu1 (!%p113_p2), %v4558_v0  ;;  %v4564_v6 = vld [vmem:[%s5436_s1 + $0x38] sm:$0xff] (!%p113_p2)   ;;  %v4566_v18 = vld [vmem:[%s5436_s1 + $0xa0] sm:$0xff] (!%p113_p2)   ;;  %v4568_v28 = vld [vmem:[%s5436_s1 + $0xa8] sm:$0xff] (!%p113_p2)  }
   0x8   : > { %4033 = vmatpush3.bf16.msra.mxu0 (!%p113_p2), %v4635_v1  ;;  %3858 = vmatprep.subr.bf16.mxu1 (!%p113_p2), %v4560_v2  ;;  %v4565_v10 = vld [vmem:[%s5436_s1 + $0x98] sm:$0xff] (!%p113_p2)   ;;  %v4567_v24 = vld [vmem:[%s5436_s1] sm:$0xff] (!%p113_p2)   ;;  %v4569_v37 = vld [vmem:[%s5436_s1 + $0xb0] sm:$0xff] (!%p113_p2)  }
   0x9   : > { %4034 = vmatprep.subr.bf16.mxu0 (!%p113_p2), %v4561_v3  ;;  %v4570_v41 = vld [vmem:[%s5436_s1 + $0x8] sm:$0xff] (!%p113_p2)   ;;  %v4571_v43 = vld [vmem:[%s5436_s1 + $0xb8] sm:$0xff] (!%p113_p2)   ;;  %v4724_v53 = vld [vmem:[%s5436_s1 + $0xc0] sm:$0xff] (!%p113_p2)  }
   0xa   : > { %v4573_v56 = vld [vmem:[%s5436_s1 + $0x10] sm:$0xff] (!%p113_p2)  }
   0xb   : > { %3859 = vmatpush3.bf16.msra.mxu1 (!%p113_p2), %v4560_v2 }
   0xc   : > { %4035 = vmatpush3.bf16.msra.mxu0 (!%p113_p2), %v4561_v3  ;;  %3860 = vmatprep.subr.bf16.mxu1 (!%p113_p2), %v4562_v4 }
   0xd   : > { %s5439_s10 = smov (!%p134_p3, %s3387_s10), 1  ;;  %4036 = vmatprep.subr.bf16.mxu0 %v4563_v5 }
   0xe   : > { %s4548_s21 = smul.u32 344, %s5439_s10 }
   0xf   : > { %3861 = vmatpush3.bf16.msra.mxu1 %v4562_v4 }
  0x10   : > { %s4657_s26 = scalar_lea.vmem %s5435_s0, %s4548_s21  ;;  %4037 = vmatpush3.bf16.msra.mxu0 %v4563_v5  ;;  %3862 = vmatprep.subr.bf16.mxu1 %v4564_v6 }
  0x11   : > { %v207_v7 = vld [vmem:[%s4657_s26 + $0x1] sm:$0xff]  ;;  %v208_v8 = vld [vmem:[%s4657_s26 + $0x9] sm:$0xff]  ;;  %v1489_v9 = vld [vmem:[%s4657_s26 + $0x13] sm:$0xff]  ;;  %4038 = vmatprep.subr.bf16.mxu0 %v4565_v10 }
  0x12   : > { %v243_v11 = vpack.c.bf16 %v208_v8, %v207_v7  ;;  %v1490_v12 = vld [vmem:[%s4657_s26 + $0x1b] sm:$0xff]  ;;  %v209_v14 = vld [vmem:[%s4657_s26 + $0x11] sm:$0xff]  ;;  %v1491_v16 = vld [vmem:[%s4657_s26 + $0x23] sm:$0xff] }
  0x13   : > { %v1525_v13 = vpack.c.bf16 %v1490_v12, %v1489_v9  ;;  %v210_v15 = vld [vmem:[%s4657_s26 + $0x19] sm:$0xff]  ;;  %v1492_v17 = vld [vmem:[%s4657_s26 + $0x2b] sm:$0xff]  ;;  %v211_v19 = vld [vmem:[%s4657_s26 + $0x21] sm:$0xff]  ;;  %3863 = vmatpush3.bf16.msra.mxu1 %v4564_v6 }
  0x14   : > { %3864 = vmatprep.mubr.msk.bf16.mxu1 %vm294_vm0, %v243_v11  ;;  %v212_v20 = vld [vmem:[%s4657_s26 + $0x29] sm:$0xff]  ;;  %v1493_v21 = vld [vmem:[%s4657_s26 + $0x33] sm:$0xff]  ;;  %v1494_v22 = vld [vmem:[%s4657_s26 + $0x3b] sm:$0xff]  ;;  %v244_v23 = vpack.c.bf16 %v210_v15, %v209_v14  ;;  %v1526_v25 = vpack.c.bf16 %v1492_v17, %v1491_v16  ;;  %4039 = vmatpush3.bf16.msra.mxu0 %v4565_v10 }
  0x15   : > { %4040 = vmatprep.mubr.msk.bf16.mxu0 %vm294_vm0, %v1525_v13  ;;  %v245_v26 = vpack.c.bf16 %v212_v20, %v211_v19  ;;  %v1527_v27 = vpack.c.bf16 %v1494_v22, %v1493_v21  ;;  %3900 = vmatprep.subr.bf16.mxu1 %v4567_v24  ;;  %v213_v29 = vld [vmem:[%s4657_s26 + $0x31] sm:$0xff]  ;;  %v214_v30 = vld [vmem:[%s4657_s26 + $0x39] sm:$0xff]  ;;  %v1495_v31 = vld [vmem:[%s4657_s26 + $0x43] sm:$0xff] }
  0x16   : > { %4076 = vmatprep.subr.bf16.mxu0 %v4566_v18  ;;  %3865 = vmatmul.mubr.msk.bf16.vlgmr.msra.gmra.mrb[0].mxu1 %vm294_vm0, %v244_v23  ;;  %v1496_v32 = vld [vmem:[%s4657_s26 + $0x4b] sm:$0xff]  ;;  %v215_v33 = vld [vmem:[%s4657_s26 + $0x41] sm:$0xff]  ;;  %v1497_v35 = vld [vmem:[%s4657_s26 + $0x53] sm:$0xff]  ;;  %v246_v38 = vpack.c.bf16 %v214_v30, %v213_v29 }
  0x17   : > { %4041 = vmatmul.mubr.msk.bf16.vlgmr.msra.gmra.mrb[0].mxu0 %vm294_vm0, %v1526_v25  ;;  %3868 = vmatprep.mubr.msk.bf16.mxu1 %vm294_vm0, %v245_v26  ;;  %v216_v34 = vld [vmem:[%s4657_s26 + $0x49] sm:$0xff]  ;;  %v1498_v36 = vld [vmem:[%s4657_s26 + $0x5b] sm:$0xff]  ;;  %v1528_v39 = vpack.c.bf16 %v1496_v32, %v1495_v31  ;;  %v217_v44 = vld [vmem:[%s4657_s26 + $0x51] sm:$0xff] }
  0x18   : > { %4077 = vmatpush3.bf16.msra.mxu0 %v4566_v18  ;;  %4044 = vmatprep.mubr.msk.bf16.mxu0 %vm294_vm0, %v1527_v27  ;;  %v247_v40 = vpack.c.bf16 %v216_v34, %v215_v33  ;;  %v1529_v42 = vpack.c.bf16 %v1498_v36, %v1497_v35  ;;  %v218_v45 = vld [vmem:[%s4657_s26 + $0x59] sm:$0xff]  ;;  %v1499_v46 = vld [vmem:[%s4657_s26 + $0x63] sm:$0xff]  ;;  %v1500_v47 = vld [vmem:[%s4657_s26 + $0x6b] sm:$0xff] }
  0x19   : > { %3901 = vmatpush3.bf16.msra.mxu1 %v4567_v24  ;;  %4078 = vmatprep.subr.bf16.mxu0 %v4568_v28  ;;  %v219_v48 = vld [vmem:[%s4657_s26 + $0x61] sm:$0xff]  ;;  %v220_v49 = vld [vmem:[%s4657_s26 + $0x69] sm:$0xff]  ;;  %v1501_v50 = vld [vmem:[%s4657_s26 + $0x73] sm:$0xff]  ;;  %v248_v52 = vpack.c.bf16 %v218_v45, %v217_v44  ;;  %v1530_v54 = vpack.c.bf16 %v1500_v47, %v1499_v46 }
  0x1a   : > { %3902 = vmatprep.subr.bf16.mxu1 %v4570_v41  ;;  %v1502_v51 = vld [vmem:[%s4657_s26 + $0x7b] sm:$0xff]  ;;  %v249_v55 = vpack.c.bf16 %v220_v49, %v219_v48  ;;  %v221_v58 = vld [vmem:[%s4657_s26 + $0x71] sm:$0xff]  ;;  %v1503_v60 = vld [vmem:[%s4657_s26 + $0x83] sm:$0xff] }
  0x1b   : > { %v1531_v57 = vpack.c.bf16 %v1502_v51, %v1501_v50  ;;  %v222_v59 = vld [vmem:[%s4657_s26 + $0x79] sm:$0xff]  ;;  %v1504_v61 = vld [vmem:[%s4657_s26 + $0x8b] sm:$0xff]  ;;  %v223_v62 = vld [vmem:[%s4657_s26 + $0x81] sm:$0xff] }
  0x1c   : > { %4079 = vmatpush3.bf16.msra.mxu0 %v4568_v28  ;;  %v224_v63 = vld [vmem:[%s4657_s26 + $0x89] sm:$0xff]  ;;  %v1505_v0 = vld [vmem:[%s4657_s26 + $0x93] sm:$0xff]  ;;  %v1506_v2 = vld [vmem:[%s4657_s26 + $0x9b] sm:$0xff]  ;;  %v250_v3 = vpack.c.bf16 %v222_v59, %v221_v58  ;;  %v1532_v4 = vpack.c.bf16 %v1504_v61, %v1503_v60 }
  0x1d   : > { %4080 = vmatprep.subr.bf16.mxu0 %v4569_v37  ;;  %3903 = vmatpush3.bf16.msra.mxu1 %v4570_v41  ;;  %v251_v5 = vpack.c.bf16 %v224_v63, %v223_v62  ;;  %v4575_v6 = vld [vmem:[%s5436_s1 + $0x18] sm:$0xff]   ;;  %v1533_v7 = vpack.c.bf16 %v1506_v2, %v1505_v0  ;;  %v1507_v10 = vld [vmem:[%s4657_s26 + $0xa3] sm:$0xff]  ;;  %v1508_v11 = vld [vmem:[%s4657_s26 + $0xab] sm:$0xff] }
  0x1e   : > { %3869 = vmatmul.mubr.msk.bf16.gmra.mrb[4].mxu1 %vm294_vm0, %v246_v38  ;;  %3904 = vmatprep.subr.bf16.mxu1 %v4573_v56  ;;  %v225_v8 = vld [vmem:[%s4657_s26 + $0x91] sm:$0xff]  ;;  %v226_v9 = vld [vmem:[%s4657_s26 + $0x99] sm:$0xff]  ;;  %v227_v12 = vld [vmem:[%s4657_s26 + $0xa1] sm:$0xff]  ;;  %v1534_v17 = vpack.c.bf16 %v1508_v11, %v1507_v10 }
  0x1f   : > { %4045 = vmatmul.mubr.msk.bf16.gmra.mrb[4].mxu0 %vm294_vm0, %v1528_v39  ;;  %3872 = vmatprep.mubr.msk.bf16.mxu1 %vm294_vm0, %v247_v40  ;;  %v228_v13 = vld [vmem:[%s4657_s26 + $0xa9] sm:$0xff]  ;;  %v1843_v14 = vld [vmem:[%s4657_s26 + $0x14] sm:$0xff]  ;;  %v1844_v15 = vld [vmem:[%s4657_s26 + $0x1c] sm:$0xff]  ;;  %v252_v16 = vpack.c.bf16 %v226_v9, %v225_v8 }
  0x20   : > { %4048 = vmatprep.mubr.msk.bf16.mxu0 %vm294_vm0, %v1529_v42  ;;  %4081 = vmatpush3.bf16.msra.mxu0 %v4569_v37  ;;  %v253_v18 = vpack.c.bf16 %v228_v13, %v227_v12  ;;  %v1879_v19 = vpack.c.bf16 %v1844_v15, %v1843_v14  ;;  %v4760_v20 = vld [vmem:[%s5436_s1 + $0x40] sm:$0xff]   ;;  %v229_v21 = vld [vmem:[%s4657_s26 + $0xb1] sm:$0xff]  ;;  %v232_v26 = vld [vmem:[%s4657_s26 + $0xc9] sm:$0xff] }
  0x21   : > { %4082 = vmatprep.subr.bf16.mxu0 %v4571_v43  ;;  %3905 = vmatpush3.bf16.msra.mxu1 %v4573_v56  ;;  %v230_v22 = vld [vmem:[%s4657_s26 + $0xb9] sm:$0xff]  ;;  %v1845_v23 = vld [vmem:[%s4657_s26 + $0x24] sm:$0xff]  ;;  %v1846_v24 = vld [vmem:[%s4657_s26 + $0x2c] sm:$0xff] }
  0x22   : > { %3906 = vmatprep.subr.bf16.mxu1 %v4575_v6  ;;  %v231_v25 = vld [vmem:[%s4657_s26 + $0xc1] sm:$0xff]  ;;  %v1847_v27 = vld [vmem:[%s4657_s26 + $0x34] sm:$0xff]  ;;  %v254_v29 = vpack.c.bf16 %v230_v22, %v229_v21  ;;  %v4775_v30 = vpack.c.bf16 %v1846_v24, %v1845_v23  ;;  %v1850_v37 = vld [vmem:[%s4657_s26 + $0x4c] sm:$0xff] }
  0x23   : > { %v1848_v28 = vld [vmem:[%s4657_s26 + $0x3c] sm:$0xff]  ;;  %v255_v31 = vpack.c.bf16 %v232_v26, %v231_v25  ;;  %v4574_v33 = vld [vmem:[%s5436_s1 + $0xc8] sm:$0xff]   ;;  %v233_v34 = vld [vmem:[%s4657_s26 + $0xd1] sm:$0xff] }
  0x24   : > { %4083 = vmatpush3.bf16.msra.mxu0 %v4571_v43  ;;  %v4777_v32 = vpack.c.bf16 %v1848_v28, %v1847_v27  ;;  %v234_v35 = vld [vmem:[%s4657_s26 + $0xd9] sm:$0xff]  ;;  %v1849_v36 = vld [vmem:[%s4657_s26 + $0x44] sm:$0xff]  ;;  %v4576_v42 = vld [vmem:[%s5436_s1 + $0xd0] sm:$0xff]  }
  0x25   : > { %4120 = vmatprep.subr.bf16.mxu0 %v4724_v53  ;;  %3907 = vmatpush3.bf16.msra.mxu1 %v4575_v6  ;;  %v235_v38 = vld [vmem:[%s4657_s26 + $0xe1] sm:$0xff]  ;;  %v236_v39 = vld [vmem:[%s4657_s26 + $0xe9] sm:$0xff]  ;;  %v1851_v40 = vld [vmem:[%s4657_s26 + $0x54] sm:$0xff]  ;;  %v256_v43 = vpack.c.bf16 %v234_v35, %v233_v34  ;;  %v4800_v44 = vpack.c.bf16 %v1850_v37, %v1849_v36 }
  0x26   : > { %3873 = vmatmul.mubr.msk.bf16.gmra.mrb[8].mxu1 %vm294_vm0, %v248_v52  ;;  %3944 = vmatprep.subr.bf16.mxu1 %v4760_v20  ;;  %v1852_v41 = vld [vmem:[%s4657_s26 + $0x5c] sm:$0xff]  ;;  %v257_v45 = vpack.c.bf16 %v236_v39, %v235_v38  ;;  %v237_v48 = vld [vmem:[%s4657_s26 + $0xf1] sm:$0xff]  ;;  %v1853_v50 = vld [vmem:[%s4657_s26 + $0x64] sm:$0xff] }
  0x27   : > { %4049 = vmatmul.mubr.msk.bf16.gmra.mrb[8].mxu0 %vm294_vm0, %v1530_v54  ;;  %3876 = vmatprep.mubr.msk.bf16.mxu1 %vm294_vm0, %v249_v55  ;;  %v4802_v46 = vpack.c.bf16 %v1852_v41, %v1851_v40  ;;  %v4578_v47 = vld [vmem:[%s5436_s1 + $0xd8] sm:$0xff]   ;;  %v1854_v51 = vld [vmem:[%s4657_s26 + $0x6c] sm:$0xff]  ;;  %v239_v52 = vld [vmem:[%s4657_s26 + $0x101] sm:$0xff] }
  0x28   : > { %4052 = vmatprep.mubr.msk.bf16.mxu0 %vm294_vm0, %v1531_v57  ;;  %v238_v49 = vld [vmem:[%s4657_s26 + $0xf9] sm:$0xff]  ;;  %v4826_v58 = vpack.c.bf16 %v1854_v51, %v1853_v50  ;;  %v241_v61 = vld [vmem:[%s4657_s26 + $0x111] sm:$0xff]  ;;  %v1857_v63 = vld [vmem:[%s4657_s26 + $0x84] sm:$0xff] }
  0x29   : > { %v1855_v54 = vld [vmem:[%s4657_s26 + $0x74] sm:$0xff]  ;;  %v1856_v55 = vld [vmem:[%s4657_s26 + $0x7c] sm:$0xff]  ;;  %v258_v57 = vpack.c.bf16 %v238_v49, %v237_v48  ;;  %v1858_v0 = vld [vmem:[%s4657_s26 + $0x8c] sm:$0xff] }
  0x2a   : > { %v4824_v56 = vld [vmem:[%s5436_s1 + $0xe0] sm:$0xff]   ;;  %v4828_v60 = vpack.c.bf16 %v1856_v55, %v1855_v54  ;;  %v147_v10 = vld [vmem:[%s4657_s26 + $0x10] sm:$0xff]  ;;  %v148_v11 = vld [vmem:[%s4657_s26 + $0x18] sm:$0xff] }
  0x2b   : > { %v242_v62 = vld [vmem:[%s4657_s26 + $0x119] sm:$0xff]  ;;  %v1861_v12 = vld [vmem:[%s4657_s26 + $0xa4] sm:$0xff]  ;;  %v1862_v13 = vld [vmem:[%s4657_s26 + $0xac] sm:$0xff] }
  0x2c   : > { %v145_v2 = vld [vmem:[%s4657_s26] sm:$0xff]  ;;  %v260_v6 = vpack.c.bf16 %v242_v62, %v241_v61  ;;  %v150_v15 = vld [vmem:[%s4657_s26 + $0x28] sm:$0xff]  ;;  %v151_v23 = vld [vmem:[%s4657_s26 + $0x30] sm:$0xff] }
  0x2d   : > { %v149_v14 = vld [vmem:[%s4657_s26 + $0x20] sm:$0xff]  ;;  %v4579_v24 = vld [vmem:[%s5436_s1 + $0x48] sm:$0xff]   ;;  %v152_v25 = vld [vmem:[%s4657_s26 + $0x38] sm:$0xff] }
  0x2e   : > { %3877 = vmatmul.mubr.msk.bf16.gmra.mrb[12].mxu1 %vm294_vm0, %v250_v3  ;;  %v146_v3 = vld [vmem:[%s4657_s26 + $0x8] sm:$0xff]  ;;  %v183_v21 = vpack.c.bf16 %v150_v15, %v149_v14  ;;  %v153_v28 = vld [vmem:[%s4657_s26 + $0x40] sm:$0xff]  ;;  %v4581_v34 = vld [vmem:[%s5436_s1 + $0x50] sm:$0xff]   ;;  %v184_v35 = vpack.c.bf16 %v152_v25, %v151_v23 }
  0x2f   : > { %4053 = vmatmul.mubr.msk.bf16.gmra.mrb[12].mxu0 %vm294_vm0, %v1532_v4  ;;  %3880 = vmatprep.mubr.msk.bf16.mxu1 %vm294_vm0, %v251_v5  ;;  %v1859_v4 = vld [vmem:[%s4657_s26 + $0x94] sm:$0xff]  ;;  %v1860_v5 = vld [vmem:[%s4657_s26 + $0x9c] sm:$0xff]  ;;  %v181_v8 = vpack.c.bf16 %v146_v3, %v145_v2  ;;  %v1865_v26 = vld [vmem:[%s4657_s26 + $0xc4] sm:$0xff] }
  0x30   : > { %4056 = vmatprep.mubr.msk.bf16.mxu0 %vm294_vm0, %v1533_v7  ;;  %v4845_v7 = vpack.c.bf16 %v1858_v0, %v1857_v63  ;;  %v4847_v9 = vpack.c.bf16 %v1860_v5, %v1859_v4  ;;  %v1866_v27 = vld [vmem:[%s4657_s26 + $0xcc] sm:$0xff]  ;;  %v4583_v38 = vld [vmem:[%s5436_s1 + $0x58] sm:$0xff]   ;;  %v1869_v41 = vld [vmem:[%s4657_s26 + $0xe4] sm:$0xff] }
  0x31   : > { %v4888_v36 = vpack.c.bf16 %v1866_v27, %v1865_v26  ;;  %v155_v39 = vld [vmem:[%s4657_s26 + $0x50] sm:$0xff]  ;;  %v156_v40 = vld [vmem:[%s4657_s26 + $0x58] sm:$0xff]  ;;  %v4912_v49 = vld [vmem:[%s5436_s1 + $0x60] sm:$0xff]  }
  0x32   : > { %v1872_v48 = vld [vmem:[%s4657_s26 + $0xfc] sm:$0xff]  ;;  %v186_v50 = vpack.c.bf16 %v156_v40, %v155_v39  ;;  %v159_v54 = vld [vmem:[%s4657_s26 + $0x70] sm:$0xff]  ;;  %v162_v62 = vld [vmem:[%s4657_s26 + $0x88] sm:$0xff] }
  0x33   : > { %v160_v55 = vld [vmem:[%s4657_s26 + $0x78] sm:$0xff]  ;;  %v161_v61 = vld [vmem:[%s4657_s26 + $0x80] sm:$0xff]  ;;  %v170_v23 = vld [vmem:[%s4657_s26 + $0xc8] sm:$0xff] }
  0x34   : > { %v1875_v63 = vld [vmem:[%s4657_s26 + $0x114] sm:$0xff]  ;;  %v1876_v0 = vld [vmem:[%s4657_s26 + $0x11c] sm:$0xff]  ;;  %v188_v2 = vpack.c.bf16 %v160_v55, %v159_v54  ;;  %v189_v4 = vpack.c.bf16 %v162_v62, %v161_v61  ;;  %v4582_v26 = vld [vmem:[%s5436_s1 + $0xe8] sm:$0xff]  }
  0x35   : > { %v4935_v5 = vpack.c.bf16 %v1876_v0, %v1875_v63  ;;  %v171_v27 = vld [vmem:[%s4657_s26 + $0xd0] sm:$0xff]  ;;  %v180_v40 = vld [vmem:[%s4657_s26 + $0x118] sm:$0xff]  ;;  %v4587_v54 = vld [vmem:[%s5436_s1 + $0x68] sm:$0xff]  }
  0x36   : > { %3881 = vmatmul.mubr.msk.bf16.gmra.mrb[16].mxu1 %vm294_vm0, %v252_v16  ;;  %v1863_v16 = vld [vmem:[%s4657_s26 + $0xb4] sm:$0xff]  ;;  %v789_v55 = vld [vmem:[%s4657_s26 + $0x42] sm:$0xff]  ;;  %v794_v0 = vld [vmem:[%s4657_s26 + $0x6a] sm:$0xff] }
  0x37   : > { %4057 = vmatmul.mubr.msk.bf16.gmra.mrb[16].mxu0 %vm294_vm0, %v1534_v17  ;;  %3884 = vmatprep.mubr.msk.bf16.mxu1 %vm294_vm0, %v253_v18  ;;  %v1864_v17 = vld [vmem:[%s4657_s26 + $0xbc] sm:$0xff]  ;;  %v182_v18 = vpack.c.bf16 %v148_v11, %v147_v10  ;;  %v1877_v10 = vld [vmem:[%s4657_s26 + $0x124] sm:$0xff]  ;;  %v1878_v11 = vld [vmem:[%s4657_s26 + $0x12c] sm:$0xff] }
  0x38   : > { %4084 = vmatprep.mubr.msk.bf16.mxu0 %vm294_vm0, %v1879_v19  ;;  %v4863_v19 = vpack.c.bf16 %v1862_v13, %v1861_v12  ;;  %v4865_v22 = vpack.c.bf16 %v1864_v17, %v1863_v16  ;;  %v165_v12 = vld [vmem:[%s4657_s26 + $0xa0] sm:$0xff]  ;;  %v166_v13 = vld [vmem:[%s4657_s26 + $0xa8] sm:$0xff]  ;;  %v4949_v15 = vpack.c.bf16 %v1878_v11, %v1877_v10  ;;  %v167_v17 = vld [vmem:[%s4657_s26 + $0xb0] sm:$0xff] }
  0x39   : > { %v191_v16 = vpack.c.bf16 %v166_v13, %v165_v12  ;;  %v792_v62 = vld [vmem:[%s4657_s26 + $0x5a] sm:$0xff]  ;;  %v793_v63 = vld [vmem:[%s4657_s26 + $0x62] sm:$0xff] }
  0x3a   : > { %v800_v11 = vld [vmem:[%s4657_s26 + $0x9a] sm:$0xff]  ;;  %v801_v13 = vld [vmem:[%s4657_s26 + $0xa2] sm:$0xff] }
  0x3b   : > { %v2232_v12 = vld [vmem:[%s4657_s26 + $0x13c] sm:$0xff] }
  0x3e   : > { %3885 = vmatmul.mubr.msk.bf16.gmra.mrb[20].mxu1 %vm294_vm0, %v254_v29  ;;  %v154_v29 = vld [vmem:[%s4657_s26 + $0x48] sm:$0xff] }
  0x3f   : > { %4085 = vmatmul.mubr.msk.bf16.vlgmr.msra.gmra.mrb[0].mxu0 %vm294_vm0, %v4775_v30  ;;  %3888 = vmatprep.mubr.msk.bf16.mxu1 %vm294_vm0, %v255_v31  ;;  %v1867_v31 = vld [vmem:[%s4657_s26 + $0xd4] sm:$0xff]  ;;  %v185_v37 = vpack.c.bf16 %v154_v29, %v153_v28  ;;  %v174_v29 = vld [vmem:[%s4657_s26 + $0xe8] sm:$0xff] }
  0x40   : > { %4121 = vmatpush3.bf16.msra.mxu0 %v4724_v53  ;;  %4088 = vmatprep.mubr.msk.bf16.mxu0 %vm294_vm0, %v4777_v32  ;;  %v240_v53 = vld [vmem:[%s4657_s26 + $0x109] sm:$0xff]  ;;  %v172_v28 = vld [vmem:[%s4657_s26 + $0xd8] sm:$0xff] }
  0x41   : > { %4122 = vmatprep.subr.bf16.mxu0 %v4574_v33  ;;  %v259_v59 = vpack.c.bf16 %v240_v53, %v239_v52 }
  0x44   : > { %4123 = vmatpush3.bf16.msra.mxu0 %v4574_v33  ;;  %v1868_v33 = vld [vmem:[%s4657_s26 + $0xdc] sm:$0xff] }
  0x45   : > { %4124 = vmatprep.subr.bf16.mxu0 %v4576_v42 }
  0x46   : > { %3889 = vmatmul.mubr.msk.bf16.gmra.mrb[24].mxu1 %vm294_vm0, %v256_v43  ;;  %v157_v43 = vld [vmem:[%s4657_s26 + $0x60] sm:$0xff] }
  0x47   : > { %4089 = vmatmul.mubr.msk.bf16.gmra.mrb[4].mxu0 %vm294_vm0, %v4800_v44  ;;  %3892 = vmatprep.mubr.msk.bf16.mxu1 %vm294_vm0, %v257_v45  ;;  %v158_v45 = vld [vmem:[%s4657_s26 + $0x68] sm:$0xff] }
  0x48   : > { %4092 = vmatprep.mubr.msk.bf16.mxu0 %vm294_vm0, %v4802_v46  ;;  %4125 = vmatpush3.bf16.msra.mxu0 %v4576_v42  ;;  %v1870_v42 = vld [vmem:[%s4657_s26 + $0xec] sm:$0xff]  ;;  %v187_v52 = vpack.c.bf16 %v158_v45, %v157_v43 }
  0x49   : > { %4126 = vmatprep.subr.bf16.mxu0 %v4578_v47  ;;  %v4914_v51 = vpack.c.bf16 %v1870_v42, %v1869_v41  ;;  %v781_v41 = vld [vmem:[%s4657_s26 + $0x2] sm:$0xff]  ;;  %v782_v42 = vld [vmem:[%s4657_s26 + $0xa] sm:$0xff] }
  0x4a   : > { %v817_v45 = vpack.c.bf16 %v782_v42, %v781_v41  ;;  %v2560_v41 = vld [vmem:[%s4657_s26 + $0x6d] sm:$0xff] }
  0x4b   : > { %v4592_v42 = vld [vmem:[%s5436_s1 + $0x110] sm:$0xff]  }
  0x4c   : > { %4127 = vmatpush3.bf16.msra.mxu0 %v4578_v47  ;;  %v1871_v47 = vld [vmem:[%s4657_s26 + $0xf4] sm:$0xff] }
  0x4d   : > { %4164 = vmatprep.subr.bf16.mxu0 %v4824_v56  ;;  %v4916_v53 = vpack.c.bf16 %v1872_v48, %v1871_v47  ;;  %v784_v47 = vld [vmem:[%s4657_s26 + $0x1a] sm:$0xff]  ;;  %v786_v48 = vld [vmem:[%s4657_s26 + $0x2a] sm:$0xff] }
  0x4e   : > { %3893 = vmatmul.mubr.msk.bf16.gmra.mrb[28].mxu1 %vm294_vm0, %v258_v57  ;;  %v1873_v57 = vld [vmem:[%s4657_s26 + $0x104] sm:$0xff] }
  0x4f   : > { %4093 = vmatmul.mubr.msk.bf16.gmra.mrb[8].mxu0 %vm294_vm0, %v4826_v58  ;;  %3896 = vmatprep.mubr.msk.bf16.mxu1 %vm294_vm0, %v259_v59  ;;  %v1874_v59 = vld [vmem:[%s4657_s26 + $0x10c] sm:$0xff] }
  0x50   : > { %4096 = vmatprep.mubr.msk.bf16.mxu0 %vm294_vm0, %v4828_v60  ;;  %v4933_v3 = vpack.c.bf16 %v1874_v59, %v1873_v57  ;;  %v790_v57 = vld [vmem:[%s4657_s26 + $0x4a] sm:$0xff] }
  0x51   : > { %v5042_v61 = vpack.c.bf16 %v790_v57, %v789_v55  ;;  %v814_v55 = vld [vmem:[%s4657_s26 + $0x10a] sm:$0xff] }
  0x52   : > { %v2563_v57 = vld [vmem:[%s4657_s26 + $0x85] sm:$0xff] }
  0x56   : > { %3897 = vmatmul.mubr.msk.bf16.gmra.mrb[32].mxu1 %vm294_vm0, %v260_v6  ;;  %v163_v6 = vld [vmem:[%s4657_s26 + $0x90] sm:$0xff] }
  0x57   : > { %4097 = vmatmul.mubr.msk.bf16.gmra.mrb[12].mxu0 %vm294_vm0, %v4845_v7  ;;  %3908 = vmatprep.mubr.msk.bf16.mxu1 %vm294_vm0, %v181_v8  ;;  %v164_v8 = vld [vmem:[%s4657_s26 + $0x98] sm:$0xff] }
  0x58   : > { %4100 = vmatprep.mubr.msk.bf16.mxu0 %vm294_vm0, %v4847_v9  ;;  %v190_v14 = vpack.c.bf16 %v164_v8, %v163_v6  ;;  %v798_v6 = vld [vmem:[%s4657_s26 + $0x8a] sm:$0xff] }
  0x5e   : > { %3909 = vmatmul.mubr.msk.bf16.vlgmr.msra.gmra.mrb[0].mxu1 %vm294_vm0, %v182_v18  ;;  %v168_v18 = vld [vmem:[%s4657_s26 + $0xb8] sm:$0xff] }
  0x5f   : > { %4101 = vmatmul.mubr.msk.bf16.gmra.mrb[16].mxu0 %vm294_vm0, %v4863_v19  ;;  %3912 = vmatprep.mubr.msk.bf16.mxu1 %vm294_vm0, %v183_v21  ;;  %v169_v21 = vld [vmem:[%s4657_s26 + $0xc0] sm:$0xff] }
  0x60   : > { %4104 = vmatprep.mubr.msk.bf16.mxu0 %vm294_vm0, %v4865_v22  ;;  %3945 = vmatpush3.bf16.msra.mxu1 %v4760_v20  ;;  %v4890_v20 = vpack.c.bf16 %v1868_v33, %v1867_v31  ;;  %v193_v25 = vpack.c.bf16 %v170_v23, %v169_v21  ;;  %v194_v31 = vpack.c.bf16 %v172_v28, %v171_v27  ;;  %v805_v27 = vld [vmem:[%s4657_s26 + $0xc2] sm:$0xff]  ;;  %v806_v28 = vld [vmem:[%s4657_s26 + $0xca] sm:$0xff] }
  0x61   : > { %3946 = vmatprep.subr.bf16.mxu1 %v4579_v24 }
  0x64   : > { %3947 = vmatpush3.bf16.msra.mxu1 %v4579_v24  ;;  %v192_v24 = vpack.c.bf16 %v168_v18, %v167_v17 }
  0x65   : > { %3948 = vmatprep.subr.bf16.mxu1 %v4581_v34 }
  0x66   : > { %3913 = vmatmul.mubr.msk.bf16.gmra.mrb[4].mxu1 %vm294_vm0, %v184_v35  ;;  %v177_v35 = vld [vmem:[%s4657_s26 + $0x100] sm:$0xff] }
  0x67   : > { %4105 = vmatmul.mubr.msk.bf16.gmra.mrb[20].mxu0 %vm294_vm0, %v4888_v36  ;;  %3916 = vmatprep.mubr.msk.bf16.mxu1 %vm294_vm0, %v185_v37  ;;  %v178_v37 = vld [vmem:[%s4657_s26 + $0x108] sm:$0xff] }
  0x68   : > { %4108 = vmatprep.mubr.msk.bf16.mxu0 %vm294_vm0, %v4890_v20  ;;  %3949 = vmatpush3.bf16.msra.mxu1 %v4581_v34  ;;  %v176_v34 = vld [vmem:[%s4657_s26 + $0xf8] sm:$0xff]  ;;  %v197_v39 = vpack.c.bf16 %v178_v37, %v177_v35 }
  0x69   : > { %3950 = vmatprep.subr.bf16.mxu1 %v4583_v38  ;;  %v808_v35 = vld [vmem:[%s4657_s26 + $0xda] sm:$0xff] }
  0x6a   : > { %v2557_v37 = vld [vmem:[%s4657_s26 + $0x55] sm:$0xff] }
  0x6c   : > { %3951 = vmatpush3.bf16.msra.mxu1 %v4583_v38  ;;  %v4994_v38 = vld [vmem:[%s5436_s1 + $0x100] sm:$0xff]  }
  0x6d   : > { %3988 = vmatprep.subr.bf16.mxu1 %v4912_v49 }
  0x6e   : > { %3917 = vmatmul.mubr.msk.bf16.gmra.mrb[8].mxu1 %vm294_vm0, %v186_v50 }
  0x6f   : > { %4109 = vmatmul.mubr.msk.bf16.gmra.mrb[24].mxu0 %vm294_vm0, %v4914_v51  ;;  %3920 = vmatprep.mubr.msk.bf16.mxu1 %vm294_vm0, %v187_v52 }
  0x70   : > { %4112 = vmatprep.mubr.msk.bf16.mxu0 %vm294_vm0, %v4916_v53 }
  0x76   : > { %3921 = vmatmul.mubr.msk.bf16.gmra.mrb[12].mxu1 %vm294_vm0, %v188_v2 }
  0x77   : > { %4113 = vmatmul.mubr.msk.bf16.gmra.mrb[28].mxu0 %vm294_vm0, %v4933_v3  ;;  %3924 = vmatprep.mubr.msk.bf16.mxu1 %vm294_vm0, %v189_v4  ;;  %v5061_v4 = vpack.c.bf16 %v794_v0, %v793_v63  ;;  %v815_v0 = vld [vmem:[%s4657_s26 + $0x112] sm:$0xff] }
  0x78   : > { %4116 = vmatprep.mubr.msk.bf16.mxu0 %vm294_vm0, %v4935_v5 }
  0x7e   : > { %3925 = vmatmul.mubr.msk.bf16.gmra.mrb[16].mxu1 %vm294_vm0, %v190_v14  ;;  %v802_v14 = vld [vmem:[%s4657_s26 + $0xaa] sm:$0xff] }
  0x7f   : > { %4117 = vmatmul.mubr.msk.bf16.gmra.mrb[32].mxu0 %vm294_vm0, %v4949_v15  ;;  %3928 = vmatprep.mubr.msk.bf16.mxu1 %vm294_vm0, %v191_v16  ;;  %v2551_v16 = vld [vmem:[%s4657_s26 + $0x25] sm:$0xff]  ;;  %v5098_v21 = vpack.c.bf16 %v802_v14, %v801_v13  ;;  %v2569_v13 = vld [vmem:[%s4657_s26 + $0xb5] sm:$0xff]  ;;  %v2570_v14 = vld [vmem:[%s4657_s26 + $0xbd] sm:$0xff] }
  0x80   : > { %4128 = vmatprep.mubr.msk.bf16.mxu0 %vm294_vm0, %v4775_v30  ;;  %v173_v30 = vld [vmem:[%s4657_s26 + $0xe0] sm:$0xff] }
  0x81   : > { %v195_v33 = vpack.c.bf16 %v174_v29, %v173_v30  ;;  %v2555_v30 = vld [vmem:[%s4657_s26 + $0x45] sm:$0xff]  ;;  %v2556_v29 = vld [vmem:[%s4657_s26 + $0x4d] sm:$0xff] }
  0x86   : > { %3929 = vmatmul.mubr.msk.bf16.gmra.mrb[20].mxu1 %vm294_vm0, %v192_v24  ;;  %v804_v24 = vld [vmem:[%s4657_s26 + $0xba] sm:$0xff] }
  0x87   : > { %4129 = vmatmul.mubr.msk.bf16.vlgmr.msra.gmra.mrb[0].mxu0 %vm294_vm0, %v4777_v32  ;;  %3932 = vmatprep.mubr.msk.bf16.mxu1 %vm294_vm0, %v193_v25  ;;  %v4584_v32 = vld [vmem:[%s5436_s1 + $0xf0] sm:$0xff]  }
  0x88   : > { %4165 = vmatpush3.bf16.msra.mxu0 %v4824_v56  ;;  %4132 = vmatprep.mubr.msk.bf16.mxu0 %vm294_vm0, %v4800_v44  ;;  %v4586_v56 = vld [vmem:[%s5436_s1 + $0xf8] sm:$0xff]   ;;  %v175_v44 = vld [vmem:[%s4657_s26 + $0xf0] sm:$0xff] }
  0x89   : > { %4166 = vmatprep.subr.bf16.mxu0 %v4582_v26  ;;  %v2553_v25 = vld [vmem:[%s4657_s26 + $0x35] sm:$0xff] }
  0x8c   : > { %4167 = vmatpush3.bf16.msra.mxu0 %v4582_v26  ;;  %v2554_v26 = vld [vmem:[%s4657_s26 + $0x3d] sm:$0xff] }
  0x8d   : > { %4168 = vmatprep.subr.bf16.mxu0 %v4584_v32 }
  0x8e   : > { %3933 = vmatmul.mubr.msk.bf16.gmra.mrb[24].mxu1 %vm294_vm0, %v194_v31  ;;  %v2588_v31 = vpack.c.bf16 %v2554_v26, %v2553_v25  ;;  %v2575_v25 = vld [vmem:[%s4657_s26 + $0xe5] sm:$0xff]  ;;  %v2576_v26 = vld [vmem:[%s4657_s26 + $0xed] sm:$0xff] }
  0x8f   : > { %4133 = vmatmul.mubr.msk.bf16.gmra.mrb[4].mxu0 %vm294_vm0, %v4802_v46  ;;  %3936 = vmatprep.mubr.msk.bf16.mxu1 %vm294_vm0, %v195_v33  ;;  %v196_v46 = vpack.c.bf16 %v176_v34, %v175_v44  ;;  %v5116_v33 = vpack.c.bf16 %v806_v28, %v805_v27  ;;  %v4590_v44 = vld [vmem:[%s5436_s1 + $0x108] sm:$0xff]   ;;  %v807_v34 = vld [vmem:[%s4657_s26 + $0xd2] sm:$0xff]  ;;  %v2599_v27 = vpack.c.bf16 %v2576_v26, %v2575_v25 }
  0x90   : > { %4136 = vmatprep.mubr.msk.bf16.mxu0 %vm294_vm0, %v4826_v58  ;;  %4169 = vmatpush3.bf16.msra.mxu0 %v4584_v32  ;;  %v179_v58 = vld [vmem:[%s4657_s26 + $0x110] sm:$0xff] }
  0x91   : > { %4170 = vmatprep.subr.bf16.mxu0 %v4586_v56  ;;  %v198_v43 = vpack.c.bf16 %v180_v40, %v179_v58  ;;  %v810_v58 = vld [vmem:[%s4657_s26 + $0xea] sm:$0xff] }
  0x92   : > { %v2559_v40 = vld [vmem:[%s4657_s26 + $0x65] sm:$0xff]  ;;  %v4596_v28 = vld [vmem:[%s5436_s1 + $0x90] sm:$0xff]  }
  0x94   : > { %4171 = vmatpush3.bf16.msra.mxu0 %v4586_v56  ;;  %v2589_v56 = vpack.c.bf16 %v2556_v29, %v2555_v30  ;;  %v2577_v30 = vld [vmem:[%s4657_s26 + $0xf5] sm:$0xff]  ;;  %v2578_v29 = vld [vmem:[%s4657_s26 + $0xfd] sm:$0xff] }
  0x95   : > { %4208 = vmatprep.subr.bf16.mxu0 %v4994_v38 }
  0x96   : > { %3937 = vmatmul.mubr.msk.bf16.gmra.mrb[28].mxu1 %vm294_vm0, %v196_v46  ;;  %v2558_v46 = vld [vmem:[%s4657_s26 + $0x5d] sm:$0xff] }
  0x97   : > { %4137 = vmatmul.mubr.msk.bf16.gmra.mrb[8].mxu0 %vm294_vm0, %v4828_v60  ;;  %3940 = vmatprep.mubr.msk.bf16.mxu1 %vm294_vm0, %v197_v39  ;;  %v783_v60 = vld [vmem:[%s4657_s26 + $0x12] sm:$0xff]  ;;  %v809_v39 = vld [vmem:[%s4657_s26 + $0xe2] sm:$0xff] }
  0x98   : > { %4140 = vmatprep.mubr.msk.bf16.mxu0 %vm294_vm0, %v4845_v7  ;;  %v785_v7 = vld [vmem:[%s4657_s26 + $0x22] sm:$0xff]  ;;  %v5017_v50 = vpack.c.bf16 %v784_v47, %v783_v60  ;;  %v2591_v60 = vpack.c.bf16 %v2560_v41, %v2559_v40  ;;  %v4593_v47 = vld [vmem:[%s5436_s1 + $0x118] sm:$0xff]   ;;  %v2906_v41 = vld [vmem:[%s4657_s26 + $0x2e] sm:$0xff] }
  0x99   : > { %v5019_v52 = vpack.c.bf16 %v786_v48, %v785_v7  ;;  %v811_v7 = vld [vmem:[%s4657_s26 + $0xf2] sm:$0xff]  ;;  %v812_v48 = vld [vmem:[%s4657_s26 + $0xfa] sm:$0xff]  ;;  %v2905_v40 = vld [vmem:[%s4657_s26 + $0x26] sm:$0xff] }
  0x9e   : > { %3941 = vmatmul.mubr.msk.bf16.gmra.mrb[32].mxu1 %vm294_vm0, %v198_v43  ;;  %v5139_v43 = vpack.c.bf16 %v808_v35, %v807_v34  ;;  %v2582_v35 = vld [vmem:[%s4657_s26 + $0x11d] sm:$0xff] }
  0x9f   : > { %4141 = vmatmul.mubr.msk.bf16.gmra.mrb[12].mxu0 %vm294_vm0, %v4847_v9  ;;  %3952 = vmatprep.mubr.msk.bf16.mxu1 %vm294_vm0, %v817_v45  ;;  %v787_v9 = vld [vmem:[%s4657_s26 + $0x32] sm:$0xff]  ;;  %v5141_v45 = vpack.c.bf16 %v810_v58, %v809_v39 }
  0xa0   : > { %4144 = vmatprep.mubr.msk.bf16.mxu0 %vm294_vm0, %v4863_v19  ;;  %v788_v19 = vld [vmem:[%s4657_s26 + $0x3a] sm:$0xff] }
  0xa1   : > { %v5040_v59 = vpack.c.bf16 %v788_v19, %v787_v9  ;;  %v2562_v9 = vld [vmem:[%s4657_s26 + $0x7d] sm:$0xff] }
  0xa2   : > { %v813_v19 = vld [vmem:[%s4657_s26 + $0x102] sm:$0xff] }
  0xa6   : > { %3953 = vmatmul.mubr.msk.bf16.vlgmr.msra.gmra.mrb[0].mxu1 %vm294_vm0, %v5017_v50 }
  0xa7   : > { %4145 = vmatmul.mubr.msk.bf16.gmra.mrb[16].mxu0 %vm294_vm0, %v4865_v22  ;;  %3956 = vmatprep.mubr.msk.bf16.mxu1 %vm294_vm0, %v5019_v52  ;;  %v4589_v22 = vld [vmem:[%s5436_s1 + $0x70] sm:$0xff]  }
  0xa8   : > { %4148 = vmatprep.mubr.msk.bf16.mxu0 %vm294_vm0, %v4888_v36  ;;  %3989 = vmatpush3.bf16.msra.mxu1 %v4912_v49  ;;  %v4591_v36 = vld [vmem:[%s5436_s1 + $0x78] sm:$0xff]  }
  0xa9   : > { %3990 = vmatprep.subr.bf16.mxu1 %v4587_v54  ;;  %v791_v49 = vld [vmem:[%s4657_s26 + $0x52] sm:$0xff] }
  0xaa   : > { %v5059_v2 = vpack.c.bf16 %v792_v62, %v791_v49  ;;  %v5162_v62 = vpack.c.bf16 %v814_v55, %v813_v19 }
  0xac   : > { %3991 = vmatpush3.bf16.msra.mxu1 %v4587_v54  ;;  %v2561_v54 = vld [vmem:[%s4657_s26 + $0x75] sm:$0xff] }
  0xad   : > { %3992 = vmatprep.subr.bf16.mxu1 %v4589_v22  ;;  %v2592_v49 = vpack.c.bf16 %v2562_v9, %v2561_v54  ;;  %v2913_v54 = vld [vmem:[%s4657_s26 + $0x66] sm:$0xff]  ;;  %v2914_v9 = vld [vmem:[%s4657_s26 + $0x6e] sm:$0xff] }
  0xae   : > { %3957 = vmatmul.mubr.msk.bf16.gmra.mrb[4].mxu1 %vm294_vm0, %v5040_v59  ;;  %v2945_v55 = vpack.c.bf16 %v2914_v9, %v2913_v54 }
  0xaf   : > { %4149 = vmatmul.mubr.msk.bf16.gmra.mrb[20].mxu0 %vm294_vm0, %v4890_v20  ;;  %3960 = vmatprep.mubr.msk.bf16.mxu1 %vm294_vm0, %v5042_v61  ;;  %v795_v20 = vld [vmem:[%s4657_s26 + $0x72] sm:$0xff] }
  0xb0   : > { %4152 = vmatprep.mubr.msk.bf16.mxu0 %vm294_vm0, %v4914_v51  ;;  %3993 = vmatpush3.bf16.msra.mxu1 %v4589_v22  ;;  %v796_v51 = vld [vmem:[%s4657_s26 + $0x7a] sm:$0xff]  ;;  %v2564_v22 = vld [vmem:[%s4657_s26 + $0x8d] sm:$0xff] }
  0xb1   : > { %3994 = vmatprep.subr.bf16.mxu1 %v4591_v36  ;;  %v5076_v8 = vpack.c.bf16 %v796_v51, %v795_v20  ;;  %v2593_v63 = vpack.c.bf16 %v2564_v22, %v2563_v57  ;;  %v816_v20 = vld [vmem:[%s4657_s26 + $0x11a] sm:$0xff]  ;;  %v2917_v57 = vld [vmem:[%s4657_s26 + $0x86] sm:$0xff]  ;;  %v2918_v22 = vld [vmem:[%s4657_s26 + $0x8e] sm:$0xff] }
  0xb2   : > { %v2565_v51 = vld [vmem:[%s4657_s26 + $0x95] sm:$0xff] }
  0xb4   : > { %3995 = vmatpush3.bf16.msra.mxu1 %v4591_v36  ;;  %v5160_v36 = vpack.c.bf16 %v812_v48, %v811_v7 }
  0xb5   : > { %4252 = vmatprep.subr.bf16.mxu1 %v4635_v1  ;;  %v797_v1 = vld [vmem:[%s4657_s26 + $0x82] sm:$0xff] }
  0xb6   : > { %3961 = vmatmul.mubr.msk.bf16.gmra.mrb[8].mxu1 %vm294_vm0, %v5059_v2  ;;  %v5078_v10 = vpack.c.bf16 %v798_v6, %v797_v1  ;;  %v2566_v1 = vld [vmem:[%s4657_s26 + $0x9d] sm:$0xff]  ;;  %v2567_v6 = vld [vmem:[%s4657_s26 + $0xa5] sm:$0xff] }
  0xb7   : > { %4153 = vmatmul.mubr.msk.bf16.gmra.mrb[24].mxu0 %vm294_vm0, %v4916_v53  ;;  %3964 = vmatprep.mubr.msk.bf16.mxu1 %vm294_vm0, %v5061_v4  ;;  %v799_v53 = vld [vmem:[%s4657_s26 + $0x92] sm:$0xff] }
  0xb8   : > { %4156 = vmatprep.mubr.msk.bf16.mxu0 %vm294_vm0, %v4933_v3  ;;  %v2231_v3 = vld [vmem:[%s4657_s26 + $0x134] sm:$0xff]  ;;  %v5096_v17 = vpack.c.bf16 %v800_v11, %v799_v53  ;;  %v5176_v11 = vpack.c.bf16 %v816_v20, %v815_v0  ;;  %v2920_v20 = vld [vmem:[%s4657_s26 + $0x9e] sm:$0xff] }
  0xb9   : > { %v2250_v18 = vpack.c.bf16 %v2232_v12, %v2231_v3  ;;  %v2568_v53 = vld [vmem:[%s4657_s26 + $0xad] sm:$0xff]  ;;  %v2594_v3 = vpack.c.bf16 %v2566_v1, %v2565_v51  ;;  %v2919_v0 = vld [vmem:[%s4657_s26 + $0x96] sm:$0xff] }
  0xba   : > { %v2595_v12 = vpack.c.bf16 %v2568_v53, %v2567_v6  ;;  %v1509_v51 = vld [vmem:[%s4657_s26 + $0xb3] sm:$0xff]  ;;  %v1510_v1 = vld [vmem:[%s4657_s26 + $0xbb] sm:$0xff] }
  0xbb   : > { %v2922_v6 = vld [vmem:[%s4657_s26 + $0xae] sm:$0xff] }
  0xbe   : > { %3965 = vmatmul.mubr.msk.bf16.gmra.mrb[12].mxu1 %vm294_vm0, %v5076_v8 }
  0xbf   : > { %4157 = vmatmul.mubr.msk.bf16.gmra.mrb[28].mxu0 %vm294_vm0, %v4935_v5  ;;  %3968 = vmatprep.mubr.msk.bf16.mxu1 %vm294_vm0, %v5078_v10  ;;  %v2552_v5 = vld [vmem:[%s4657_s26 + $0x2d] sm:$0xff] }
  0xc0   : > { %4160 = vmatprep.mubr.msk.bf16.mxu0 %vm294_vm0, %v4949_v15  ;;  %v2587_v23 = vpack.c.bf16 %v2552_v5, %v2551_v16  ;;  %v803_v15 = vld [vmem:[%s4657_s26 + $0xb2] sm:$0xff]  ;;  %v2571_v16 = vld [vmem:[%s4657_s26 + $0xc5] sm:$0xff] }
  0xc1   : > { %v5114_v32 = vpack.c.bf16 %v804_v24, %v803_v15  ;;  %v2572_v5 = vld [vmem:[%s4657_s26 + $0xcd] sm:$0xff]  ;;  %v2574_v15 = vld [vmem:[%s4657_s26 + $0xdd] sm:$0xff] }
  0xc2   : > { %v4594_v24 = vld [vmem:[%s5436_s1 + $0x80] sm:$0xff]  }
  0xc6   : > { %3969 = vmatmul.mubr.msk.bf16.gmra.mrb[16].mxu1 %vm294_vm0, %v5096_v17 }
  0xc7   : > { %4161 = vmatmul.mubr.msk.bf16.gmra.mrb[32].mxu0 %vm294_vm0, %v2250_v18  ;;  %3972 = vmatprep.mubr.msk.bf16.mxu1 %vm294_vm0, %v5098_v21  ;;  %v2596_v18 = vpack.c.bf16 %v2570_v14, %v2569_v13  ;;  %v1511_v13 = vld [vmem:[%s4657_s26 + $0xc3] sm:$0xff]  ;;  %v1512_v14 = vld [vmem:[%s4657_s26 + $0xcb] sm:$0xff] }
  0xc8   : > { %4172 = vmatprep.mubr.msk.bf16.mxu0 %vm294_vm0, %v2587_v23  ;;  %v2597_v23 = vpack.c.bf16 %v2572_v5, %v2571_v16  ;;  %v2923_v16 = vld [vmem:[%s4657_s26 + $0xb6] sm:$0xff]  ;;  %v2924_v5 = vld [vmem:[%s4657_s26 + $0xbe] sm:$0xff] }
  0xc9   : > { %v2950_v25 = vpack.c.bf16 %v2924_v5, %v2923_v16 }
  0xce   : > { %3973 = vmatmul.mubr.msk.bf16.gmra.mrb[20].mxu1 %vm294_vm0, %v5114_v32 }
  0xcf   : > { %4173 = vmatmul.mubr.msk.bf16.vlgmr.msra.gmra.mrb[0].mxu0 %vm294_vm0, %v2588_v31  ;;  %3976 = vmatprep.mubr.msk.bf16.mxu1 %vm294_vm0, %v5116_v33  ;;  %v2579_v31 = vld [vmem:[%s4657_s26 + $0x105] sm:$0xff] }
  0xd0   : > { %4209 = vmatpush3.bf16.msra.mxu0 %v4994_v38  ;;  %4176 = vmatprep.mubr.msk.bf16.mxu0 %vm294_vm0, %v2589_v56  ;;  %v2590_v38 = vpack.c.bf16 %v2558_v46, %v2557_v37  ;;  %v2580_v56 = vld [vmem:[%s4657_s26 + $0x10d] sm:$0xff]  ;;  %v2583_v37 = vld [vmem:[%s4657_s26 + $0x125] sm:$0xff] }
  0xd1   : > { %4210 = vmatprep.subr.bf16.mxu0 %v4590_v44  ;;  %v2601_v34 = vpack.c.bf16 %v2580_v56, %v2579_v31  ;;  %v2584_v46 = vld [vmem:[%s4657_s26 + $0x12d] sm:$0xff]  ;;  %v1518_v31 = vld [vmem:[%s4657_s26 + $0xfb] sm:$0xff] }
  0xd2   : > { %v2603_v58 = vpack.c.bf16 %v2584_v46, %v2583_v37  ;;  %v2929_v56 = vld [vmem:[%s4657_s26 + $0xe6] sm:$0xff] }
  0xd3   : > { %v1519_v37 = vld [vmem:[%s4657_s26 + $0x103] sm:$0xff]  ;;  %v1520_v46 = vld [vmem:[%s4657_s26 + $0x10b] sm:$0xff] }
  0xd4   : > { %4211 = vmatpush3.bf16.msra.mxu0 %v4590_v44  ;;  %v2600_v44 = vpack.c.bf16 %v2578_v29, %v2577_v30  ;;  %v2928_v30 = vld [vmem:[%s4657_s26 + $0xde] sm:$0xff]  ;;  %v1517_v29 = vld [vmem:[%s4657_s26 + $0xf3] sm:$0xff] }
  0xd5   : > { %4212 = vmatprep.subr.bf16.mxu0 %v4592_v42 }
  0xd6   : > { %3977 = vmatmul.mubr.msk.bf16.gmra.mrb[24].mxu1 %vm294_vm0, %v5139_v43 }
  0xd7   : > { %4177 = vmatmul.mubr.msk.bf16.gmra.mrb[4].mxu0 %vm294_vm0, %v2590_v38  ;;  %3980 = vmatprep.mubr.msk.bf16.mxu1 %vm294_vm0, %v5141_v45  ;;  %v2941_v38 = vpack.c.bf16 %v2906_v41, %v2905_v40  ;;  %v2933_v40 = vld [vmem:[%s4657_s26 + $0x106] sm:$0xff]  ;;  %v2934_v41 = vld [vmem:[%s4657_s26 + $0x10e] sm:$0xff] }
  0xd8   : > { %4180 = vmatprep.mubr.msk.bf16.mxu0 %vm294_vm0, %v2591_v60  ;;  %4213 = vmatpush3.bf16.msra.mxu0 %v4592_v42  ;;  %v2909_v60 = vld [vmem:[%s4657_s26 + $0x46] sm:$0xff] }
  0xd9   : > { %4214 = vmatprep.subr.bf16.mxu0 %v4593_v47 }
  0xdc   : > { %4215 = vmatpush3.bf16.msra.mxu0 %v4593_v47  ;;  %v2910_v47 = vld [vmem:[%s4657_s26 + $0x4e] sm:$0xff] }
  0xdd   : > { %v2943_v48 = vpack.c.bf16 %v2910_v47, %v2909_v60  ;;  %v1523_v60 = vld [vmem:[%s4657_s26 + $0x123] sm:$0xff]  ;;  %v1524_v47 = vld [vmem:[%s4657_s26 + $0x12b] sm:$0xff] }
  0xde   : > { %3981 = vmatmul.mubr.msk.bf16.gmra.mrb[28].mxu1 %vm294_vm0, %v5160_v36  ;;  %v1542_v54 = vpack.c.bf16 %v1524_v47, %v1523_v60 }
  0xdf   : > { %4181 = vmatmul.mubr.msk.bf16.gmra.mrb[8].mxu0 %vm294_vm0, %v2592_v49  ;;  %3984 = vmatprep.mubr.msk.bf16.mxu1 %vm294_vm0, %v5162_v62 }
  0xe0   : > { %4184 = vmatprep.mubr.msk.bf16.mxu0 %vm294_vm0, %v2593_v63  ;;  %v2947_v63 = vpack.c.bf16 %v2918_v22, %v2917_v57 }
  0xe6   : > { %3985 = vmatmul.mubr.msk.bf16.gmra.mrb[32].mxu1 %vm294_vm0, %v5176_v11 }
  0xe7   : > { %4185 = vmatmul.mubr.msk.bf16.gmra.mrb[12].mxu0 %vm294_vm0, %v2594_v3  ;;  %3996 = vmatprep.mubr.msk.bf16.mxu1 %vm294_vm0, %v5017_v50  ;;  %v2573_v50 = vld [vmem:[%s4657_s26 + $0xd5] sm:$0xff]  ;;  %v1535_v3 = vpack.c.bf16 %v1510_v1, %v1509_v51 }
  0xe8   : > { %4188 = vmatprep.mubr.msk.bf16.mxu0 %vm294_vm0, %v2595_v12 }
  0xee   : > { %3997 = vmatmul.mubr.msk.bf16.vlgmr.msra.gmra.mrb[0].mxu1 %vm294_vm0, %v5019_v52  ;;  %v4595_v52 = vld [vmem:[%s5436_s1 + $0x88] sm:$0xff]  }
  0xef   : > { %4189 = vmatmul.mubr.msk.bf16.gmra.mrb[16].mxu0 %vm294_vm0, %v2596_v18  ;;  %4000 = vmatprep.mubr.msk.bf16.mxu1 %vm294_vm0, %v5040_v59  ;;  %v2598_v59 = vpack.c.bf16 %v2574_v15, %v2573_v50  ;;  %v1513_v18 = vld [vmem:[%s4657_s26 + $0xd3] sm:$0xff]  ;;  %v2925_v50 = vld [vmem:[%s4657_s26 + $0xc6] sm:$0xff] }
  0xf0   : > { %4192 = vmatprep.mubr.msk.bf16.mxu0 %vm294_vm0, %v2597_v23  ;;  %4256 = vmatpush3.bf16.msra.mxu1 %v4594_v24  ;;  %v1514_v23 = vld [vmem:[%s4657_s26 + $0xdb] sm:$0xff]  ;;  %v2926_v15 = vld [vmem:[%s4657_s26 + $0xce] sm:$0xff]  ;;  %v1536_v24 = vpack.c.bf16 %v1512_v14, %v1511_v13 }
  0xf1   : > { %4253 = vmatprep.subr.bf16.mxu1 %v4595_v52  ;;  %v1537_v26 = vpack.c.bf16 %v1514_v23, %v1513_v18 }
  0xf4   : > { %4257 = vmatpush3.bf16.msra.mxu1 %v4595_v52  ;;  %v2951_v52 = vpack.c.bf16 %v2926_v15, %v2925_v50 }
  0xf5   : > { %4254 = vmatprep.subr.bf16.mxu1 %v4596_v28 }
  0xf6   : > { %4001 = vmatmul.mubr.msk.bf16.gmra.mrb[4].mxu1 %vm294_vm0, %v5042_v61  ;;  %v4597_v61 = vld [vmem:[%s5436_s1 + $0x98] sm:$0xff]  }
  0xf7   : > { %4193 = vmatmul.mubr.msk.bf16.gmra.mrb[20].mxu0 %vm294_vm0, %v2598_v59  ;;  %4004 = vmatprep.mubr.msk.bf16.mxu1 %vm294_vm0, %v5059_v2  ;;  %v2581_v2 = vld [vmem:[%s4657_s26 + $0x115] sm:$0xff]  ;;  %v1515_v59 = vld [vmem:[%s4657_s26 + $0xe3] sm:$0xff] }
  0xf8   : > { %4196 = vmatprep.mubr.msk.bf16.mxu0 %vm294_vm0, %v2599_v27  ;;  %4258 = vmatpush3.bf16.msra.mxu1 %v4596_v28  ;;  %v2602_v39 = vpack.c.bf16 %v2582_v35, %v2581_v2  ;;  %v1516_v27 = vld [vmem:[%s4657_s26 + $0xeb] sm:$0xff]  ;;  %v2927_v28 = vld [vmem:[%s4657_s26 + $0xd6] sm:$0xff]  ;;  %v1539_v2 = vpack.c.bf16 %v1518_v31, %v1517_v29 }
  0xf9   : > { %4255 = vmatprep.subr.bf16.mxu1 %v4597_v61 }
  0xfc   : > { %4259 = vmatpush3.bf16.msra.mxu1 %v4597_v61  ;;  %v2930_v61 = vld [vmem:[%s4657_s26 + $0xee] sm:$0xff] }
  0xfd   : > { %v2953_v35 = vpack.c.bf16 %v2930_v61, %v2929_v56 }
  0xfe   : > { %4005 = vmatmul.mubr.msk.bf16.gmra.mrb[8].mxu1 %vm294_vm0, %v5061_v4  ;;  %v2585_v4 = vld [vmem:[%s4657_s26 + $0x135] sm:$0xff] }
  0xff   : > { %4197 = vmatmul.mubr.msk.bf16.gmra.mrb[24].mxu0 %vm294_vm0, %v2600_v44  ;;  %4008 = vmatprep.mubr.msk.bf16.mxu1 %vm294_vm0, %v5076_v8  ;;  %v2586_v8 = vld [vmem:[%s4657_s26 + $0x13d] sm:$0xff]  ;;  %v1538_v44 = vpack.c.bf16 %v1516_v27, %v1515_v59 }
 0x100   : > { %4200 = vmatprep.mubr.msk.bf16.mxu0 %vm294_vm0, %v2601_v34  ;;  %v2604_v42 = vpack.c.bf16 %v2586_v8, %v2585_v4  ;;  %v2952_v34 = vpack.c.bf16 %v2928_v30, %v2927_v28  ;;  %v1521_v4 = vld [vmem:[%s4657_s26 + $0x113] sm:$0xff]  ;;  %v1522_v8 = vld [vmem:[%s4657_s26 + $0x11b] sm:$0xff] }
 0x106   : > { %4009 = vmatmul.mubr.msk.bf16.gmra.mrb[12].mxu1 %vm294_vm0, %v5078_v10  ;;  %v2907_v10 = vld [vmem:[%s4657_s26 + $0x36] sm:$0xff] }
 0x107   : > { %4201 = vmatmul.mubr.msk.bf16.gmra.mrb[28].mxu0 %vm294_vm0, %v2602_v39  ;;  %4012 = vmatprep.mubr.msk.bf16.mxu1 %vm294_vm0, %v5096_v17  ;;  %v2908_v17 = vld [vmem:[%s4657_s26 + $0x3e] sm:$0xff]  ;;  %v2931_v39 = vld [vmem:[%s4657_s26 + $0xf6] sm:$0xff] }
 0x108   : > { %4204 = vmatprep.mubr.msk.bf16.mxu0 %vm294_vm0, %v2603_v58  ;;  %v2942_v7 = vpack.c.bf16 %v2908_v17, %v2907_v10  ;;  %v2932_v58 = vld [vmem:[%s4657_s26 + $0xfe] sm:$0xff]  ;;  %v1541_v10 = vpack.c.bf16 %v1522_v8, %v1521_v4  ;;  %v2955_v17 = vpack.c.bf16 %v2934_v41, %v2933_v40 }
 0x10e   : > { %4013 = vmatmul.mubr.msk.bf16.gmra.mrb[16].mxu1 %vm294_vm0, %v5098_v21  ;;  %v2911_v21 = vld [vmem:[%s4657_s26 + $0x56] sm:$0xff] }
 0x10f   : > { %4205 = vmatmul.mubr.msk.bf16.gmra.mrb[32].mxu0 %vm294_vm0, %v2604_v42  ;;  %4016 = vmatprep.mubr.msk.bf16.mxu1 %vm294_vm0, %v5114_v32  ;;  %v2912_v32 = vld [vmem:[%s4657_s26 + $0x5e] sm:$0xff]  ;;  %v1540_v42 = vpack.c.bf16 %v1520_v46, %v1519_v37 }
 0x110   : > { %4216 = vmatprep.mubr.msk.bf16.mxu0 %vm294_vm0, %v2941_v38  ;;  %v2944_v19 = vpack.c.bf16 %v2912_v32, %v2911_v21  ;;  %v2954_v38 = vpack.c.bf16 %v2932_v58, %v2931_v39  ;;  %v2937_v21 = vld [vmem:[%s4657_s26 + $0x126] sm:$0xff]  ;;  %v2938_v32 = vld [vmem:[%s4657_s26 + $0x12e] sm:$0xff] }
 0x116   : > { %4017 = vmatmul.mubr.msk.bf16.gmra.mrb[20].mxu1 %vm294_vm0, %v5116_v33  ;;  %v2915_v33 = vld [vmem:[%s4657_s26 + $0x76] sm:$0xff] }
 0x117   : > { %4217 = vmatmul.mubr.msk.bf16.vlgmr.msra.gmra.mrb[0].mxu0 %vm294_vm0, %v2942_v7  ;;  %4020 = vmatprep.mubr.msk.bf16.mxu1 %vm294_vm0, %v5139_v43  ;;  %v2916_v43 = vld [vmem:[%s4657_s26 + $0x7e] sm:$0xff]  ;;  %v2935_v7 = vld [vmem:[%s4657_s26 + $0x116] sm:$0xff] }
 0x118   : > { %4220 = vmatprep.mubr.msk.bf16.mxu0 %vm294_vm0, %v2943_v48  ;;  %v2946_v49 = vpack.c.bf16 %v2916_v43, %v2915_v33  ;;  %v2936_v48 = vld [vmem:[%s4657_s26 + $0x11e] sm:$0xff] }
 0x119   : > { %v2956_v9 = vpack.c.bf16 %v2936_v48, %v2935_v7  ;;  %v2940_v33 = vld [vmem:[%s4657_s26 + $0x13e] sm:$0xff] }
 0x11e   : > { %4021 = vmatmul.mubr.msk.bf16.gmra.mrb[24].mxu1 %vm294_vm0, %v5141_v45  ;;  %v1169_v45 = vld [vmem:[%s4657_s26 + $0x122] sm:$0xff] }
 0x11f   : > { %4221 = vmatmul.mubr.msk.bf16.gmra.mrb[4].mxu0 %vm294_vm0, %v2944_v19  ;;  %4024 = vmatprep.mubr.msk.bf16.mxu1 %vm294_vm0, %v5160_v36  ;;  %v1170_v36 = vld [vmem:[%s4657_s26 + $0x12a] sm:$0xff]  ;;  %v2957_v19 = vpack.c.bf16 %v2938_v32, %v2937_v21 }
 0x120   : > { %4224 = vmatprep.mubr.msk.bf16.mxu0 %vm294_vm0, %v2945_v55  ;;  %v1188_v53 = vpack.c.bf16 %v1170_v36, %v1169_v45  ;;  %v2939_v55 = vld [vmem:[%s4657_s26 + $0x136] sm:$0xff] }
 0x121   : > { %v2958_v43 = vpack.c.bf16 %v2940_v33, %v2939_v55 }
 0x126   : > { %4025 = vmatmul.mubr.msk.bf16.gmra.mrb[28].mxu1 %vm294_vm0, %v5162_v62  ;;  %v2921_v62 = vld [vmem:[%s4657_s26 + $0xa6] sm:$0xff]  ;;  %s4549_s26 = smul.u32 288, %s5439_s10 }
 0x127   : > { %4225 = vmatmul.mubr.msk.bf16.gmra.mrb[8].mxu0 %vm294_vm0, %v2946_v49  ;;  %4028 = vmatprep.mubr.msk.bf16.mxu1 %vm294_vm0, %v5176_v11  ;;  %v2948_v11 = vpack.c.bf16 %v2920_v20, %v2919_v0  ;;  %v2949_v12 = vpack.c.bf16 %v2922_v6, %v2921_v62 }
 0x128   : > { %4228 = vmatprep.mubr.msk.bf16.mxu0 %vm294_vm0, %v2947_v63  ;;  %s5352_s21 = scalar_lea.vmem %s5437_s2, %s4549_s26 }
 0x12e   : > { %4029 = vmatmul.mubr.msk.bf16.gmra.mrb[32].mxu1 %vm294_vm0, %v1188_v53 }
 0x12f   : > { %4229 = vmatmul.mubr.msk.bf16.gmra.mrb[12].mxu0 %vm294_vm0, %v2948_v11  ;;  %4060 = vmatprep.mubr.msk.bf16.mxu1 %vm294_vm0, %v1535_v3 }
 0x130   : > { %4232 = vmatprep.mubr.msk.bf16.mxu0 %vm294_vm0, %v2949_v12 }
 0x136   : > { %4061 = vmatmul.mubr.msk.bf16.vlgmr.msra.gmra.mrb[20].mxu1 %vm294_vm0, %v1536_v24 }
 0x137   : > { %4233 = vmatmul.mubr.msk.bf16.gmra.mrb[16].mxu0 %vm294_vm0, %v2950_v25  ;;  %4064 = vmatprep.mubr.msk.bf16.mxu1 %vm294_vm0, %v1537_v26 }
 0x138   : > { %4236 = vmatprep.mubr.msk.bf16.mxu0 %vm294_vm0, %v2951_v52 }
 0x13e   : > { %4065 = vmatmul.mubr.msk.bf16.gmra.mrb[24].mxu1 %vm294_vm0, %v1538_v44 }
 0x13f   : > { %4237 = vmatmul.mubr.msk.bf16.gmra.mrb[20].mxu0 %vm294_vm0, %v2952_v34  ;;  %4068 = vmatprep.mubr.msk.bf16.mxu1 %vm294_vm0, %v1539_v2 }
 0x140   : > { %4240 = vmatprep.mubr.msk.bf16.mxu0 %vm294_vm0, %v2953_v35 }
 0x146   : > { %4069 = vmatmul.mubr.msk.bf16.gmra.mrb[28].mxu1 %vm294_vm0, %v1540_v42 }
 0x147   : > { %4241 = vmatmul.mubr.msk.bf16.gmra.mrb[24].mxu0 %vm294_vm0, %v2954_v38  ;;  %4072 = vmatprep.mubr.msk.bf16.mxu1 %vm294_vm0, %v1541_v10 }
 0x148   : > { %4244 = vmatprep.mubr.msk.bf16.mxu0 %vm294_vm0, %v2955_v17 }
 0x14e   : > { %4073 = vmatmul.mubr.msk.bf16.gmra.mrb[32].mxu1 %vm294_vm0, %v1542_v54 }
 0x14f   : > { %4245 = vmatmul.mubr.msk.bf16.gmra.mrb[28].mxu0 %vm294_vm0, %v2956_v9 }
 0x150   : > { %4248 = vmatprep.mubr.msk.bf16.mxu0 %vm294_vm0, %v2957_v19 }
 0x157   : > { %4249 = vmatmul.mubr.msk.bf16.gmra.mrb[32].mxu0 %vm294_vm0, %v2958_v43 }
 0x1c1   : > { %v3998_v57 = vpop.f32.mrb[0].mxu1 }
 0x1c2   : > { %v1310_v22 = vpop.f32.mrb[1].mxu1 }
 0x1c3   : > { %v3999_v49 = vpop.f32.mrb[2].mxu1 }
 0x1c4   : > { %v1313_v63 = vpop.f32.mrb[3].mxu1 }
 0x1c9   : > { %v4002_v45 = vpop.f32.mrb[4].mxu1 }
 0x1ca   : > { %v1326_v36 = vpop.f32.mrb[5].mxu1 }
 0x1cb   : > { %v4003_v0 = vpop.f32.mrb[6].mxu1 }
 0x1cc   : > { %v1329_v20 = vpop.f32.mrb[7].mxu1 }
 0x1d1   : > { %v4006_v51 = vpop.f32.mrb[8].mxu1 }
 0x1d2   : > { %v1342_v1 = vpop.f32.mrb[9].mxu1 }
 0x1d3   : > { %v4007_v62 = vpop.f32.mrb[10].mxu1 }
 0x1d4   : > { %v1345_v6 = vpop.f32.mrb[11].mxu1 }
 0x1d9   : > { %v4010_v53 = vpop.f32.mrb[12].mxu1 }
 0x1da   : > { %v1358_v11 = vpop.f32.mrb[13].mxu1 }
 0x1db   : > { %v5336_v3 = vpop.f32.mrb[14].mxu1 }
 0x1dc   : > { %v5338_v12 = vpop.f32.mrb[15].mxu1 }
 0x1e1   : > { %v5340_v13 = vpop.f32.mrb[16].mxu1 }
 0x1e2   : > { %v5342_v14 = vpop.f32.mrb[17].mxu1 }
 0x1e3   : > { %v5344_v16 = vpop.f32.mrb[18].mxu1 }
 0x1e4   : > { %v5346_v5 = vpop.f32.mrb[19].mxu1 }
 0x1ea   : > { %v4218_v18 = vpop.f32.mrb[0].mxu0 }
 0x1eb   : > { %v4260_v23 = vadd.f32 %v4218_v18, %v3998_v57  ;;  %v3080_v50 = vpop.f32.mrb[1].mxu0 }
 0x1ec   : > { %v4261_v15 = vadd.f32 %v3080_v50, %v1310_v22  ;;  %v4219_v24 = vpop.f32.mrb[2].mxu0 }
 0x1ed   : > { %v3261_v25 = vmax.f32 %v4260_v23, 0.0  ;;  %v4262_v26 = vadd.f32 %v4219_v24, %v3999_v49  ;;  %v3083_v52 = vpop.f32.mrb[3].mxu0 }
 0x1ee   : > { %v3259_v59 = vmax.f32 %v4261_v15, 0.0  ;;  %v4263_v27 = vadd.f32 %v3083_v52, %v1313_v63 }
 0x1ef   : > { %3298 = vst.msk [vmem:[%s5352_s21 + $0x10] sm:$0xff] %vm3295_vm1, %v3261_v25  ;;  %v3262_v28 = vmax.f32 %v4262_v26, 0.0 }
 0x1f0   : > { %3296 = vst.msk [vmem:[%s5352_s21] sm:$0xff] %vm3295_vm1, %v3259_v59  ;;  %v3260_v30 = vmax.f32 %v4263_v27, 0.0 }
 0x1f1   : > { %3299 = vst.msk [vmem:[%s5352_s21 + $0x18] sm:$0xff] %vm3295_vm1, %v3262_v28 }
 0x1f2   : > { %3297 = vst.msk [vmem:[%s5352_s21 + $0x8] sm:$0xff] %vm3295_vm1, %v3260_v30  ;;  %v4222_v29 = vpop.f32.mrb[4].mxu0 }
 0x1f3   : > { %v4264_v31 = vadd.f32 %v4222_v29, %v4002_v45  ;;  %v3096_v56 = vpop.f32.mrb[5].mxu0 }
 0x1f4   : > { %v4265_v61 = vadd.f32 %v3096_v56, %v1326_v36  ;;  %v4223_v44 = vpop.f32.mrb[6].mxu0 }
 0x1f5   : > { %v3265_v34 = vmax.f32 %v4264_v31, 0.0  ;;  %v4266_v2 = vadd.f32 %v4223_v44, %v4003_v0  ;;  %v3099_v35 = vpop.f32.mrb[7].mxu0 }
 0x1f6   : > { %v3263_v37 = vmax.f32 %v4265_v61, 0.0  ;;  %v4267_v46 = vadd.f32 %v3099_v35, %v1329_v20 }
 0x1f7   : > { %3302 = vst.msk [vmem:[%s5352_s21 + $0x30] sm:$0xff] %vm3295_vm1, %v3265_v34  ;;  %v3266_v39 = vmax.f32 %v4266_v2, 0.0 }
 0x1f8   : > { %3300 = vst.msk [vmem:[%s5352_s21 + $0x20] sm:$0xff] %vm3295_vm1, %v3263_v37  ;;  %v3264_v58 = vmax.f32 %v4267_v46, 0.0 }
 0x1f9   : > { %3303 = vst.msk [vmem:[%s5352_s21 + $0x38] sm:$0xff] %vm3295_vm1, %v3266_v39 }
 0x1fa   : > { %3301 = vst.msk [vmem:[%s5352_s21 + $0x28] sm:$0xff] %vm3295_vm1, %v3264_v58  ;;  %v4226_v4 = vpop.f32.mrb[8].mxu0 }
 0x1fb   : > { %v4268_v8 = vadd.f32 %v4226_v4, %v4006_v51  ;;  %v3112_v40 = vpop.f32.mrb[9].mxu0 }
 0x1fc   : > { %v4269_v41 = vadd.f32 %v3112_v40, %v1342_v1  ;;  %v4227_v42 = vpop.f32.mrb[10].mxu0 }
 0x1fd   : > { %v3269_v38 = vmax.f32 %v4268_v8, 0.0  ;;  %v4270_v10 = vadd.f32 %v4227_v42, %v4007_v62  ;;  %v3115_v17 = vpop.f32.mrb[11].mxu0 }
 0x1fe   : > { %v3267_v60 = vmax.f32 %v4269_v41, 0.0  ;;  %v4271_v47 = vadd.f32 %v3115_v17, %v1345_v6 }
 0x1ff   : > { %3306 = vst.msk [vmem:[%s5352_s21 + $0x50] sm:$0xff] %vm3295_vm1, %v3269_v38  ;;  %v3270_v7 = vmax.f32 %v4270_v10, 0.0 }
 0x200   : > { %3304 = vst.msk [vmem:[%s5352_s21 + $0x40] sm:$0xff] %vm3295_vm1, %v3267_v60  ;;  %v3268_v48 = vmax.f32 %v4271_v47, 0.0 }
 0x201   : > { %3307 = vst.msk [vmem:[%s5352_s21 + $0x58] sm:$0xff] %vm3295_vm1, %v3270_v7 }
 0x202   : > { %3305 = vst.msk [vmem:[%s5352_s21 + $0x48] sm:$0xff] %vm3295_vm1, %v3268_v48  ;;  %v4230_v21 = vpop.f32.mrb[12].mxu0 }
 0x203   : > { %v4272_v32 = vadd.f32 %v4230_v21, %v4010_v53  ;;  %v3128_v54 = vpop.f32.mrb[13].mxu0 }
 0x204   : > { %v4273_v9 = vadd.f32 %v3128_v54, %v1358_v11  ;;  %v4231_v19 = vpop.f32.mrb[14].mxu0 }
 0x205   : > { %v3273_v55 = vmax.f32 %v4272_v32, 0.0  ;;  %v4274_v33 = vadd.f32 %v4231_v19, %v5336_v3  ;;  %v3131_v43 = vpop.f32.mrb[15].mxu0 }
 0x206   : > { %v3271_v57 = vmax.f32 %v4273_v9, 0.0  ;;  %v4275_v22 = vadd.f32 %v3131_v43, %v5338_v12 }
 0x207   : > { %3310 = vst.msk [vmem:[%s5352_s21 + $0x70] sm:$0xff] %vm3295_vm1, %v3273_v55  ;;  %v3274_v49 = vmax.f32 %v4274_v33, 0.0 }
 0x208   : > { %3308 = vst.msk [vmem:[%s5352_s21 + $0x60] sm:$0xff] %vm3295_vm1, %v3271_v57  ;;  %v3272_v63 = vmax.f32 %v4275_v22, 0.0 }
 0x209   : > { %3311 = vst.msk [vmem:[%s5352_s21 + $0x78] sm:$0xff] %vm3295_vm1, %v3274_v49  ;;  %v4062_v45 = vpop.f32.mrb[20].mxu1 }
 0x20a   : > { %3309 = vst.msk [vmem:[%s5352_s21 + $0x68] sm:$0xff] %vm3295_vm1, %v3272_v63  ;;  %v4234_v36 = vpop.f32.mrb[16].mxu0  ;;  %v1744_v0 = vpop.f32.mrb[21].mxu1 }
 0x20b   : > { %v4276_v20 = vadd.f32 %v4234_v36, %v5340_v13  ;;  %v3144_v51 = vpop.f32.mrb[17].mxu0  ;;  %v4063_v1 = vpop.f32.mrb[22].mxu1 }
 0x20c   : > { %v4277_v62 = vadd.f32 %v3144_v51, %v5342_v14  ;;  %v4235_v6 = vpop.f32.mrb[18].mxu0  ;;  %v1747_v53 = vpop.f32.mrb[23].mxu1 }
 0x20d   : > { %v3277_v11 = vmax.f32 %v4276_v20, 0.0  ;;  %v4278_v3 = vadd.f32 %v4235_v6, %v5344_v16  ;;  %v3147_v12 = vpop.f32.mrb[19].mxu0 }
 0x20e   : > { %v3275_v18 = vmax.f32 %v4277_v62, 0.0  ;;  %v4279_v23 = vadd.f32 %v3147_v12, %v5346_v5 }
 0x20f   : > { %3314 = vst.msk [vmem:[%s5352_s21 + $0x90] sm:$0xff] %vm3295_vm1, %v3277_v11  ;;  %v3278_v50 = vmax.f32 %v4278_v3, 0.0 }
 0x210   : > { %3312 = vst.msk [vmem:[%s5352_s21 + $0x80] sm:$0xff] %vm3295_vm1, %v3275_v18  ;;  %v3276_v13 = vmax.f32 %v4279_v23, 0.0 }
 0x211   : > { %3315 = vst.msk [vmem:[%s5352_s21 + $0x98] sm:$0xff] %vm3295_vm1, %v3278_v50  ;;  %v4066_v15 = vpop.f32.mrb[24].mxu1 }
 0x212   : > { %3313 = vst.msk [vmem:[%s5352_s21 + $0x88] sm:$0xff] %vm3295_vm1, %v3276_v13  ;;  %v4238_v14 = vpop.f32.mrb[20].mxu0  ;;  %v1760_v24 = vpop.f32.mrb[25].mxu1 }
 0x213   : > { %v4280_v16 = vadd.f32 %v4238_v14, %v4062_v45  ;;  %v3160_v25 = vpop.f32.mrb[21].mxu0  ;;  %v4067_v5 = vpop.f32.mrb[26].mxu1 }
 0x214   : > { %v4281_v26 = vadd.f32 %v3160_v25, %v1744_v0  ;;  %v4239_v52 = vpop.f32.mrb[22].mxu0  ;;  %v1763_v59 = vpop.f32.mrb[27].mxu1 }
 0x215   : > { %v3281_v27 = vmax.f32 %v4280_v16, 0.0  ;;  %v4282_v28 = vadd.f32 %v4239_v52, %v4063_v1  ;;  %v3163_v30 = vpop.f32.mrb[23].mxu0 }
 0x216   : > { %v3279_v29 = vmax.f32 %v4281_v26, 0.0  ;;  %v4283_v31 = vadd.f32 %v3163_v30, %v1747_v53 }
 0x217   : > { %3318 = vst.msk [vmem:[%s5352_s21 + $0xb0] sm:$0xff] %vm3295_vm1, %v3281_v27  ;;  %v3282_v56 = vmax.f32 %v4282_v28, 0.0 }
 0x218   : > { %3316 = vst.msk [vmem:[%s5352_s21 + $0xa0] sm:$0xff] %vm3295_vm1, %v3279_v29  ;;  %v3280_v61 = vmax.f32 %v4283_v31, 0.0 }
 0x219   : > { %3319 = vst.msk [vmem:[%s5352_s21 + $0xb8] sm:$0xff] %vm3295_vm1, %v3282_v56  ;;  %v4070_v44 = vpop.f32.mrb[28].mxu1 }
 0x21a   : > { %3317 = vst.msk [vmem:[%s5352_s21 + $0xa8] sm:$0xff] %vm3295_vm1, %v3280_v61  ;;  %v4242_v34 = vpop.f32.mrb[24].mxu0  ;;  %v1776_v2 = vpop.f32.mrb[29].mxu1 }
 0x21b   : > { %v4284_v35 = vadd.f32 %v4242_v34, %v4066_v15  ;;  %v3176_v37 = vpop.f32.mrb[25].mxu0  ;;  %v4071_v46 = vpop.f32.mrb[30].mxu1 }
 0x21c   : > { %v4285_v39 = vadd.f32 %v3176_v37, %v1760_v24  ;;  %v4243_v58 = vpop.f32.mrb[26].mxu0  ;;  %v1779_v4 = vpop.f32.mrb[31].mxu1 }
 0x21d   : > { %v3285_v8 = vmax.f32 %v4284_v35, 0.0  ;;  %v4286_v40 = vadd.f32 %v4243_v58, %v4067_v5  ;;  %v3179_v41 = vpop.f32.mrb[27].mxu0 }
 0x21e   : > { %v3283_v42 = vmax.f32 %v4285_v39, 0.0  ;;  %v4287_v38 = vadd.f32 %v3179_v41, %v1763_v59 }
 0x21f   : > { %3322 = vst.msk [vmem:[%s5352_s21 + $0xd0] sm:$0xff] %vm3295_vm1, %v3285_v8  ;;  %v3286_v10 = vmax.f32 %v4286_v40, 0.0 }
 0x220   : > { %3320 = vst.msk [vmem:[%s5352_s21 + $0xc0] sm:$0xff] %vm3295_vm1, %v3283_v42  ;;  %v3284_v17 = vmax.f32 %v4287_v38, 0.0 }
 0x221   : > { %3323 = vst.msk [vmem:[%s5352_s21 + $0xd8] sm:$0xff] %vm3295_vm1, %v3286_v10  ;;  %v4074_v60 = vpop.f32.mrb[32].mxu1 }
 0x222   : > { %3321 = vst.msk [vmem:[%s5352_s21 + $0xc8] sm:$0xff] %vm3295_vm1, %v3284_v17  ;;  %v4246_v47 = vpop.f32.mrb[28].mxu0  ;;  %v1792_v7 = vpop.f32.mrb[33].mxu1 }
 0x223   : > { %v4288_v48 = vadd.f32 %v4246_v47, %v4070_v44  ;;  %v3192_v21 = vpop.f32.mrb[29].mxu0  ;;  %v4075_v32 = vpop.f32.mrb[34].mxu1 }
 0x224   : > { %v4289_v54 = vadd.f32 %v3192_v21, %v1776_v2  ;;  %v4247_v9 = vpop.f32.mrb[30].mxu0  ;;  %v1795_v19 = vpop.f32.mrb[35].mxu1 }
 0x225   : > { %v3289_v55 = vmax.f32 %v4288_v48, 0.0  ;;  %v4290_v33 = vadd.f32 %v4247_v9, %v4071_v46  ;;  %v3195_v43 = vpop.f32.mrb[31].mxu0 }
 0x226   : > { %v3287_v57 = vmax.f32 %v4289_v54, 0.0  ;;  %v4291_v22 = vadd.f32 %v3195_v43, %v1779_v4 }
 0x227   : > { %3326 = vst.msk [vmem:[%s5352_s21 + $0xf0] sm:$0xff] %vm3295_vm1, %v3289_v55  ;;  %v3290_v49 = vmax.f32 %v4290_v33, 0.0 }
 0x228   : > { %3324 = vst.msk [vmem:[%s5352_s21 + $0xe0] sm:$0xff] %vm3295_vm1, %v3287_v57  ;;  %v3288_v63 = vmax.f32 %v4291_v22, 0.0 }
 0x229   : > { %3327 = vst.msk [vmem:[%s5352_s21 + $0xf8] sm:$0xff] %vm3295_vm1, %v3290_v49 }
 0x22a   : > { %3325 = vst.msk [vmem:[%s5352_s21 + $0xe8] sm:$0xff] %vm3295_vm1, %v3288_v63  ;;  %v4250_v45 = vpop.f32.mrb[32].mxu0 }
 0x22b   : > { %v4292_v36 = vadd.f32 %v4250_v45, %v4074_v60  ;;  %v3208_v0 = vpop.f32.mrb[33].mxu0 }
 0x22c   : > { %v4293_v20 = vadd.f32 %v3208_v0, %v1792_v7  ;;  %v4251_v51 = vpop.f32.mrb[34].mxu0 }
 0x22d   : > { %v3293_v1 = vmax.f32 %v4292_v36, 0.0  ;;  %v4294_v62 = vadd.f32 %v4251_v51, %v4075_v32  ;;  %v3211_v6 = vpop.f32.mrb[35].mxu0 }
 0x22e   : > { %v3291_v53 = vmax.f32 %v4293_v20, 0.0  ;;  %v4295_v11 = vadd.f32 %v3211_v6, %v1795_v19 }
 0x22f   : > { %3330 = vst.msk [vmem:[%s5352_s21 + $0x110] sm:$0xff] %vm3295_vm1, %v3293_v1  ;;  %v3294_v3 = vmax.f32 %v4294_v62, 0.0 }
 0x230   : > { %3328 = vst.msk [vmem:[%s5352_s21 + $0x100] sm:$0xff] %vm3295_vm1, %v3291_v53  ;;  %v3292_v12 = vmax.f32 %v4295_v11, 0.0 }
 0x231   : > { %3331 = vst.msk [vmem:[%s5352_s21 + $0x118] sm:$0xff] %vm3295_vm1, %v3294_v3 }
 0x232   : > { %3329 = vst.msk [vmem:[%s5352_s21 + $0x108] sm:$0xff] %vm3295_vm1, %v3292_v12 }
 0x233 PF: > { %s12_s9 = sadd.s32 1, %s4604_s9  }
 0x234   : > { %p9_p4 = scmp.ge.s32.totalorder %s12_s9, 4  }
 0x236   :  { %11 = sbr.rel (!%p9_p4) target bundleno = 1 (0x1), region = 66 }

</bundles_post_ra>
